<compile_context>
chip_gen: v7x
topology: tpu7x:2x2x1
jax: 0.10.0
libtpu: 0.0.40
codegen_flags: <defaults>
</compile_context>

<pallas_src>
import functools

import numpy as np
import jax
import jax.numpy as jnp
from jax.experimental import pallas as pl
from jax.experimental.pallas import tpu as pltpu


_VMEM_LIMIT_BYTES = 48 * 1024 * 1024   # <= v7x 64 MiB physical VMEM; ample on v5e/v6e


# ----------------------------------------------------------------------------
# Pallas kernels
# ----------------------------------------------------------------------------
def _grouped_kernel(gx_ref, gf_ref, q_ref, wx_ref, wf_ref, b_ref, o_ref, *, ns):
    """Fused Linear(BN-folded) -> max over ns neighbours -> shift -> ReLU.

    gx_ref : (ns, tile_p, 3)     gathered neighbour xyz            (bf16)
    gf_ref : (ns, tile_p, c_in)  gathered neighbour features       (bf16)
    q_ref  : (tile_p, 3)         query (sampled) point xyz         (bf16)
    wx_ref : (3, c_out)          folded linear weight, xyz rows    (bf16)
    wf_ref : (c_in, c_out)       folded linear weight, feat rows   (bf16)
    b_ref  : (1, c_out)          folded BN shift                   (f32)
    o_ref  : (tile_p, c_out)                                        (f32)

    Identities used:  relu(max_j(y_j) + b) == max_j(relu(y_j + b))  (ReLU monotone,
    per-channel shift independent of j), and  (p_j - q) @ Wx == p_j @ Wx - q @ Wx,
    so recentring is one q @ Wx per tile and the epilogue runs once on the pooled tile.
    """
    wx = wx_ref[...]
    wf = wf_ref[...]
    qproj = jnp.dot(q_ref[...], wx, preferred_element_type=jnp.float32)
    acc = None
    for j in range(ns):                      # static unroll; RHS stays resident in MXU
        yj = (jnp.dot(gf_ref[j], wf, preferred_element_type=jnp.float32)
              + jnp.dot(gx_ref[j], wx, preferred_element_type=jnp.float32))
        acc = yj if acc is None else jnp.maximum(acc, yj)   # neighbour max on VPU
    # TODO(synk): c_out < 128 makes this a lane-masked store; packing two point rows
    # into one 128-lane output row would need an in-kernel relayout reshape -- skipped
    # because after pooling the output is ~1/9 of the input byte stream.
    o_ref[...] = jnp.maximum(acc - qproj + b_ref[...], 0.0)


def _pointwise_kernel(f_ref, w_ref, b_ref, o_ref):
    """stride == 1 path: Linear (BN-folded) + shift + ReLU, no pooling."""
    y = jnp.dot(f_ref[...], w_ref[...], preferred_element_type=jnp.float32)
    o_ref[...] = jnp.maximum(y + b_ref[...], 0.0)


# ----------------------------------------------------------------------------
# Wrappers
# ----------------------------------------------------------------------------
def _round_up(x, m):
    return (x + m - 1) // m * m


def _choose_tile(m, tile_p):
    # Keep >= 2 grid steps when possible (megacore / v7x 2-TC sharding) and keep the
    # point axis 16-row aligned (bf16 sublane packing).
    half = _round_up(max((m + 1) // 2, 1), 16)
    return max(16, min(tile_p, half))


@functools.partial(jax.jit, static_argnames=("tile_p", "compute_dtype"))
def _grouped_td(point, feat, new_point, idx, wx_fold, wf_fold, shift, *,
                tile_p, compute_dtype):
    # TODO(synk): the KNN gather is data-dependent with arbitrary per-row indices;
    # per-row in-kernel DMAs (~64-128 B each) would be descriptor-bound, so the gather
    # stays an XLA gather fused into this single jitted program.  bf16 source cast +
    # neighbour-major layout below halve and de-duplicate its HBM traffic instead.
    m, ns = idx.shape
    c_in = feat.shape[1]
    c_out = wf_fold.shape[1]
    m_pad = _round_up(m, tile_p)
    if m_pad != m:
        # Pad the small index / query arrays (O(m)) instead of the gathered tensor.
        idx = jnp.pad(idx, ((0, m_pad - m), (0, 0)))
        new_point = jnp.pad(new_point, ((0, m_pad - m), (0, 0)))
    idx_t = idx.T                                   # (ns, m_pad): neighbour-major gather
    pt = point.astype(compute_dtype)
    ft = feat.astype(compute_dtype)
    gxyz = pt[idx_t]                                # (ns, m_pad, 3)
    gfeat = ft[idx_t]                               # (ns, m_pad, c_in)
    q = new_point.astype(compute_dtype)             # (m_pad, 3)
    wx = wx_fold.astype(compute_dtype)
    wf = wf_fold.astype(compute_dtype)

    out = pl.pallas_call(
        functools.partial(_grouped_kernel, ns=ns),
        out_shape=jax.ShapeDtypeStruct((m_pad, c_out), jnp.float32),
        grid=(m_pad // tile_p,),
        in_specs=[
            pl.BlockSpec((ns, tile_p, 3), lambda i: (0, i, 0)),
            pl.BlockSpec((ns, tile_p, c_in), lambda i: (0, i, 0)),
            pl.BlockSpec((tile_p, 3), lambda i: (i, 0)),
            pl.BlockSpec((3, c_out), lambda i: (0, 0)),
            pl.BlockSpec((c_in, c_out), lambda i: (0, 0)),
            pl.BlockSpec((1, c_out), lambda i: (0, 0)),
        ],
        out_specs=pl.BlockSpec((tile_p, c_out), lambda i: (i, 0)),
        compiler_params=pltpu.CompilerParams(
            dimension_semantics=("parallel",),
            vmem_limit_bytes=_VMEM_LIMIT_BYTES,
        ),
    )(gxyz, gfeat, q, wx, wf, shift)
    return out[:m]


@functools.partial(jax.jit, static_argnames=("tile_p", "compute_dtype"))
def _pointwise_td(feat, w_fold, shift, *, tile_p, compute_dtype):
    n, c_in = feat.shape
    c_out = w_fold.shape[1]
    n_pad = _round_up(n, tile_p)
    f = feat.astype(compute_dtype)
    if n_pad != n:
        # Only hit when n % tile_p != 0 (one cheap pass over (n, c_in)).
        f = jnp.pad(f, ((0, n_pad - n), (0, 0)))
    w = w_fold.astype(compute_dtype)

    out = pl.pallas_call(
        _pointwise_kernel,
        out_shape=jax.ShapeDtypeStruct((n_pad, c_out), jnp.float32),
        grid=(n_pad // tile_p,),
        in_specs=[
            pl.BlockSpec((tile_p, c_in), lambda i: (i, 0)),
            pl.BlockSpec((c_in, c_out), lambda i: (0, 0)),
            pl.BlockSpec((1, c_out), lambda i: (0, 0)),
        ],
        out_specs=pl.BlockSpec((tile_p, c_out), lambda i: (i, 0)),
        compiler_params=pltpu.CompilerParams(
            dimension_semantics=("parallel",),
            vmem_limit_bytes=_VMEM_LIMIT_BYTES,
        ),
    )(f, w, shift)
    return out[:n]


# ----------------------------------------------------------------------------
# Glue: new_row_splits, furthest point sampling, batched KNN (data dependent)
# ----------------------------------------------------------------------------
def compute_new_row_splits(row_splits, stride):
    new, count = [0], 0
    for i in range(1, len(row_splits)):
        count += (int(row_splits[i]) - int(row_splits[i - 1])) // stride
        new.append(count)
    return np.asarray(new, dtype=np.int64)


def _fps_one(pts, nsel):
    # TODO(synk): FPS is an inherently sequential data-dependent loop; kept in plain JAX.
    npts = pts.shape[0]

    def body(i, carry):
        dist, sel, last = carry
        d_new = jnp.sum((pts - pts[last]) ** 2, axis=-1)
        dist = jnp.minimum(dist, d_new)
        nxt = jnp.argmax(dist).astype(jnp.int32)
        sel = sel.at[i].set(nxt)
        return dist, sel, nxt

    dist0 = jnp.full((npts,), 1e10, jnp.float32)
    sel0 = jnp.zeros((nsel,), jnp.int32)
    _, sel, _ = jax.lax.fori_loop(1, nsel, body, (dist0, sel0, jnp.int32(0)))
    return sel


def furthest_point_sample(point, row_splits, new_row_splits):
    out = []
    for b in range(len(row_splits) - 1):
        s, e = int(row_splits[b]), int(row_splits[b + 1])
        nsel = int(new_row_splits[b + 1]) - int(new_row_splits[b])
        out.append(_fps_one(point[s:e], nsel) + s)
    return jnp.concatenate(out, axis=0)


def knn_indices(point, queries, points_row_splits, queries_row_splits, k):
    # TODO(synk): brute-force batched KNN (top-k) kept in plain JAX; segments with
    # fewer than k points would pick cross-segment fillers (not the case here).
    n, m = point.shape[0], queries.shape[0]
    pb = np.zeros((n,), np.int32)
    qb = np.zeros((m,), np.int32)
    for b in range(len(points_row_splits) - 1):
        pb[int(points_row_splits[b]):int(points_row_splits[b + 1])] = b
        qb[int(queries_row_splits[b]):int(queries_row_splits[b + 1])] = b
    pb, qb = jnp.asarray(pb), jnp.asarray(qb)
    d2 = jnp.sum((queries[:, None, :] - point[None, :, :]) ** 2, axis=-1)
    d2 = jnp.where(qb[:, None] == pb[None, :], d2, 1e30)
    _, idx = jax.lax.top_k(-d2, k)                     # nearest first (includes self)
    return idx


# ----------------------------------------------------------------------------
# Host-side BN folding (eval-mode BatchNorm1d with real running stats)
# ----------------------------------------------------------------------------
def fold_bn_into_linear(W, gamma, beta, mean, var, eps=1e-5):
    scale = gamma / jnp.sqrt(var + eps)
    w_fold = (W * scale[None, :]).astype(jnp.float32)
    shift = (beta - mean * scale)[None, :].astype(jnp.float32)
    return w_fold, shift


# ----------------------------------------------------------------------------
# TransitionDown forward (mirrors the PyTorch module, eval mode)
# ----------------------------------------------------------------------------
def transition_down_forward(point, feat, row_splits, w_fold, shift, *,
                            stride, nsample, tile_p=512, compute_dtype="bfloat16"):
    if stride != 1:
        new_row_splits = compute_new_row_splits(row_splits, stride)
        idx_fps = furthest_point_sample(point, row_splits, new_row_splits)
        new_point = point[idx_fps]
        knn_idx = knn_indices(point, new_point, row_splits, new_row_splits, nsample)
        m = int(new_row_splits[-1])
        tp = _choose_tile(m, tile_p)
        out_feat = _grouped_td(point, feat, new_point, knn_idx,
                               w_fold[:3], w_fold[3:], shift,
                               tile_p=tp, compute_dtype=compute_dtype)
        return [new_point, out_feat, new_row_splits]
    tp = _choose_tile(feat.shape[0], tile_p)
    out_feat = _pointwise_td(feat, w_fold, shift, tile_p=tp, compute_dtype=compute_dtype)
    return [point, out_feat, row_splits]


# ----------------------------------------------------------------------------
# References
# ----------------------------------------------------------------------------
def reference_forward(point, feat, row_splits, W, gamma, beta, mean, var, *,
                      stride, nsample, eps=1e-5):
    """Pure f32 reference mirroring the torch forward (eval-mode BN, unfolded params)."""
    scale = gamma / jnp.sqrt(var + eps)
    shift = beta - mean * scale
    if stride != 1:
        new_row_splits = compute_new_row_splits(row_splits, stride)
        idx_fps = furthest_point_sample(point, row_splits, new_row_splits)
        new_point = point[idx_fps]
        idx = knn_indices(point, new_point, row_splits, new_row_splits, nsample)
        g = jnp.concatenate([point[idx] - new_point[:, None, :], feat[idx]], axis=-1)
        y = jnp.einsum('mni,io->mno', g, W)
        y = jnp.maximum(y * scale + shift, 0.0)
        return new_point, jnp.max(y, axis=1), new_row_splits
    y = jnp.maximum((feat @ W) * scale + shift, 0.0)
    return point, y, row_splits


def _q(x, dtype):
    return x.astype(dtype).astype(jnp.float32)


def matched_reference_grouped(point, feat, new_point, idx, wx_fold, wf_fold, shift, dtype):
    """Quantization-matched reference: same bf16 input casts as the kernel, f32 accumulate."""
    p = _q(point, dtype)[idx]                       # (m, ns, 3)
    f = _q(feat, dtype)[idx]                        # (m, ns, c_in)
    q = _q(new_point, dtype)                        # (m, 3)
    wx = _q(wx_fold, dtype)
    wf = _q(wf_fold, dtype)
    y = jnp.einsum('mni,io->mno', p, wx) + jnp.einsum('mni,io->mno', f, wf)
    y = jnp.max(y, axis=1) - q @ wx + shift
    return jnp.maximum(y, 0.0)


def matched_reference_pointwise(feat, w_fold, shift, dtype):
    return jnp.maximum(_q(feat, dtype) @ _q(w_fold, dtype) + shift, 0.0)


# ----------------------------------------------------------------------------
if __name__ == "__main__":
    in_planes, out_planes = 32, 64
    stride, nsample = 4, 16
    n = 1024
    row_splits = np.array([0, 512, 1024], dtype=np.int64)   # batch of 2

    f32 = jnp.float32
    key = jax.random.PRNGKey(0)
    ks = jax.random.split(key, 16)
    point = jax.random.normal(ks[0], (n, 3), f32)
    feat = jax.random.normal(ks[1], (n, in_planes), f32)

    def bn_params(k, c):
        gamma = 1.0 + 0.1 * jax.random.normal(jax.random.fold_in(k, 0), (c,), f32)
        beta = 0.1 * jax.random.normal(jax.random.fold_in(k, 1), (c,), f32)
        mean = 0.1 * jax.random.normal(jax.random.fold_in(k, 2), (c,), f32)
        var = jnp.abs(1.0 + 0.1 * jax.random.normal(jax.random.fold_in(k, 3), (c,), f32))
        return gamma, beta, mean, var

    # ---- stride != 1 branch: Linear(3+in, out, bias=False) + BN(out) + ReLU + MaxPool
    W_g = 0.2 * jax.random.normal(ks[2], (3 + in_planes, out_planes), f32)
    gamma_g, beta_g, mean_g, var_g = bn_params(ks[3], out_planes)
    wf_g, sh_g = fold_bn_into_linear(W_g, gamma_g, beta_g, mean_g, var_g)

    new_point, out_feat, new_rs = transition_down_forward(
        point, feat, row_splits, wf_g, sh_g, stride=stride, nsample=nsample)
    out_feat = jax.block_until_ready(out_feat)

    # Pure f32 reference (loose check: bf16 input quantization on the kernel path).
    ref_point, ref_feat, ref_rs = reference_forward(
        point, feat, row_splits, W_g, gamma_g, beta_g, mean_g, var_g,
        stride=stride, nsample=nsample)

    m = int(new_rs[-1])
    assert out_feat.shape == (m, out_planes)
    assert np.array_equal(np.asarray(new_rs), np.asarray(ref_rs))
    assert np.allclose(np.asarray(new_point), np.asarray(ref_point), atol=1e-6)
    err_loose = float(np.max(np.abs(np.asarray(out_feat) - np.asarray(ref_feat))))
    assert np.allclose(np.asarray(out_feat), np.asarray(ref_feat),
                       rtol=5e-2, atol=5e-2), err_loose

    # Quantization-matched reference (tight check, same glue indices as the kernel path).
    nrs_m = compute_new_row_splits(row_splits, stride)
    np_m = point[furthest_point_sample(point, row_splits, nrs_m)]
    knn_m = knn_indices(point, np_m, row_splits, nrs_m, nsample)
    ref_matched = matched_reference_grouped(
        point, feat, np_m, knn_m, wf_g[:3], wf_g[3:], sh_g, jnp.bfloat16)
    err_tight = float(np.max(np.abs(np.asarray(out_feat) - np.asarray(ref_matched))))
    assert np.allclose(np.asarray(out_feat), np.asarray(ref_matched),
                       rtol=1e-3, atol=1e-3), err_tight

    # ---- stride == 1 branch: Linear(in, out, bias=False) + BN(out) + ReLU
    W_p = 0.2 * jax.random.normal(ks[4], (in_planes, out_planes), f32)
    gamma_p, beta_p, mean_p, var_p = bn_params(ks[5], out_planes)
    wf_p, sh_p = fold_bn_into_linear(W_p, gamma_p, beta_p, mean_p, var_p)

    _, out_feat1, _ = transition_down_forward(
        point, feat, row_splits, wf_p, sh_p, stride=1, nsample=nsample)
    out_feat1 = jax.block_until_ready(out_feat1)

    _, ref_feat1, _ = reference_forward(
        point, feat, row_splits, W_p, gamma_p, beta_p, mean_p, var_p,
        stride=1, nsample=nsample)
    assert out_feat1.shape == (n, out_planes)
    err1_loose = float(np.max(np.abs(np.asarray(out_feat1) - np.asarray(ref_feat1))))
    assert np.allclose(np.asarray(out_feat1), np.asarray(ref_feat1),
                       rtol=5e-2, atol=5e-2), err1_loose

    ref_matched1 = matched_reference_pointwise(feat, wf_p, sh_p, jnp.bfloat16)
    err1_tight = float(np.max(np.abs(np.asarray(out_feat1) - np.asarray(ref_matched1))))
    assert np.allclose(np.asarray(out_feat1), np.asarray(ref_matched1),
                       rtol=1e-3, atol=1e-3), err1_tight

    print("KERNEL_OK")
</pallas_src>

<mosaic_0001>
module attributes {stable_mosaic.version = 11 : i64} {
  func.func @_grouped_kernel(%arg0: i32, %arg1: memref<16x128x3xbf16, #tpu.memory_space<vmem>>, %arg2: memref<16x128x32xbf16, #tpu.memory_space<vmem>>, %arg3: memref<128x3xbf16, #tpu.memory_space<vmem>>, %arg4: memref<3x64xbf16, #tpu.memory_space<vmem>>, %arg5: memref<32x64xbf16, #tpu.memory_space<vmem>>, %arg6: memref<1x64xf32, #tpu.memory_space<vmem>>, %arg7: memref<128x64xf32, #tpu.memory_space<vmem>>) attributes {dimension_semantics = [#tpu.dimension_semantics<parallel>], iteration_bounds = array<i64: 2>, scalar_prefetch = 0 : i64, scratch_operands = 0 : i64, tpu.core_type = #tpu.core_type<tc>, window_params = [{transform_indices = @transform_0, window_bounds = array<i64: 16, 128, 3>}, {transform_indices = @transform_1, window_bounds = array<i64: 16, 128, 32>}, {transform_indices = @transform_2, window_bounds = array<i64: 128, 3>}, {pipeline_mode = #tpu.pipeline_mode<synchronous>, transform_indices = @transform_3, window_bounds = array<i64: 3, 64>}, {pipeline_mode = #tpu.pipeline_mode<synchronous>, transform_indices = @transform_4, window_bounds = array<i64: 32, 64>}, {pipeline_mode = #tpu.pipeline_mode<synchronous>, transform_indices = @transform_5, window_bounds = array<i64: 1, 64>}, {transform_indices = @transform_6, window_bounds = array<i64: 128, 64>}]} {
    %c0 = arith.constant 0 : index
    %c0_0 = arith.constant 0 : index
    %0 = vector.load %arg4[%c0, %c0_0] : memref<3x64xbf16, #tpu.memory_space<vmem>>, vector<3x64xbf16>
    %c0_1 = arith.constant 0 : index
    %c0_2 = arith.constant 0 : index
    %1 = vector.load %arg5[%c0_1, %c0_2] : memref<32x64xbf16, #tpu.memory_space<vmem>>, vector<32x64xbf16>
    %c0_3 = arith.constant 0 : index
    %c0_4 = arith.constant 0 : index
    %2 = vector.load %arg3[%c0_3, %c0_4] : memref<128x3xbf16, #tpu.memory_space<vmem>>, vector<128x3xbf16>
    %cst = arith.constant dense<0.000000e+00> : vector<128x64xf32>
    %3 = tpu.matmul %2, %0, %cst {dimension_numbers = #tpu.dot_dimension_numbers<[1], [0], [0], [1], [0, 0, 1, 1], [], []>} : vector<128x3xbf16>, vector<3x64xbf16>, vector<128x64xf32> -> vector<128x64xf32>
    %c0_5 = arith.constant 0 : index
    %c0_6 = arith.constant 0 : index
    %c0_7 = arith.constant 0 : index
    %4 = vector.load %arg2[%c0_5, %c0_6, %c0_7] : memref<16x128x32xbf16, #tpu.memory_space<vmem>>, vector<1x128x32xbf16>
    %5 = vector.shape_cast %4 : vector<1x128x32xbf16> to vector<128x32xbf16>
    %cst_8 = arith.constant dense<0.000000e+00> : vector<128x64xf32>
    %6 = tpu.matmul %5, %1, %cst_8 {dimension_numbers = #tpu.dot_dimension_numbers<[1], [0], [0], [1], [0, 0, 1, 1], [], []>} : vector<128x32xbf16>, vector<32x64xbf16>, vector<128x64xf32> -> vector<128x64xf32>
    %c0_9 = arith.constant 0 : index
    %c0_10 = arith.constant 0 : index
    %c0_11 = arith.constant 0 : index
    %7 = vector.load %arg1[%c0_9, %c0_10, %c0_11] : memref<16x128x3xbf16, #tpu.memory_space<vmem>>, vector<1x128x3xbf16>
    %8 = vector.shape_cast %7 : vector<1x128x3xbf16> to vector<128x3xbf16>
    %cst_12 = arith.constant dense<0.000000e+00> : vector<128x64xf32>
    %9 = tpu.matmul %8, %0, %cst_12 {dimension_numbers = #tpu.dot_dimension_numbers<[1], [0], [0], [1], [0, 0, 1, 1], [], []>} : vector<128x3xbf16>, vector<3x64xbf16>, vector<128x64xf32> -> vector<128x64xf32>
    %10 = arith.addf %6, %9 : vector<128x64xf32>
    %c1 = arith.constant 1 : index
    %c0_13 = arith.constant 0 : index
    %c0_14 = arith.constant 0 : index
    %11 = vector.load %arg2[%c1, %c0_13, %c0_14] : memref<16x128x32xbf16, #tpu.memory_space<vmem>>, vector<1x128x32xbf16>
    %12 = vector.shape_cast %11 : vector<1x128x32xbf16> to vector<128x32xbf16>
    %cst_15 = arith.constant dense<0.000000e+00> : vector<128x64xf32>
    %13 = tpu.matmul %12, %1, %cst_15 {dimension_numbers = #tpu.dot_dimension_numbers<[1], [0], [0], [1], [0, 0, 1, 1], [], []>} : vector<128x32xbf16>, vector<32x64xbf16>, vector<128x64xf32> -> vector<128x64xf32>
    %c1_16 = arith.constant 1 : index
    %c0_17 = arith.constant 0 : index
    %c0_18 = arith.constant 0 : index
    %14 = vector.load %arg1[%c1_16, %c0_17, %c0_18] : memref<16x128x3xbf16, #tpu.memory_space<vmem>>, vector<1x128x3xbf16>
    %15 = vector.shape_cast %14 : vector<1x128x3xbf16> to vector<128x3xbf16>
    %cst_19 = arith.constant dense<0.000000e+00> : vector<128x64xf32>
    %16 = tpu.matmul %15, %0, %cst_19 {dimension_numbers = #tpu.dot_dimension_numbers<[1], [0], [0], [1], [0, 0, 1, 1], [], []>} : vector<128x3xbf16>, vector<3x64xbf16>, vector<128x64xf32> -> vector<128x64xf32>
    %17 = arith.addf %13, %16 : vector<128x64xf32>
    %18 = arith.maximumf %10, %17 : vector<128x64xf32>
    %c2 = arith.constant 2 : index
    %c0_20 = arith.constant 0 : index
    %c0_21 = arith.constant 0 : index
    %19 = vector.load %arg2[%c2, %c0_20, %c0_21] : memref<16x128x32xbf16, #tpu.memory_space<vmem>>, vector<1x128x32xbf16>
    %20 = vector.shape_cast %19 : vector<1x128x32xbf16> to vector<128x32xbf16>
    %cst_22 = arith.constant dense<0.000000e+00> : vector<128x64xf32>
    %21 = tpu.matmul %20, %1, %cst_22 {dimension_numbers = #tpu.dot_dimension_numbers<[1], [0], [0], [1], [0, 0, 1, 1], [], []>} : vector<128x32xbf16>, vector<32x64xbf16>, vector<128x64xf32> -> vector<128x64xf32>
    %c2_23 = arith.constant 2 : index
    %c0_24 = arith.constant 0 : index
    %c0_25 = arith.constant 0 : index
    %22 = vector.load %arg1[%c2_23, %c0_24, %c0_25] : memref<16x128x3xbf16, #tpu.memory_space<vmem>>, vector<1x128x3xbf16>
    %23 = vector.shape_cast %22 : vector<1x128x3xbf16> to vector<128x3xbf16>
    %cst_26 = arith.constant dense<0.000000e+00> : vector<128x64xf32>
    %24 = tpu.matmul %23, %0, %cst_26 {dimension_numbers = #tpu.dot_dimension_numbers<[1], [0], [0], [1], [0, 0, 1, 1], [], []>} : vector<128x3xbf16>, vector<3x64xbf16>, vector<128x64xf32> -> vector<128x64xf32>
    %25 = arith.addf %21, %24 : vector<128x64xf32>
    %26 = arith.maximumf %18, %25 : vector<128x64xf32>
    %c3 = arith.constant 3 : index
    %c0_27 = arith.constant 0 : index
    %c0_28 = arith.constant 0 : index
    %27 = vector.load %arg2[%c3, %c0_27, %c0_28] : memref<16x128x32xbf16, #tpu.memory_space<vmem>>, vector<1x128x32xbf16>
    %28 = vector.shape_cast %27 : vector<1x128x32xbf16> to vector<128x32xbf16>
    %cst_29 = arith.constant dense<0.000000e+00> : vector<128x64xf32>
    %29 = tpu.matmul %28, %1, %cst_29 {dimension_numbers = #tpu.dot_dimension_numbers<[1], [0], [0], [1], [0, 0, 1, 1], [], []>} : vector<128x32xbf16>, vector<32x64xbf16>, vector<128x64xf32> -> vector<128x64xf32>
    %c3_30 = arith.constant 3 : index
    %c0_31 = arith.constant 0 : index
    %c0_32 = arith.constant 0 : index
    %30 = vector.load %arg1[%c3_30, %c0_31, %c0_32] : memref<16x128x3xbf16, #tpu.memory_space<vmem>>, vector<1x128x3xbf16>
    %31 = vector.shape_cast %30 : vector<1x128x3xbf16> to vector<128x3xbf16>
    %cst_33 = arith.constant dense<0.000000e+00> : vector<128x64xf32>
    %32 = tpu.matmul %31, %0, %cst_33 {dimension_numbers = #tpu.dot_dimension_numbers<[1], [0], [0], [1], [0, 0, 1, 1], [], []>} : vector<128x3xbf16>, vector<3x64xbf16>, vector<128x64xf32> -> vector<128x64xf32>
    %33 = arith.addf %29, %32 : vector<128x64xf32>
    %34 = arith.maximumf %26, %33 : vector<128x64xf32>
    %c4 = arith.constant 4 : index
    %c0_34 = arith.constant 0 : index
    %c0_35 = arith.constant 0 : index
    %35 = vector.load %arg2[%c4, %c0_34, %c0_35] : memref<16x128x32xbf16, #tpu.memory_space<vmem>>, vector<1x128x32xbf16>
    %36 = vector.shape_cast %35 : vector<1x128x32xbf16> to vector<128x32xbf16>
    %cst_36 = arith.constant dense<0.000000e+00> : vector<128x64xf32>
    %37 = tpu.matmul %36, %1, %cst_36 {dimension_numbers = #tpu.dot_dimension_numbers<[1], [0], [0], [1], [0, 0, 1, 1], [], []>} : vector<128x32xbf16>, vector<32x64xbf16>, vector<128x64xf32> -> vector<128x64xf32>
    %c4_37 = arith.constant 4 : index
    %c0_38 = arith.constant 0 : index
    %c0_39 = arith.constant 0 : index
    %38 = vector.load %arg1[%c4_37, %c0_38, %c0_39] : memref<16x128x3xbf16, #tpu.memory_space<vmem>>, vector<1x128x3xbf16>
    %39 = vector.shape_cast %38 : vector<1x128x3xbf16> to vector<128x3xbf16>
    %cst_40 = arith.constant dense<0.000000e+00> : vector<128x64xf32>
    %40 = tpu.matmul %39, %0, %cst_40 {dimension_numbers = #tpu.dot_dimension_numbers<[1], [0], [0], [1], [0, 0, 1, 1], [], []>} : vector<128x3xbf16>, vector<3x64xbf16>, vector<128x64xf32> -> vector<128x64xf32>
    %41 = arith.addf %37, %40 : vector<128x64xf32>
    %42 = arith.maximumf %34, %41 : vector<128x64xf32>
    %c5 = arith.constant 5 : index
    %c0_41 = arith.constant 0 : index
    %c0_42 = arith.constant 0 : index
    %43 = vector.load %arg2[%c5, %c0_41, %c0_42] : memref<16x128x32xbf16, #tpu.memory_space<vmem>>, vector<1x128x32xbf16>
    %44 = vector.shape_cast %43 : vector<1x128x32xbf16> to vector<128x32xbf16>
    %cst_43 = arith.constant dense<0.000000e+00> : vector<128x64xf32>
    %45 = tpu.matmul %44, %1, %cst_43 {dimension_numbers = #tpu.dot_dimension_numbers<[1], [0], [0], [1], [0, 0, 1, 1], [], []>} : vector<128x32xbf16>, vector<32x64xbf16>, vector<128x64xf32> -> vector<128x64xf32>
    %c5_44 = arith.constant 5 : index
    %c0_45 = arith.constant 0 : index
    %c0_46 = arith.constant 0 : index
    %46 = vector.load %arg1[%c5_44, %c0_45, %c0_46] : memref<16x128x3xbf16, #tpu.memory_space<vmem>>, vector<1x128x3xbf16>
    %47 = vector.shape_cast %46 : vector<1x128x3xbf16> to vector<128x3xbf16>
    %cst_47 = arith.constant dense<0.000000e+00> : vector<128x64xf32>
    %48 = tpu.matmul %47, %0, %cst_47 {dimension_numbers = #tpu.dot_dimension_numbers<[1], [0], [0], [1], [0, 0, 1, 1], [], []>} : vector<128x3xbf16>, vector<3x64xbf16>, vector<128x64xf32> -> vector<128x64xf32>
    %49 = arith.addf %45, %48 : vector<128x64xf32>
    %50 = arith.maximumf %42, %49 : vector<128x64xf32>
    %c6 = arith.constant 6 : index
    %c0_48 = arith.constant 0 : index
    %c0_49 = arith.constant 0 : index
    %51 = vector.load %arg2[%c6, %c0_48, %c0_49] : memref<16x128x32xbf16, #tpu.memory_space<vmem>>, vector<1x128x32xbf16>
    %52 = vector.shape_cast %51 : vector<1x128x32xbf16> to vector<128x32xbf16>
    %cst_50 = arith.constant dense<0.000000e+00> : vector<128x64xf32>
    %53 = tpu.matmul %52, %1, %cst_50 {dimension_numbers = #tpu.dot_dimension_numbers<[1], [0], [0], [1], [0, 0, 1, 1], [], []>} : vector<128x32xbf16>, vector<32x64xbf16>, vector<128x64xf32> -> vector<128x64xf32>
    %c6_51 = arith.constant 6 : index
    %c0_52 = arith.constant 0 : index
    %c0_53 = arith.constant 0 : index
    %54 = vector.load %arg1[%c6_51, %c0_52, %c0_53] : memref<16x128x3xbf16, #tpu.memory_space<vmem>>, vector<1x128x3xbf16>
    %55 = vector.shape_cast %54 : vector<1x128x3xbf16> to vector<128x3xbf16>
    %cst_54 = arith.constant dense<0.000000e+00> : vector<128x64xf32>
    %56 = tpu.matmul %55, %0, %cst_54 {dimension_numbers = #tpu.dot_dimension_numbers<[1], [0], [0], [1], [0, 0, 1, 1], [], []>} : vector<128x3xbf16>, vector<3x64xbf16>, vector<128x64xf32> -> vector<128x64xf32>
    %57 = arith.addf %53, %56 : vector<128x64xf32>
    %58 = arith.maximumf %50, %57 : vector<128x64xf32>
    %c7 = arith.constant 7 : index
    %c0_55 = arith.constant 0 : index
    %c0_56 = arith.constant 0 : index
    %59 = vector.load %arg2[%c7, %c0_55, %c0_56] : memref<16x128x32xbf16, #tpu.memory_space<vmem>>, vector<1x128x32xbf16>
    %60 = vector.shape_cast %59 : vector<1x128x32xbf16> to vector<128x32xbf16>
    %cst_57 = arith.constant dense<0.000000e+00> : vector<128x64xf32>
    %61 = tpu.matmul %60, %1, %cst_57 {dimension_numbers = #tpu.dot_dimension_numbers<[1], [0], [0], [1], [0, 0, 1, 1], [], []>} : vector<128x32xbf16>, vector<32x64xbf16>, vector<128x64xf32> -> vector<128x64xf32>
    %c7_58 = arith.constant 7 : index
    %c0_59 = arith.constant 0 : index
    %c0_60 = arith.constant 0 : index
    %62 = vector.load %arg1[%c7_58, %c0_59, %c0_60] : memref<16x128x3xbf16, #tpu.memory_space<vmem>>, vector<1x128x3xbf16>
    %63 = vector.shape_cast %62 : vector<1x128x3xbf16> to vector<128x3xbf16>
    %cst_61 = arith.constant dense<0.000000e+00> : vector<128x64xf32>
    %64 = tpu.matmul %63, %0, %cst_61 {dimension_numbers = #tpu.dot_dimension_numbers<[1], [0], [0], [1], [0, 0, 1, 1], [], []>} : vector<128x3xbf16>, vector<3x64xbf16>, vector<128x64xf32> -> vector<128x64xf32>
    %65 = arith.addf %61, %64 : vector<128x64xf32>
    %66 = arith.maximumf %58, %65 : vector<128x64xf32>
    %c8 = arith.constant 8 : index
    %c0_62 = arith.constant 0 : index
    %c0_63 = arith.constant 0 : index
    %67 = vector.load %arg2[%c8, %c0_62, %c0_63] : memref<16x128x32xbf16, #tpu.memory_space<vmem>>, vector<1x128x32xbf16>
    %68 = vector.shape_cast %67 : vector<1x128x32xbf16> to vector<128x32xbf16>
    %cst_64 = arith.constant dense<0.000000e+00> : vector<128x64xf32>
    %69 = tpu.matmul %68, %1, %cst_64 {dimension_numbers = #tpu.dot_dimension_numbers<[1], [0], [0], [1], [0, 0, 1, 1], [], []>} : vector<128x32xbf16>, vector<32x64xbf16>, vector<128x64xf32> -> vector<128x64xf32>
    %c8_65 = arith.constant 8 : index
    %c0_66 = arith.constant 0 : index
    %c0_67 = arith.constant 0 : index
    %70 = vector.load %arg1[%c8_65, %c0_66, %c0_67] : memref<16x128x3xbf16, #tpu.memory_space<vmem>>, vector<1x128x3xbf16>
    %71 = vector.shape_cast %70 : vector<1x128x3xbf16> to vector<128x3xbf16>
    %cst_68 = arith.constant dense<0.000000e+00> : vector<128x64xf32>
    %72 = tpu.matmul %71, %0, %cst_68 {dimension_numbers = #tpu.dot_dimension_numbers<[1], [0], [0], [1], [0, 0, 1, 1], [], []>} : vector<128x3xbf16>, vector<3x64xbf16>, vector<128x64xf32> -> vector<128x64xf32>
    %73 = arith.addf %69, %72 : vector<128x64xf32>
    %74 = arith.maximumf %66, %73 : vector<128x64xf32>
    %c9 = arith.constant 9 : index
    %c0_69 = arith.constant 0 : index
    %c0_70 = arith.constant 0 : index
    %75 = vector.load %arg2[%c9, %c0_69, %c0_70] : memref<16x128x32xbf16, #tpu.memory_space<vmem>>, vector<1x128x32xbf16>
    %76 = vector.shape_cast %75 : vector<1x128x32xbf16> to vector<128x32xbf16>
    %cst_71 = arith.constant dense<0.000000e+00> : vector<128x64xf32>
    %77 = tpu.matmul %76, %1, %cst_71 {dimension_numbers = #tpu.dot_dimension_numbers<[1], [0], [0], [1], [0, 0, 1, 1], [], []>} : vector<128x32xbf16>, vector<32x64xbf16>, vector<128x64xf32> -> vector<128x64xf32>
    %c9_72 = arith.constant 9 : index
    %c0_73 = arith.constant 0 : index
    %c0_74 = arith.constant 0 : index
    %78 = vector.load %arg1[%c9_72, %c0_73, %c0_74] : memref<16x128x3xbf16, #tpu.memory_space<vmem>>, vector<1x128x3xbf16>
    %79 = vector.shape_cast %78 : vector<1x128x3xbf16> to vector<128x3xbf16>
    %cst_75 = arith.constant dense<0.000000e+00> : vector<128x64xf32>
    %80 = tpu.matmul %79, %0, %cst_75 {dimension_numbers = #tpu.dot_dimension_numbers<[1], [0], [0], [1], [0, 0, 1, 1], [], []>} : vector<128x3xbf16>, vector<3x64xbf16>, vector<128x64xf32> -> vector<128x64xf32>
    %81 = arith.addf %77, %80 : vector<128x64xf32>
    %82 = arith.maximumf %74, %81 : vector<128x64xf32>
    %c10 = arith.constant 10 : index
    %c0_76 = arith.constant 0 : index
    %c0_77 = arith.constant 0 : index
    %83 = vector.load %arg2[%c10, %c0_76, %c0_77] : memref<16x128x32xbf16, #tpu.memory_space<vmem>>, vector<1x128x32xbf16>
    %84 = vector.shape_cast %83 : vector<1x128x32xbf16> to vector<128x32xbf16>
    %cst_78 = arith.constant dense<0.000000e+00> : vector<128x64xf32>
    %85 = tpu.matmul %84, %1, %cst_78 {dimension_numbers = #tpu.dot_dimension_numbers<[1], [0], [0], [1], [0, 0, 1, 1], [], []>} : vector<128x32xbf16>, vector<32x64xbf16>, vector<128x64xf32> -> vector<128x64xf32>
    %c10_79 = arith.constant 10 : index
    %c0_80 = arith.constant 0 : index
    %c0_81 = arith.constant 0 : index
    %86 = vector.load %arg1[%c10_79, %c0_80, %c0_81] : memref<16x128x3xbf16, #tpu.memory_space<vmem>>, vector<1x128x3xbf16>
    %87 = vector.shape_cast %86 : vector<1x128x3xbf16> to vector<128x3xbf16>
    %cst_82 = arith.constant dense<0.000000e+00> : vector<128x64xf32>
    %88 = tpu.matmul %87, %0, %cst_82 {dimension_numbers = #tpu.dot_dimension_numbers<[1], [0], [0], [1], [0, 0, 1, 1], [], []>} : vector<128x3xbf16>, vector<3x64xbf16>, vector<128x64xf32> -> vector<128x64xf32>
    %89 = arith.addf %85, %88 : vector<128x64xf32>
    %90 = arith.maximumf %82, %89 : vector<128x64xf32>
    %c11 = arith.constant 11 : index
    %c0_83 = arith.constant 0 : index
    %c0_84 = arith.constant 0 : index
    %91 = vector.load %arg2[%c11, %c0_83, %c0_84] : memref<16x128x32xbf16, #tpu.memory_space<vmem>>, vector<1x128x32xbf16>
    %92 = vector.shape_cast %91 : vector<1x128x32xbf16> to vector<128x32xbf16>
    %cst_85 = arith.constant dense<0.000000e+00> : vector<128x64xf32>
    %93 = tpu.matmul %92, %1, %cst_85 {dimension_numbers = #tpu.dot_dimension_numbers<[1], [0], [0], [1], [0, 0, 1, 1], [], []>} : vector<128x32xbf16>, vector<32x64xbf16>, vector<128x64xf32> -> vector<128x64xf32>
    %c11_86 = arith.constant 11 : index
    %c0_87 = arith.constant 0 : index
    %c0_88 = arith.constant 0 : index
    %94 = vector.load %arg1[%c11_86, %c0_87, %c0_88] : memref<16x128x3xbf16, #tpu.memory_space<vmem>>, vector<1x128x3xbf16>
    %95 = vector.shape_cast %94 : vector<1x128x3xbf16> to vector<128x3xbf16>
    %cst_89 = arith.constant dense<0.000000e+00> : vector<128x64xf32>
    %96 = tpu.matmul %95, %0, %cst_89 {dimension_numbers = #tpu.dot_dimension_numbers<[1], [0], [0], [1], [0, 0, 1, 1], [], []>} : vector<128x3xbf16>, vector<3x64xbf16>, vector<128x64xf32> -> vector<128x64xf32>
    %97 = arith.addf %93, %96 : vector<128x64xf32>
    %98 = arith.maximumf %90, %97 : vector<128x64xf32>
    %c12 = arith.constant 12 : index
    %c0_90 = arith.constant 0 : index
    %c0_91 = arith.constant 0 : index
    %99 = vector.load %arg2[%c12, %c0_90, %c0_91] : memref<16x128x32xbf16, #tpu.memory_space<vmem>>, vector<1x128x32xbf16>
    %100 = vector.shape_cast %99 : vector<1x128x32xbf16> to vector<128x32xbf16>
    %cst_92 = arith.constant dense<0.000000e+00> : vector<128x64xf32>
    %101 = tpu.matmul %100, %1, %cst_92 {dimension_numbers = #tpu.dot_dimension_numbers<[1], [0], [0], [1], [0, 0, 1, 1], [], []>} : vector<128x32xbf16>, vector<32x64xbf16>, vector<128x64xf32> -> vector<128x64xf32>
    %c12_93 = arith.constant 12 : index
    %c0_94 = arith.constant 0 : index
    %c0_95 = arith.constant 0 : index
    %102 = vector.load %arg1[%c12_93, %c0_94, %c0_95] : memref<16x128x3xbf16, #tpu.memory_space<vmem>>, vector<1x128x3xbf16>
    %103 = vector.shape_cast %102 : vector<1x128x3xbf16> to vector<128x3xbf16>
    %cst_96 = arith.constant dense<0.000000e+00> : vector<128x64xf32>
    %104 = tpu.matmul %103, %0, %cst_96 {dimension_numbers = #tpu.dot_dimension_numbers<[1], [0], [0], [1], [0, 0, 1, 1], [], []>} : vector<128x3xbf16>, vector<3x64xbf16>, vector<128x64xf32> -> vector<128x64xf32>
    %105 = arith.addf %101, %104 : vector<128x64xf32>
    %106 = arith.maximumf %98, %105 : vector<128x64xf32>
    %c13 = arith.constant 13 : index
    %c0_97 = arith.constant 0 : index
    %c0_98 = arith.constant 0 : index
    %107 = vector.load %arg2[%c13, %c0_97, %c0_98] : memref<16x128x32xbf16, #tpu.memory_space<vmem>>, vector<1x128x32xbf16>
    %108 = vector.shape_cast %107 : vector<1x128x32xbf16> to vector<128x32xbf16>
    %cst_99 = arith.constant dense<0.000000e+00> : vector<128x64xf32>
    %109 = tpu.matmul %108, %1, %cst_99 {dimension_numbers = #tpu.dot_dimension_numbers<[1], [0], [0], [1], [0, 0, 1, 1], [], []>} : vector<128x32xbf16>, vector<32x64xbf16>, vector<128x64xf32> -> vector<128x64xf32>
    %c13_100 = arith.constant 13 : index
    %c0_101 = arith.constant 0 : index
    %c0_102 = arith.constant 0 : index
    %110 = vector.load %arg1[%c13_100, %c0_101, %c0_102] : memref<16x128x3xbf16, #tpu.memory_space<vmem>>, vector<1x128x3xbf16>
    %111 = vector.shape_cast %110 : vector<1x128x3xbf16> to vector<128x3xbf16>
    %cst_103 = arith.constant dense<0.000000e+00> : vector<128x64xf32>
    %112 = tpu.matmul %111, %0, %cst_103 {dimension_numbers = #tpu.dot_dimension_numbers<[1], [0], [0], [1], [0, 0, 1, 1], [], []>} : vector<128x3xbf16>, vector<3x64xbf16>, vector<128x64xf32> -> vector<128x64xf32>
    %113 = arith.addf %109, %112 : vector<128x64xf32>
    %114 = arith.maximumf %106, %113 : vector<128x64xf32>
    %c14 = arith.constant 14 : index
    %c0_104 = arith.constant 0 : index
    %c0_105 = arith.constant 0 : index
    %115 = vector.load %arg2[%c14, %c0_104, %c0_105] : memref<16x128x32xbf16, #tpu.memory_space<vmem>>, vector<1x128x32xbf16>
    %116 = vector.shape_cast %115 : vector<1x128x32xbf16> to vector<128x32xbf16>
    %cst_106 = arith.constant dense<0.000000e+00> : vector<128x64xf32>
    %117 = tpu.matmul %116, %1, %cst_106 {dimension_numbers = #tpu.dot_dimension_numbers<[1], [0], [0], [1], [0, 0, 1, 1], [], []>} : vector<128x32xbf16>, vector<32x64xbf16>, vector<128x64xf32> -> vector<128x64xf32>
    %c14_107 = arith.constant 14 : index
    %c0_108 = arith.constant 0 : index
    %c0_109 = arith.constant 0 : index
    %118 = vector.load %arg1[%c14_107, %c0_108, %c0_109] : memref<16x128x3xbf16, #tpu.memory_space<vmem>>, vector<1x128x3xbf16>
    %119 = vector.shape_cast %118 : vector<1x128x3xbf16> to vector<128x3xbf16>
    %cst_110 = arith.constant dense<0.000000e+00> : vector<128x64xf32>
    %120 = tpu.matmul %119, %0, %cst_110 {dimension_numbers = #tpu.dot_dimension_numbers<[1], [0], [0], [1], [0, 0, 1, 1], [], []>} : vector<128x3xbf16>, vector<3x64xbf16>, vector<128x64xf32> -> vector<128x64xf32>
    %121 = arith.addf %117, %120 : vector<128x64xf32>
    %122 = arith.maximumf %114, %121 : vector<128x64xf32>
    %c15 = arith.constant 15 : index
    %c0_111 = arith.constant 0 : index
    %c0_112 = arith.constant 0 : index
    %123 = vector.load %arg2[%c15, %c0_111, %c0_112] : memref<16x128x32xbf16, #tpu.memory_space<vmem>>, vector<1x128x32xbf16>
    %124 = vector.shape_cast %123 : vector<1x128x32xbf16> to vector<128x32xbf16>
    %cst_113 = arith.constant dense<0.000000e+00> : vector<128x64xf32>
    %125 = tpu.matmul %124, %1, %cst_113 {dimension_numbers = #tpu.dot_dimension_numbers<[1], [0], [0], [1], [0, 0, 1, 1], [], []>} : vector<128x32xbf16>, vector<32x64xbf16>, vector<128x64xf32> -> vector<128x64xf32>
    %c15_114 = arith.constant 15 : index
    %c0_115 = arith.constant 0 : index
    %c0_116 = arith.constant 0 : index
    %126 = vector.load %arg1[%c15_114, %c0_115, %c0_116] : memref<16x128x3xbf16, #tpu.memory_space<vmem>>, vector<1x128x3xbf16>
    %127 = vector.shape_cast %126 : vector<1x128x3xbf16> to vector<128x3xbf16>
    %cst_117 = arith.constant dense<0.000000e+00> : vector<128x64xf32>
    %128 = tpu.matmul %127, %0, %cst_117 {dimension_numbers = #tpu.dot_dimension_numbers<[1], [0], [0], [1], [0, 0, 1, 1], [], []>} : vector<128x3xbf16>, vector<3x64xbf16>, vector<128x64xf32> -> vector<128x64xf32>
    %129 = arith.addf %125, %128 : vector<128x64xf32>
    %130 = arith.maximumf %122, %129 : vector<128x64xf32>
    %131 = arith.subf %130, %3 : vector<128x64xf32>
    %c0_118 = arith.constant 0 : index
    %c0_119 = arith.constant 0 : index
    %132 = vector.load %arg6[%c0_118, %c0_119] : memref<1x64xf32, #tpu.memory_space<vmem>>, vector<1x64xf32>
    %133 = vector.broadcast %132 : vector<1x64xf32> to vector<128x64xf32>
    %134 = arith.addf %131, %133 : vector<128x64xf32>
    %cst_120 = arith.constant 0.000000e+00 : f32
    %135 = vector.broadcast %cst_120 : f32 to vector<128x64xf32>
    %136 = arith.maximumf %134, %135 : vector<128x64xf32>
    %c0_121 = arith.constant 0 : index
    %c0_122 = arith.constant 0 : index
    %137 = vector.load %arg7[%c0_121, %c0_122] : memref<128x64xf32, #tpu.memory_space<vmem>>, vector<128x64xf32>
    tpu.vector_store %arg7[%c0_121, %c0_122], %136 {strides = array<i32>} : memref<128x64xf32, #tpu.memory_space<vmem>>, vector<128x64xf32>,
    return
  }
  func.func @transform_0(%arg0: i32) -> (i32, i32, i32) {
    %c0_i32 = arith.constant 0 : i32
    %c0_i32_0 = arith.constant 0 : i32
    %c0_i32_1 = arith.constant 0 : i32
    return %c0_i32, %arg0, %c0_i32_0 : i32, i32, i32
  }
  func.func @transform_1(%arg0: i32) -> (i32, i32, i32) {
    %c0_i32 = arith.constant 0 : i32
    %c0_i32_0 = arith.constant 0 : i32
    %c0_i32_1 = arith.constant 0 : i32
    return %c0_i32, %arg0, %c0_i32_0 : i32, i32, i32
  }
  func.func @transform_2(%arg0: i32) -> (i32, i32) {
    %c0_i32 = arith.constant 0 : i32
    %c0_i32_0 = arith.constant 0 : i32
    return %arg0, %c0_i32 : i32, i32
  }
  func.func @transform_3(%arg0: i32) -> (i32, i32) {
    %c0_i32 = arith.constant 0 : i32
    %c0_i32_0 = arith.constant 0 : i32
    %c0_i32_1 = arith.constant 0 : i32
    return %c0_i32, %c0_i32_0 : i32, i32
  }
  func.func @transform_4(%arg0: i32) -> (i32, i32) {
    %c0_i32 = arith.constant 0 : i32
    %c0_i32_0 = arith.constant 0 : i32
    %c0_i32_1 = arith.constant 0 : i32
    return %c0_i32, %c0_i32_0 : i32, i32
  }
  func.func @transform_5(%arg0: i32) -> (i32, i32) {
    %c0_i32 = arith.constant 0 : i32
    %c0_i32_0 = arith.constant 0 : i32
    %c0_i32_1 = arith.constant 0 : i32
    return %c0_i32, %c0_i32_0 : i32, i32
  }
  func.func @transform_6(%arg0: i32) -> (i32, i32) {
    %c0_i32 = arith.constant 0 : i32
    %c0_i32_0 = arith.constant 0 : i32
    return %arg0, %c0_i32 : i32, i32
  }
}

</mosaic_0001>

<bundles_post_ra>
// kernel: _grouped_td.1
= control target key start
LH: loop header
LB: loop body
LE: loop exit
PB: predicated region body
PF: predicated region fallthrough
CT: control target
= control target key end

     0   :  { %s11307_s21 = smov 0   ;;  %s11309_s22 = smov 0   ;;  %s13562_s0 = inlined_call_operand.vmem [shape: bf16[16,256,3], index: 0, kind: input, shape index: {}]   ;;  %s13563_s1 = inlined_call_operand.vmem [shape: bf16[16,256,32], index: 1, kind: input, shape index: {}]   ;;  %s13564_s2 = inlined_call_operand.vmem [shape: bf16[256,3], index: 2, kind: input, shape index: {}]   ;;  %s13565_s3 = inlined_call_operand.vmem [shape: bf16[3,64], index: 3, kind: input, shape index: {}]   ;;  %s13566_s4 = inlined_call_operand.vmem [shape: bf16[32,64], index: 4, kind: input, shape index: {}]   ;;  %s13567_s5 = inlined_call_operand.vmem [shape: f32[1,64], index: 5, kind: input, shape index: {}]   ;;  %s13568_s6 = inlined_call_operand.vmem [shape: f32[256,64], index: 6, kind: output, shape index: {}]  }
   0x1   :  { %s11311_s23 = smov 0  }
   0x2 LB: > { %s8723_s24 = sadd.s32 4294967295, %s11269_s23   ;;  %s11324_s25 = sadd.s32 1, %s11269_s23   ;;  %s11269_s23 = sphi %s11311_s23, %s13639_s23   ;;  %s11265_s22 = sphi %s11309_s22, %s13638_s22   ;;  %s11261_s21 = sphi %s11307_s21, %s13637_s21  }
   0x3   : > { %s20_s26 = ssub.s32 %s11269_s23, %s11324_s25  ;;  %s23_s27 = sadd.s32 1, %s11265_s22 }
   0x4   : > { %p21_p0 = scmp.eq.s32.totalorder %s20_s26, 0  ;;  %p30_p1 = scmp.ne.s32.totalorder %s11265_s22, %s11261_s21 }
   0x5   : > { %p31_p2 = scmp.eq.s32.totalorder %s11269_s23, 0  ;;  %p8726_p4 = scmp.ge.s32.totalorder %s11269_s23, 2 }
   0x6   : > { %s11333_s28 = scalar_select %p21_p0, %s11265_s22, %s23_s27  }
   0x7   : > { %p11335_p3 = por %p31_p2, %p30_p1  ;;  %206 = sbr.rel (%p8726_p4) target bundleno = 150 (0x96), region = 28 }
   0xe   : > { %209 = sbr.rel (!%p11335_p3) target bundleno = 82 (0x52), region = 32  ;;  %s211_s30 = sand.u32 (%p11335_p3), 1, %s11265_s22  }
   0xf   : > { %s9753_s7 = sshll.u32 (%p11335_p3), %s11269_s23, 6  ;;  %s8727_s8 = sshll.u32 (%p11335_p3), %s211_s30, 10 }
  0x10   : > { %s11347_s11 = scalar_lea.vmem (%p11335_p3), %s13562_s0, %s9753_s7  ;;  %s11352_s12 = scalar_lea.vmem (%p11335_p3), [#allocation2], %s8727_s8 }
  0x11   : > { %v232_v0 = vld [vmem:[%s11347_s11] sm:$0xff] (%p11335_p3)   ;;  %v236_v1 = vld [vmem:[%s11347_s11 + $0x8] sm:$0xff] (%p11335_p3)   ;;  %v240_v2 = vld [vmem:[%s11347_s11 + $0x10] sm:$0xff] (%p11335_p3)  }
  0x12   : > { %233 = vst [vmem:[%s11352_s12] sm:$0xff] (%p11335_p3), %v232_v0   ;;  %237 = vst [vmem:[%s11352_s12 + $0x8] sm:$0xff] (%p11335_p3), %v236_v1   ;;  %v244_v3 = vld [vmem:[%s11347_s11 + $0x18] sm:$0xff] (%p11335_p3)   ;;  %v248_v4 = vld [vmem:[%s11347_s11 + $0x20] sm:$0xff] (%p11335_p3)  }
  0x13   : > { %241 = vst [vmem:[%s11352_s12 + $0x10] sm:$0xff] (%p11335_p3), %v240_v2   ;;  %v252_v5 = vld [vmem:[%s11347_s11 + $0x28] sm:$0xff] (%p11335_p3)   ;;  %245 = vst [vmem:[%s11352_s12 + $0x18] sm:$0xff] (%p11335_p3), %v244_v3   ;;  %v256_v6 = vld [vmem:[%s11347_s11 + $0x30] sm:$0xff] (%p11335_p3)  }
  0x14   : > { %249 = vst [vmem:[%s11352_s12 + $0x20] sm:$0xff] (%p11335_p3), %v248_v4   ;;  %253 = vst [vmem:[%s11352_s12 + $0x28] sm:$0xff] (%p11335_p3), %v252_v5   ;;  %v260_v7 = vld [vmem:[%s11347_s11 + $0x38] sm:$0xff] (%p11335_p3)   ;;  %v264_v8 = vld [vmem:[%s11347_s11 + $0x80] sm:$0xff] (%p11335_p3)  }
  0x15   : > { %257 = vst [vmem:[%s11352_s12 + $0x30] sm:$0xff] %v256_v6   ;;  %261 = vst [vmem:[%s11352_s12 + $0x38] sm:$0xff] %v260_v7   ;;  %v268_v9 = vld [vmem:[%s11347_s11 + $0x88] sm:$0xff]   ;;  %v272_v10 = vld [vmem:[%s11347_s11 + $0x90] sm:$0xff]  }
  0x16   : > { %265 = vst [vmem:[%s11352_s12 + $0x40] sm:$0xff] %v264_v8   ;;  %v276_v11 = vld [vmem:[%s11347_s11 + $0x98] sm:$0xff]   ;;  %269 = vst [vmem:[%s11352_s12 + $0x48] sm:$0xff] %v268_v9   ;;  %v280_v12 = vld [vmem:[%s11347_s11 + $0xa0] sm:$0xff]  }
  0x17   : > { %273 = vst [vmem:[%s11352_s12 + $0x50] sm:$0xff] %v272_v10   ;;  %277 = vst [vmem:[%s11352_s12 + $0x58] sm:$0xff] %v276_v11   ;;  %v284_v13 = vld [vmem:[%s11347_s11 + $0xa8] sm:$0xff]   ;;  %v288_v14 = vld [vmem:[%s11347_s11 + $0xb0] sm:$0xff]  }
  0x18   : > { %281 = vst [vmem:[%s11352_s12 + $0x60] sm:$0xff] %v280_v12   ;;  %285 = vst [vmem:[%s11352_s12 + $0x68] sm:$0xff] %v284_v13   ;;  %v292_v15 = vld [vmem:[%s11347_s11 + $0xb8] sm:$0xff]   ;;  %v296_v16 = vld [vmem:[%s11347_s11 + $0x100] sm:$0xff]  }
  0x19   : > { %289 = vst [vmem:[%s11352_s12 + $0x70] sm:$0xff] %v288_v14   ;;  %v300_v17 = vld [vmem:[%s11347_s11 + $0x108] sm:$0xff]   ;;  %293 = vst [vmem:[%s11352_s12 + $0x78] sm:$0xff] %v292_v15   ;;  %v304_v18 = vld [vmem:[%s11347_s11 + $0x110] sm:$0xff]  }
  0x1a   : > { %297 = vst [vmem:[%s11352_s12 + $0x80] sm:$0xff] %v296_v16   ;;  %301 = vst [vmem:[%s11352_s12 + $0x88] sm:$0xff] %v300_v17   ;;  %v308_v19 = vld [vmem:[%s11347_s11 + $0x118] sm:$0xff]   ;;  %v312_v20 = vld [vmem:[%s11347_s11 + $0x120] sm:$0xff]  }
  0x1b   : > { %305 = vst [vmem:[%s11352_s12 + $0x90] sm:$0xff] %v304_v18   ;;  %309 = vst [vmem:[%s11352_s12 + $0x98] sm:$0xff] %v308_v19   ;;  %v316_v21 = vld [vmem:[%s11347_s11 + $0x128] sm:$0xff]   ;;  %v320_v22 = vld [vmem:[%s11347_s11 + $0x130] sm:$0xff]  }
  0x1c   : > { %313 = vst [vmem:[%s11352_s12 + $0xa0] sm:$0xff] %v312_v20   ;;  %v324_v23 = vld [vmem:[%s11347_s11 + $0x138] sm:$0xff]   ;;  %317 = vst [vmem:[%s11352_s12 + $0xa8] sm:$0xff] %v316_v21   ;;  %v328_v24 = vld [vmem:[%s11347_s11 + $0x180] sm:$0xff]  }
  0x1d   : > { %321 = vst [vmem:[%s11352_s12 + $0xb0] sm:$0xff] %v320_v22   ;;  %325 = vst [vmem:[%s11352_s12 + $0xb8] sm:$0xff] %v324_v23   ;;  %v332_v25 = vld [vmem:[%s11347_s11 + $0x188] sm:$0xff]   ;;  %v336_v26 = vld [vmem:[%s11347_s11 + $0x190] sm:$0xff]  }
  0x1e   : > { %329 = vst [vmem:[%s11352_s12 + $0xc0] sm:$0xff] %v328_v24   ;;  %333 = vst [vmem:[%s11352_s12 + $0xc8] sm:$0xff] %v332_v25   ;;  %v340_v27 = vld [vmem:[%s11347_s11 + $0x198] sm:$0xff]   ;;  %v344_v28 = vld [vmem:[%s11347_s11 + $0x1a0] sm:$0xff]  }
  0x1f   : > { %337 = vst [vmem:[%s11352_s12 + $0xd0] sm:$0xff] %v336_v26   ;;  %v348_v29 = vld [vmem:[%s11347_s11 + $0x1a8] sm:$0xff]   ;;  %341 = vst [vmem:[%s11352_s12 + $0xd8] sm:$0xff] %v340_v27   ;;  %v352_v30 = vld [vmem:[%s11347_s11 + $0x1b0] sm:$0xff]  }
  0x20   : > { %345 = vst [vmem:[%s11352_s12 + $0xe0] sm:$0xff] %v344_v28   ;;  %349 = vst [vmem:[%s11352_s12 + $0xe8] sm:$0xff] %v348_v29   ;;  %v356_v31 = vld [vmem:[%s11347_s11 + $0x1b8] sm:$0xff]   ;;  %v360_v32 = vld [vmem:[%s11347_s11 + $0x200] sm:$0xff]  }
  0x21   : > { %353 = vst [vmem:[%s11352_s12 + $0xf0] sm:$0xff] %v352_v30   ;;  %357 = vst [vmem:[%s11352_s12 + $0xf8] sm:$0xff] %v356_v31   ;;  %v364_v33 = vld [vmem:[%s11347_s11 + $0x208] sm:$0xff]   ;;  %v368_v34 = vld [vmem:[%s11347_s11 + $0x210] sm:$0xff]  }
  0x22   : > { %361 = vst [vmem:[%s11352_s12 + $0x100] sm:$0xff] %v360_v32   ;;  %v372_v35 = vld [vmem:[%s11347_s11 + $0x218] sm:$0xff]   ;;  %365 = vst [vmem:[%s11352_s12 + $0x108] sm:$0xff] %v364_v33   ;;  %v376_v36 = vld [vmem:[%s11347_s11 + $0x220] sm:$0xff]  }
  0x23   : > { %369 = vst [vmem:[%s11352_s12 + $0x110] sm:$0xff] %v368_v34   ;;  %373 = vst [vmem:[%s11352_s12 + $0x118] sm:$0xff] %v372_v35   ;;  %v380_v37 = vld [vmem:[%s11347_s11 + $0x228] sm:$0xff]   ;;  %v384_v38 = vld [vmem:[%s11347_s11 + $0x230] sm:$0xff]  }
  0x24   : > { %377 = vst [vmem:[%s11352_s12 + $0x120] sm:$0xff] %v376_v36   ;;  %381 = vst [vmem:[%s11352_s12 + $0x128] sm:$0xff] %v380_v37   ;;  %v388_v39 = vld [vmem:[%s11347_s11 + $0x238] sm:$0xff]   ;;  %v392_v40 = vld [vmem:[%s11347_s11 + $0x280] sm:$0xff]  }
  0x25   : > { %385 = vst [vmem:[%s11352_s12 + $0x130] sm:$0xff] %v384_v38   ;;  %v396_v41 = vld [vmem:[%s11347_s11 + $0x288] sm:$0xff]   ;;  %389 = vst [vmem:[%s11352_s12 + $0x138] sm:$0xff] %v388_v39   ;;  %v400_v42 = vld [vmem:[%s11347_s11 + $0x290] sm:$0xff]  }
  0x26   : > { %393 = vst [vmem:[%s11352_s12 + $0x140] sm:$0xff] %v392_v40   ;;  %397 = vst [vmem:[%s11352_s12 + $0x148] sm:$0xff] %v396_v41   ;;  %v404_v43 = vld [vmem:[%s11347_s11 + $0x298] sm:$0xff]   ;;  %v408_v44 = vld [vmem:[%s11347_s11 + $0x2a0] sm:$0xff]  }
  0x27   : > { %401 = vst [vmem:[%s11352_s12 + $0x150] sm:$0xff] %v400_v42   ;;  %405 = vst [vmem:[%s11352_s12 + $0x158] sm:$0xff] %v404_v43   ;;  %v412_v45 = vld [vmem:[%s11347_s11 + $0x2a8] sm:$0xff]   ;;  %v416_v46 = vld [vmem:[%s11347_s11 + $0x2b0] sm:$0xff]  }
  0x28   : > { %409 = vst [vmem:[%s11352_s12 + $0x160] sm:$0xff] %v408_v44   ;;  %v420_v47 = vld [vmem:[%s11347_s11 + $0x2b8] sm:$0xff]   ;;  %413 = vst [vmem:[%s11352_s12 + $0x168] sm:$0xff] %v412_v45   ;;  %v424_v48 = vld [vmem:[%s11347_s11 + $0x300] sm:$0xff]  }
  0x29   : > { %417 = vst [vmem:[%s11352_s12 + $0x170] sm:$0xff] %v416_v46   ;;  %421 = vst [vmem:[%s11352_s12 + $0x178] sm:$0xff] %v420_v47   ;;  %v428_v49 = vld [vmem:[%s11347_s11 + $0x308] sm:$0xff]   ;;  %v432_v50 = vld [vmem:[%s11347_s11 + $0x310] sm:$0xff]  }
  0x2a   : > { %425 = vst [vmem:[%s11352_s12 + $0x180] sm:$0xff] %v424_v48   ;;  %429 = vst [vmem:[%s11352_s12 + $0x188] sm:$0xff] %v428_v49   ;;  %v436_v51 = vld [vmem:[%s11347_s11 + $0x318] sm:$0xff]   ;;  %v440_v52 = vld [vmem:[%s11347_s11 + $0x320] sm:$0xff]  }
  0x2b   : > { %433 = vst [vmem:[%s11352_s12 + $0x190] sm:$0xff] %v432_v50   ;;  %v444_v53 = vld [vmem:[%s11347_s11 + $0x328] sm:$0xff]   ;;  %437 = vst [vmem:[%s11352_s12 + $0x198] sm:$0xff] %v436_v51   ;;  %v448_v54 = vld [vmem:[%s11347_s11 + $0x330] sm:$0xff]  }
  0x2c   : > { %441 = vst [vmem:[%s11352_s12 + $0x1a0] sm:$0xff] %v440_v52   ;;  %445 = vst [vmem:[%s11352_s12 + $0x1a8] sm:$0xff] %v444_v53   ;;  %v452_v55 = vld [vmem:[%s11347_s11 + $0x338] sm:$0xff]   ;;  %v456_v56 = vld [vmem:[%s11347_s11 + $0x380] sm:$0xff]  }
  0x2d   : > { %449 = vst [vmem:[%s11352_s12 + $0x1b0] sm:$0xff] %v448_v54   ;;  %453 = vst [vmem:[%s11352_s12 + $0x1b8] sm:$0xff] %v452_v55   ;;  %v460_v57 = vld [vmem:[%s11347_s11 + $0x388] sm:$0xff]   ;;  %v464_v58 = vld [vmem:[%s11347_s11 + $0x390] sm:$0xff]  }
  0x2e   : > { %457 = vst [vmem:[%s11352_s12 + $0x1c0] sm:$0xff] %v456_v56   ;;  %v468_v59 = vld [vmem:[%s11347_s11 + $0x398] sm:$0xff]   ;;  %461 = vst [vmem:[%s11352_s12 + $0x1c8] sm:$0xff] %v460_v57   ;;  %v472_v60 = vld [vmem:[%s11347_s11 + $0x3a0] sm:$0xff]  }
  0x2f   : > { %465 = vst [vmem:[%s11352_s12 + $0x1d0] sm:$0xff] %v464_v58   ;;  %469 = vst [vmem:[%s11352_s12 + $0x1d8] sm:$0xff] %v468_v59   ;;  %v476_v61 = vld [vmem:[%s11347_s11 + $0x3a8] sm:$0xff]   ;;  %v480_v62 = vld [vmem:[%s11347_s11 + $0x3b0] sm:$0xff]  }
  0x30   : > { %473 = vst [vmem:[%s11352_s12 + $0x1e0] sm:$0xff] %v472_v60   ;;  %477 = vst [vmem:[%s11352_s12 + $0x1e8] sm:$0xff] %v476_v61   ;;  %v484_v63 = vld [vmem:[%s11347_s11 + $0x3b8] sm:$0xff]   ;;  %v488_v0 = vld [vmem:[%s11347_s11 + $0x400] sm:$0xff]  }
  0x31   : > { %481 = vst [vmem:[%s11352_s12 + $0x1f0] sm:$0xff] %v480_v62   ;;  %v492_v1 = vld [vmem:[%s11347_s11 + $0x408] sm:$0xff]   ;;  %485 = vst [vmem:[%s11352_s12 + $0x1f8] sm:$0xff] %v484_v63   ;;  %v496_v2 = vld [vmem:[%s11347_s11 + $0x410] sm:$0xff]  }
  0x32   : > { %489 = vst [vmem:[%s11352_s12 + $0x200] sm:$0xff] %v488_v0   ;;  %493 = vst [vmem:[%s11352_s12 + $0x208] sm:$0xff] %v492_v1   ;;  %v500_v3 = vld [vmem:[%s11347_s11 + $0x418] sm:$0xff]   ;;  %v504_v4 = vld [vmem:[%s11347_s11 + $0x420] sm:$0xff]  }
  0x33   : > { %497 = vst [vmem:[%s11352_s12 + $0x210] sm:$0xff] %v496_v2   ;;  %501 = vst [vmem:[%s11352_s12 + $0x218] sm:$0xff] %v500_v3   ;;  %v508_v5 = vld [vmem:[%s11347_s11 + $0x428] sm:$0xff]   ;;  %v512_v6 = vld [vmem:[%s11347_s11 + $0x430] sm:$0xff]  }
  0x34   : > { %505 = vst [vmem:[%s11352_s12 + $0x220] sm:$0xff] %v504_v4   ;;  %v516_v7 = vld [vmem:[%s11347_s11 + $0x438] sm:$0xff]   ;;  %509 = vst [vmem:[%s11352_s12 + $0x228] sm:$0xff] %v508_v5   ;;  %v520_v8 = vld [vmem:[%s11347_s11 + $0x480] sm:$0xff]  }
  0x35   : > { %513 = vst [vmem:[%s11352_s12 + $0x230] sm:$0xff] %v512_v6   ;;  %517 = vst [vmem:[%s11352_s12 + $0x238] sm:$0xff] %v516_v7   ;;  %v524_v9 = vld [vmem:[%s11347_s11 + $0x488] sm:$0xff]   ;;  %v528_v10 = vld [vmem:[%s11347_s11 + $0x490] sm:$0xff]  }
  0x36   : > { %521 = vst [vmem:[%s11352_s12 + $0x240] sm:$0xff] %v520_v8   ;;  %525 = vst [vmem:[%s11352_s12 + $0x248] sm:$0xff] %v524_v9   ;;  %v532_v11 = vld [vmem:[%s11347_s11 + $0x498] sm:$0xff]   ;;  %v536_v12 = vld [vmem:[%s11347_s11 + $0x4a0] sm:$0xff]  }
  0x37   : > { %529 = vst [vmem:[%s11352_s12 + $0x250] sm:$0xff] %v528_v10   ;;  %v540_v13 = vld [vmem:[%s11347_s11 + $0x4a8] sm:$0xff]   ;;  %533 = vst [vmem:[%s11352_s12 + $0x258] sm:$0xff] %v532_v11   ;;  %v544_v14 = vld [vmem:[%s11347_s11 + $0x4b0] sm:$0xff]  }
  0x38   : > { %537 = vst [vmem:[%s11352_s12 + $0x260] sm:$0xff] %v536_v12   ;;  %541 = vst [vmem:[%s11352_s12 + $0x268] sm:$0xff] %v540_v13   ;;  %v548_v15 = vld [vmem:[%s11347_s11 + $0x4b8] sm:$0xff]   ;;  %v552_v16 = vld [vmem:[%s11347_s11 + $0x500] sm:$0xff]  }
  0x39   : > { %545 = vst [vmem:[%s11352_s12 + $0x270] sm:$0xff] %v544_v14   ;;  %549 = vst [vmem:[%s11352_s12 + $0x278] sm:$0xff] %v548_v15   ;;  %v556_v17 = vld [vmem:[%s11347_s11 + $0x508] sm:$0xff]   ;;  %v560_v18 = vld [vmem:[%s11347_s11 + $0x510] sm:$0xff]  }
  0x3a   : > { %553 = vst [vmem:[%s11352_s12 + $0x280] sm:$0xff] %v552_v16   ;;  %v564_v19 = vld [vmem:[%s11347_s11 + $0x518] sm:$0xff]   ;;  %557 = vst [vmem:[%s11352_s12 + $0x288] sm:$0xff] %v556_v17   ;;  %v568_v20 = vld [vmem:[%s11347_s11 + $0x520] sm:$0xff]  }
  0x3b   : > { %561 = vst [vmem:[%s11352_s12 + $0x290] sm:$0xff] %v560_v18   ;;  %565 = vst [vmem:[%s11352_s12 + $0x298] sm:$0xff] %v564_v19   ;;  %v572_v21 = vld [vmem:[%s11347_s11 + $0x528] sm:$0xff]   ;;  %v576_v22 = vld [vmem:[%s11347_s11 + $0x530] sm:$0xff]  }
  0x3c   : > { %569 = vst [vmem:[%s11352_s12 + $0x2a0] sm:$0xff] %v568_v20   ;;  %573 = vst [vmem:[%s11352_s12 + $0x2a8] sm:$0xff] %v572_v21   ;;  %v580_v23 = vld [vmem:[%s11347_s11 + $0x538] sm:$0xff]   ;;  %v584_v24 = vld [vmem:[%s11347_s11 + $0x580] sm:$0xff]  }
  0x3d   : > { %577 = vst [vmem:[%s11352_s12 + $0x2b0] sm:$0xff] %v576_v22   ;;  %v588_v25 = vld [vmem:[%s11347_s11 + $0x588] sm:$0xff]   ;;  %581 = vst [vmem:[%s11352_s12 + $0x2b8] sm:$0xff] %v580_v23   ;;  %v592_v26 = vld [vmem:[%s11347_s11 + $0x590] sm:$0xff]  }
  0x3e   : > { %585 = vst [vmem:[%s11352_s12 + $0x2c0] sm:$0xff] %v584_v24   ;;  %589 = vst [vmem:[%s11352_s12 + $0x2c8] sm:$0xff] %v588_v25   ;;  %v596_v27 = vld [vmem:[%s11347_s11 + $0x598] sm:$0xff]   ;;  %v600_v28 = vld [vmem:[%s11347_s11 + $0x5a0] sm:$0xff]  }
  0x3f   : > { %593 = vst [vmem:[%s11352_s12 + $0x2d0] sm:$0xff] %v592_v26   ;;  %597 = vst [vmem:[%s11352_s12 + $0x2d8] sm:$0xff] %v596_v27   ;;  %v604_v29 = vld [vmem:[%s11347_s11 + $0x5a8] sm:$0xff]   ;;  %v608_v30 = vld [vmem:[%s11347_s11 + $0x5b0] sm:$0xff]  }
  0x40   : > { %601 = vst [vmem:[%s11352_s12 + $0x2e0] sm:$0xff] %v600_v28   ;;  %v612_v31 = vld [vmem:[%s11347_s11 + $0x5b8] sm:$0xff]   ;;  %605 = vst [vmem:[%s11352_s12 + $0x2e8] sm:$0xff] %v604_v29   ;;  %v616_v32 = vld [vmem:[%s11347_s11 + $0x600] sm:$0xff]  }
  0x41   : > { %609 = vst [vmem:[%s11352_s12 + $0x2f0] sm:$0xff] %v608_v30   ;;  %613 = vst [vmem:[%s11352_s12 + $0x2f8] sm:$0xff] %v612_v31   ;;  %v620_v33 = vld [vmem:[%s11347_s11 + $0x608] sm:$0xff]   ;;  %v624_v34 = vld [vmem:[%s11347_s11 + $0x610] sm:$0xff]  }
  0x42   : > { %617 = vst [vmem:[%s11352_s12 + $0x300] sm:$0xff] %v616_v32   ;;  %621 = vst [vmem:[%s11352_s12 + $0x308] sm:$0xff] %v620_v33   ;;  %v628_v35 = vld [vmem:[%s11347_s11 + $0x618] sm:$0xff]   ;;  %v632_v36 = vld [vmem:[%s11347_s11 + $0x620] sm:$0xff]  }
  0x43   : > { %625 = vst [vmem:[%s11352_s12 + $0x310] sm:$0xff] %v624_v34   ;;  %v636_v37 = vld [vmem:[%s11347_s11 + $0x628] sm:$0xff]   ;;  %629 = vst [vmem:[%s11352_s12 + $0x318] sm:$0xff] %v628_v35   ;;  %v640_v38 = vld [vmem:[%s11347_s11 + $0x630] sm:$0xff]  }
  0x44   : > { %633 = vst [vmem:[%s11352_s12 + $0x320] sm:$0xff] %v632_v36   ;;  %637 = vst [vmem:[%s11352_s12 + $0x328] sm:$0xff] %v636_v37   ;;  %v644_v39 = vld [vmem:[%s11347_s11 + $0x638] sm:$0xff]   ;;  %v648_v40 = vld [vmem:[%s11347_s11 + $0x680] sm:$0xff]  }
  0x45   : > { %641 = vst [vmem:[%s11352_s12 + $0x330] sm:$0xff] %v640_v38   ;;  %645 = vst [vmem:[%s11352_s12 + $0x338] sm:$0xff] %v644_v39   ;;  %v652_v41 = vld [vmem:[%s11347_s11 + $0x688] sm:$0xff]   ;;  %v656_v42 = vld [vmem:[%s11347_s11 + $0x690] sm:$0xff]  }
  0x46   : > { %649 = vst [vmem:[%s11352_s12 + $0x340] sm:$0xff] %v648_v40   ;;  %v660_v43 = vld [vmem:[%s11347_s11 + $0x698] sm:$0xff]   ;;  %653 = vst [vmem:[%s11352_s12 + $0x348] sm:$0xff] %v652_v41   ;;  %v664_v44 = vld [vmem:[%s11347_s11 + $0x6a0] sm:$0xff]  }
  0x47   : > { %657 = vst [vmem:[%s11352_s12 + $0x350] sm:$0xff] %v656_v42   ;;  %661 = vst [vmem:[%s11352_s12 + $0x358] sm:$0xff] %v660_v43   ;;  %v668_v45 = vld [vmem:[%s11347_s11 + $0x6a8] sm:$0xff]   ;;  %v672_v46 = vld [vmem:[%s11347_s11 + $0x6b0] sm:$0xff]  }
  0x48   : > { %665 = vst [vmem:[%s11352_s12 + $0x360] sm:$0xff] %v664_v44   ;;  %669 = vst [vmem:[%s11352_s12 + $0x368] sm:$0xff] %v668_v45   ;;  %v676_v47 = vld [vmem:[%s11347_s11 + $0x6b8] sm:$0xff]   ;;  %v680_v48 = vld [vmem:[%s11347_s11 + $0x700] sm:$0xff]  }
  0x49   : > { %673 = vst [vmem:[%s11352_s12 + $0x370] sm:$0xff] %v672_v46   ;;  %v684_v49 = vld [vmem:[%s11347_s11 + $0x708] sm:$0xff]   ;;  %677 = vst [vmem:[%s11352_s12 + $0x378] sm:$0xff] %v676_v47   ;;  %v688_v50 = vld [vmem:[%s11347_s11 + $0x710] sm:$0xff]  }
  0x4a   : > { %681 = vst [vmem:[%s11352_s12 + $0x380] sm:$0xff] %v680_v48   ;;  %685 = vst [vmem:[%s11352_s12 + $0x388] sm:$0xff] %v684_v49   ;;  %v692_v51 = vld [vmem:[%s11347_s11 + $0x718] sm:$0xff]   ;;  %v696_v52 = vld [vmem:[%s11347_s11 + $0x720] sm:$0xff]  }
  0x4b   : > { %689 = vst [vmem:[%s11352_s12 + $0x390] sm:$0xff] %v688_v50   ;;  %693 = vst [vmem:[%s11352_s12 + $0x398] sm:$0xff] %v692_v51   ;;  %v700_v53 = vld [vmem:[%s11347_s11 + $0x728] sm:$0xff]   ;;  %v704_v54 = vld [vmem:[%s11347_s11 + $0x730] sm:$0xff]  }
  0x4c   : > { %697 = vst [vmem:[%s11352_s12 + $0x3a0] sm:$0xff] %v696_v52   ;;  %v708_v55 = vld [vmem:[%s11347_s11 + $0x738] sm:$0xff]   ;;  %701 = vst [vmem:[%s11352_s12 + $0x3a8] sm:$0xff] %v700_v53   ;;  %v712_v56 = vld [vmem:[%s11347_s11 + $0x780] sm:$0xff]  }
  0x4d   : > { %705 = vst [vmem:[%s11352_s12 + $0x3b0] sm:$0xff] %v704_v54   ;;  %709 = vst [vmem:[%s11352_s12 + $0x3b8] sm:$0xff] %v708_v55   ;;  %v716_v57 = vld [vmem:[%s11347_s11 + $0x788] sm:$0xff]   ;;  %v720_v58 = vld [vmem:[%s11347_s11 + $0x790] sm:$0xff]  }
  0x4e   : > { %713 = vst [vmem:[%s11352_s12 + $0x3c0] sm:$0xff] %v712_v56   ;;  %717 = vst [vmem:[%s11352_s12 + $0x3c8] sm:$0xff] %v716_v57   ;;  %v724_v59 = vld [vmem:[%s11347_s11 + $0x798] sm:$0xff]   ;;  %v728_v60 = vld [vmem:[%s11347_s11 + $0x7a0] sm:$0xff]  }
  0x4f   : > { %721 = vst [vmem:[%s11352_s12 + $0x3d0] sm:$0xff] %v720_v58   ;;  %v732_v61 = vld [vmem:[%s11347_s11 + $0x7a8] sm:$0xff]   ;;  %725 = vst [vmem:[%s11352_s12 + $0x3d8] sm:$0xff] %v724_v59   ;;  %v736_v62 = vld [vmem:[%s11347_s11 + $0x7b0] sm:$0xff]  }
  0x50   : > { %729 = vst [vmem:[%s11352_s12 + $0x3e0] sm:$0xff] %v728_v60   ;;  %733 = vst [vmem:[%s11352_s12 + $0x3e8] sm:$0xff] %v732_v61   ;;  %v740_v63 = vld [vmem:[%s11347_s11 + $0x7b8] sm:$0xff]  }
  0x51   : > { %737 = vst [vmem:[%s11352_s12 + $0x3f0] sm:$0xff] %v736_v62   ;;  %741 = vst [vmem:[%s11352_s12 + $0x3f8] sm:$0xff] %v740_v63  }
  0x52 PF: > { %1278 = sbr.rel (!%p11335_p3) target bundleno = 150 (0x96), region = 73  ;;  %s1280_s13 = sand.u32 (%p11335_p3), 1, %s11265_s22  }
  0x53   : > { %s9754_s14 = sshll.u32 (%p11335_p3), %s11269_s23, 6  ;;  %s8730_s15 = sshll.u32 (%p11335_p3), %s1280_s13, 10 }
  0x54   : > { %s11614_s18 = scalar_lea.vmem (%p11335_p3), %s13563_s1, %s9754_s14  ;;  %s11619_s19 = scalar_lea.vmem (%p11335_p3), [#allocation3], %s8730_s15 }
  0x55   : > { %v1301_v0 = vld [vmem:[%s11614_s18] sm:$0xff] (%p11335_p3)   ;;  %v1305_v1 = vld [vmem:[%s11614_s18 + $0x8] sm:$0xff] (%p11335_p3)   ;;  %v1309_v2 = vld [vmem:[%s11614_s18 + $0x10] sm:$0xff] (%p11335_p3)  }
  0x56   : > { %1302 = vst [vmem:[%s11619_s19] sm:$0xff] (%p11335_p3), %v1301_v0   ;;  %1306 = vst [vmem:[%s11619_s19 + $0x8] sm:$0xff] (%p11335_p3), %v1305_v1   ;;  %v1313_v3 = vld [vmem:[%s11614_s18 + $0x18] sm:$0xff] (%p11335_p3)   ;;  %v1317_v4 = vld [vmem:[%s11614_s18 + $0x20] sm:$0xff] (%p11335_p3)  }
  0x57   : > { %1310 = vst [vmem:[%s11619_s19 + $0x10] sm:$0xff] (%p11335_p3), %v1309_v2   ;;  %v1321_v5 = vld [vmem:[%s11614_s18 + $0x28] sm:$0xff] (%p11335_p3)   ;;  %1314 = vst [vmem:[%s11619_s19 + $0x18] sm:$0xff] (%p11335_p3), %v1313_v3   ;;  %v1325_v6 = vld [vmem:[%s11614_s18 + $0x30] sm:$0xff] (%p11335_p3)  }
  0x58   : > { %1318 = vst [vmem:[%s11619_s19 + $0x20] sm:$0xff] (%p11335_p3), %v1317_v4   ;;  %1322 = vst [vmem:[%s11619_s19 + $0x28] sm:$0xff] (%p11335_p3), %v1321_v5   ;;  %v1329_v7 = vld [vmem:[%s11614_s18 + $0x38] sm:$0xff] (%p11335_p3)   ;;  %v1333_v8 = vld [vmem:[%s11614_s18 + $0x80] sm:$0xff] (%p11335_p3)  }
  0x59   : > { %1326 = vst [vmem:[%s11619_s19 + $0x30] sm:$0xff] %v1325_v6   ;;  %1330 = vst [vmem:[%s11619_s19 + $0x38] sm:$0xff] %v1329_v7   ;;  %v1337_v9 = vld [vmem:[%s11614_s18 + $0x88] sm:$0xff]   ;;  %v1341_v10 = vld [vmem:[%s11614_s18 + $0x90] sm:$0xff]  }
  0x5a   : > { %1334 = vst [vmem:[%s11619_s19 + $0x40] sm:$0xff] %v1333_v8   ;;  %v1345_v11 = vld [vmem:[%s11614_s18 + $0x98] sm:$0xff]   ;;  %1338 = vst [vmem:[%s11619_s19 + $0x48] sm:$0xff] %v1337_v9   ;;  %v1349_v12 = vld [vmem:[%s11614_s18 + $0xa0] sm:$0xff]  }
  0x5b   : > { %1342 = vst [vmem:[%s11619_s19 + $0x50] sm:$0xff] %v1341_v10   ;;  %1346 = vst [vmem:[%s11619_s19 + $0x58] sm:$0xff] %v1345_v11   ;;  %v1353_v13 = vld [vmem:[%s11614_s18 + $0xa8] sm:$0xff]   ;;  %v1357_v14 = vld [vmem:[%s11614_s18 + $0xb0] sm:$0xff]  }
  0x5c   : > { %1350 = vst [vmem:[%s11619_s19 + $0x60] sm:$0xff] %v1349_v12   ;;  %1354 = vst [vmem:[%s11619_s19 + $0x68] sm:$0xff] %v1353_v13   ;;  %v1361_v15 = vld [vmem:[%s11614_s18 + $0xb8] sm:$0xff]   ;;  %v1365_v16 = vld [vmem:[%s11614_s18 + $0x100] sm:$0xff]  }
  0x5d   : > { %1358 = vst [vmem:[%s11619_s19 + $0x70] sm:$0xff] %v1357_v14   ;;  %v1369_v17 = vld [vmem:[%s11614_s18 + $0x108] sm:$0xff]   ;;  %1362 = vst [vmem:[%s11619_s19 + $0x78] sm:$0xff] %v1361_v15   ;;  %v1373_v18 = vld [vmem:[%s11614_s18 + $0x110] sm:$0xff]  }
  0x5e   : > { %1366 = vst [vmem:[%s11619_s19 + $0x80] sm:$0xff] %v1365_v16   ;;  %1370 = vst [vmem:[%s11619_s19 + $0x88] sm:$0xff] %v1369_v17   ;;  %v1377_v19 = vld [vmem:[%s11614_s18 + $0x118] sm:$0xff]   ;;  %v1381_v20 = vld [vmem:[%s11614_s18 + $0x120] sm:$0xff]  }
  0x5f   : > { %1374 = vst [vmem:[%s11619_s19 + $0x90] sm:$0xff] %v1373_v18   ;;  %1378 = vst [vmem:[%s11619_s19 + $0x98] sm:$0xff] %v1377_v19   ;;  %v1385_v21 = vld [vmem:[%s11614_s18 + $0x128] sm:$0xff]   ;;  %v1389_v22 = vld [vmem:[%s11614_s18 + $0x130] sm:$0xff]  }
  0x60   : > { %1382 = vst [vmem:[%s11619_s19 + $0xa0] sm:$0xff] %v1381_v20   ;;  %v1393_v23 = vld [vmem:[%s11614_s18 + $0x138] sm:$0xff]   ;;  %1386 = vst [vmem:[%s11619_s19 + $0xa8] sm:$0xff] %v1385_v21   ;;  %v1397_v24 = vld [vmem:[%s11614_s18 + $0x180] sm:$0xff]  }
  0x61   : > { %1390 = vst [vmem:[%s11619_s19 + $0xb0] sm:$0xff] %v1389_v22   ;;  %1394 = vst [vmem:[%s11619_s19 + $0xb8] sm:$0xff] %v1393_v23   ;;  %v1401_v25 = vld [vmem:[%s11614_s18 + $0x188] sm:$0xff]   ;;  %v1405_v26 = vld [vmem:[%s11614_s18 + $0x190] sm:$0xff]  }
  0x62   : > { %1398 = vst [vmem:[%s11619_s19 + $0xc0] sm:$0xff] %v1397_v24   ;;  %1402 = vst [vmem:[%s11619_s19 + $0xc8] sm:$0xff] %v1401_v25   ;;  %v1409_v27 = vld [vmem:[%s11614_s18 + $0x198] sm:$0xff]   ;;  %v1413_v28 = vld [vmem:[%s11614_s18 + $0x1a0] sm:$0xff]  }
  0x63   : > { %1406 = vst [vmem:[%s11619_s19 + $0xd0] sm:$0xff] %v1405_v26   ;;  %v1417_v29 = vld [vmem:[%s11614_s18 + $0x1a8] sm:$0xff]   ;;  %1410 = vst [vmem:[%s11619_s19 + $0xd8] sm:$0xff] %v1409_v27   ;;  %v1421_v30 = vld [vmem:[%s11614_s18 + $0x1b0] sm:$0xff]  }
  0x64   : > { %1414 = vst [vmem:[%s11619_s19 + $0xe0] sm:$0xff] %v1413_v28   ;;  %1418 = vst [vmem:[%s11619_s19 + $0xe8] sm:$0xff] %v1417_v29   ;;  %v1425_v31 = vld [vmem:[%s11614_s18 + $0x1b8] sm:$0xff]   ;;  %v1429_v32 = vld [vmem:[%s11614_s18 + $0x200] sm:$0xff]  }
  0x65   : > { %1422 = vst [vmem:[%s11619_s19 + $0xf0] sm:$0xff] %v1421_v30   ;;  %1426 = vst [vmem:[%s11619_s19 + $0xf8] sm:$0xff] %v1425_v31   ;;  %v1433_v33 = vld [vmem:[%s11614_s18 + $0x208] sm:$0xff]   ;;  %v1437_v34 = vld [vmem:[%s11614_s18 + $0x210] sm:$0xff]  }
  0x66   : > { %1430 = vst [vmem:[%s11619_s19 + $0x100] sm:$0xff] %v1429_v32   ;;  %v1441_v35 = vld [vmem:[%s11614_s18 + $0x218] sm:$0xff]   ;;  %1434 = vst [vmem:[%s11619_s19 + $0x108] sm:$0xff] %v1433_v33   ;;  %v1445_v36 = vld [vmem:[%s11614_s18 + $0x220] sm:$0xff]  }
  0x67   : > { %1438 = vst [vmem:[%s11619_s19 + $0x110] sm:$0xff] %v1437_v34   ;;  %1442 = vst [vmem:[%s11619_s19 + $0x118] sm:$0xff] %v1441_v35   ;;  %v1449_v37 = vld [vmem:[%s11614_s18 + $0x228] sm:$0xff]   ;;  %v1453_v38 = vld [vmem:[%s11614_s18 + $0x230] sm:$0xff]  }
  0x68   : > { %1446 = vst [vmem:[%s11619_s19 + $0x120] sm:$0xff] %v1445_v36   ;;  %1450 = vst [vmem:[%s11619_s19 + $0x128] sm:$0xff] %v1449_v37   ;;  %v1457_v39 = vld [vmem:[%s11614_s18 + $0x238] sm:$0xff]   ;;  %v1461_v40 = vld [vmem:[%s11614_s18 + $0x280] sm:$0xff]  }
  0x69   : > { %1454 = vst [vmem:[%s11619_s19 + $0x130] sm:$0xff] %v1453_v38   ;;  %v1465_v41 = vld [vmem:[%s11614_s18 + $0x288] sm:$0xff]   ;;  %1458 = vst [vmem:[%s11619_s19 + $0x138] sm:$0xff] %v1457_v39   ;;  %v1469_v42 = vld [vmem:[%s11614_s18 + $0x290] sm:$0xff]  }
  0x6a   : > { %1462 = vst [vmem:[%s11619_s19 + $0x140] sm:$0xff] %v1461_v40   ;;  %1466 = vst [vmem:[%s11619_s19 + $0x148] sm:$0xff] %v1465_v41   ;;  %v1473_v43 = vld [vmem:[%s11614_s18 + $0x298] sm:$0xff]   ;;  %v1477_v44 = vld [vmem:[%s11614_s18 + $0x2a0] sm:$0xff]  }
  0x6b   : > { %1470 = vst [vmem:[%s11619_s19 + $0x150] sm:$0xff] %v1469_v42   ;;  %1474 = vst [vmem:[%s11619_s19 + $0x158] sm:$0xff] %v1473_v43   ;;  %v1481_v45 = vld [vmem:[%s11614_s18 + $0x2a8] sm:$0xff]   ;;  %v1485_v46 = vld [vmem:[%s11614_s18 + $0x2b0] sm:$0xff]  }
  0x6c   : > { %1478 = vst [vmem:[%s11619_s19 + $0x160] sm:$0xff] %v1477_v44   ;;  %v1489_v47 = vld [vmem:[%s11614_s18 + $0x2b8] sm:$0xff]   ;;  %1482 = vst [vmem:[%s11619_s19 + $0x168] sm:$0xff] %v1481_v45   ;;  %v1493_v48 = vld [vmem:[%s11614_s18 + $0x300] sm:$0xff]  }
  0x6d   : > { %1486 = vst [vmem:[%s11619_s19 + $0x170] sm:$0xff] %v1485_v46   ;;  %1490 = vst [vmem:[%s11619_s19 + $0x178] sm:$0xff] %v1489_v47   ;;  %v1497_v49 = vld [vmem:[%s11614_s18 + $0x308] sm:$0xff]   ;;  %v1501_v50 = vld [vmem:[%s11614_s18 + $0x310] sm:$0xff]  }
  0x6e   : > { %1494 = vst [vmem:[%s11619_s19 + $0x180] sm:$0xff] %v1493_v48   ;;  %1498 = vst [vmem:[%s11619_s19 + $0x188] sm:$0xff] %v1497_v49   ;;  %v1505_v51 = vld [vmem:[%s11614_s18 + $0x318] sm:$0xff]   ;;  %v1509_v52 = vld [vmem:[%s11614_s18 + $0x320] sm:$0xff]  }
  0x6f   : > { %1502 = vst [vmem:[%s11619_s19 + $0x190] sm:$0xff] %v1501_v50   ;;  %v1513_v53 = vld [vmem:[%s11614_s18 + $0x328] sm:$0xff]   ;;  %1506 = vst [vmem:[%s11619_s19 + $0x198] sm:$0xff] %v1505_v51   ;;  %v1517_v54 = vld [vmem:[%s11614_s18 + $0x330] sm:$0xff]  }
  0x70   : > { %1510 = vst [vmem:[%s11619_s19 + $0x1a0] sm:$0xff] %v1509_v52   ;;  %1514 = vst [vmem:[%s11619_s19 + $0x1a8] sm:$0xff] %v1513_v53   ;;  %v1521_v55 = vld [vmem:[%s11614_s18 + $0x338] sm:$0xff]   ;;  %v1525_v56 = vld [vmem:[%s11614_s18 + $0x380] sm:$0xff]  }
  0x71   : > { %1518 = vst [vmem:[%s11619_s19 + $0x1b0] sm:$0xff] %v1517_v54   ;;  %1522 = vst [vmem:[%s11619_s19 + $0x1b8] sm:$0xff] %v1521_v55   ;;  %v1529_v57 = vld [vmem:[%s11614_s18 + $0x388] sm:$0xff]   ;;  %v1533_v58 = vld [vmem:[%s11614_s18 + $0x390] sm:$0xff]  }
  0x72   : > { %1526 = vst [vmem:[%s11619_s19 + $0x1c0] sm:$0xff] %v1525_v56   ;;  %v1537_v59 = vld [vmem:[%s11614_s18 + $0x398] sm:$0xff]   ;;  %1530 = vst [vmem:[%s11619_s19 + $0x1c8] sm:$0xff] %v1529_v57   ;;  %v1541_v60 = vld [vmem:[%s11614_s18 + $0x3a0] sm:$0xff]  }
  0x73   : > { %1534 = vst [vmem:[%s11619_s19 + $0x1d0] sm:$0xff] %v1533_v58   ;;  %1538 = vst [vmem:[%s11619_s19 + $0x1d8] sm:$0xff] %v1537_v59   ;;  %v1545_v61 = vld [vmem:[%s11614_s18 + $0x3a8] sm:$0xff]   ;;  %v1549_v62 = vld [vmem:[%s11614_s18 + $0x3b0] sm:$0xff]  }
  0x74   : > { %1542 = vst [vmem:[%s11619_s19 + $0x1e0] sm:$0xff] %v1541_v60   ;;  %1546 = vst [vmem:[%s11619_s19 + $0x1e8] sm:$0xff] %v1545_v61   ;;  %v1553_v63 = vld [vmem:[%s11614_s18 + $0x3b8] sm:$0xff]   ;;  %v1557_v0 = vld [vmem:[%s11614_s18 + $0x400] sm:$0xff]  }
  0x75   : > { %1550 = vst [vmem:[%s11619_s19 + $0x1f0] sm:$0xff] %v1549_v62   ;;  %v1561_v1 = vld [vmem:[%s11614_s18 + $0x408] sm:$0xff]   ;;  %1554 = vst [vmem:[%s11619_s19 + $0x1f8] sm:$0xff] %v1553_v63   ;;  %v1565_v2 = vld [vmem:[%s11614_s18 + $0x410] sm:$0xff]  }
  0x76   : > { %1558 = vst [vmem:[%s11619_s19 + $0x200] sm:$0xff] %v1557_v0   ;;  %1562 = vst [vmem:[%s11619_s19 + $0x208] sm:$0xff] %v1561_v1   ;;  %v1569_v3 = vld [vmem:[%s11614_s18 + $0x418] sm:$0xff]   ;;  %v1573_v4 = vld [vmem:[%s11614_s18 + $0x420] sm:$0xff]  }
  0x77   : > { %1566 = vst [vmem:[%s11619_s19 + $0x210] sm:$0xff] %v1565_v2   ;;  %1570 = vst [vmem:[%s11619_s19 + $0x218] sm:$0xff] %v1569_v3   ;;  %v1577_v5 = vld [vmem:[%s11614_s18 + $0x428] sm:$0xff]   ;;  %v1581_v6 = vld [vmem:[%s11614_s18 + $0x430] sm:$0xff]  }
  0x78   : > { %1574 = vst [vmem:[%s11619_s19 + $0x220] sm:$0xff] %v1573_v4   ;;  %v1585_v7 = vld [vmem:[%s11614_s18 + $0x438] sm:$0xff]   ;;  %1578 = vst [vmem:[%s11619_s19 + $0x228] sm:$0xff] %v1577_v5   ;;  %v1589_v8 = vld [vmem:[%s11614_s18 + $0x480] sm:$0xff]  }
  0x79   : > { %1582 = vst [vmem:[%s11619_s19 + $0x230] sm:$0xff] %v1581_v6   ;;  %1586 = vst [vmem:[%s11619_s19 + $0x238] sm:$0xff] %v1585_v7   ;;  %v1593_v9 = vld [vmem:[%s11614_s18 + $0x488] sm:$0xff]   ;;  %v1597_v10 = vld [vmem:[%s11614_s18 + $0x490] sm:$0xff]  }
  0x7a   : > { %1590 = vst [vmem:[%s11619_s19 + $0x240] sm:$0xff] %v1589_v8   ;;  %1594 = vst [vmem:[%s11619_s19 + $0x248] sm:$0xff] %v1593_v9   ;;  %v1601_v11 = vld [vmem:[%s11614_s18 + $0x498] sm:$0xff]   ;;  %v1605_v12 = vld [vmem:[%s11614_s18 + $0x4a0] sm:$0xff]  }
  0x7b   : > { %1598 = vst [vmem:[%s11619_s19 + $0x250] sm:$0xff] %v1597_v10   ;;  %v1609_v13 = vld [vmem:[%s11614_s18 + $0x4a8] sm:$0xff]   ;;  %1602 = vst [vmem:[%s11619_s19 + $0x258] sm:$0xff] %v1601_v11   ;;  %v1613_v14 = vld [vmem:[%s11614_s18 + $0x4b0] sm:$0xff]  }
  0x7c   : > { %1606 = vst [vmem:[%s11619_s19 + $0x260] sm:$0xff] %v1605_v12   ;;  %1610 = vst [vmem:[%s11619_s19 + $0x268] sm:$0xff] %v1609_v13   ;;  %v1617_v15 = vld [vmem:[%s11614_s18 + $0x4b8] sm:$0xff]   ;;  %v1621_v16 = vld [vmem:[%s11614_s18 + $0x500] sm:$0xff]  }
  0x7d   : > { %1614 = vst [vmem:[%s11619_s19 + $0x270] sm:$0xff] %v1613_v14   ;;  %1618 = vst [vmem:[%s11619_s19 + $0x278] sm:$0xff] %v1617_v15   ;;  %v1625_v17 = vld [vmem:[%s11614_s18 + $0x508] sm:$0xff]   ;;  %v1629_v18 = vld [vmem:[%s11614_s18 + $0x510] sm:$0xff]  }
  0x7e   : > { %1622 = vst [vmem:[%s11619_s19 + $0x280] sm:$0xff] %v1621_v16   ;;  %v1633_v19 = vld [vmem:[%s11614_s18 + $0x518] sm:$0xff]   ;;  %1626 = vst [vmem:[%s11619_s19 + $0x288] sm:$0xff] %v1625_v17   ;;  %v1637_v20 = vld [vmem:[%s11614_s18 + $0x520] sm:$0xff]  }
  0x7f   : > { %1630 = vst [vmem:[%s11619_s19 + $0x290] sm:$0xff] %v1629_v18   ;;  %1634 = vst [vmem:[%s11619_s19 + $0x298] sm:$0xff] %v1633_v19   ;;  %v1641_v21 = vld [vmem:[%s11614_s18 + $0x528] sm:$0xff]   ;;  %v1645_v22 = vld [vmem:[%s11614_s18 + $0x530] sm:$0xff]  }
  0x80   : > { %1638 = vst [vmem:[%s11619_s19 + $0x2a0] sm:$0xff] %v1637_v20   ;;  %1642 = vst [vmem:[%s11619_s19 + $0x2a8] sm:$0xff] %v1641_v21   ;;  %v1649_v23 = vld [vmem:[%s11614_s18 + $0x538] sm:$0xff]   ;;  %v1653_v24 = vld [vmem:[%s11614_s18 + $0x580] sm:$0xff]  }
  0x81   : > { %1646 = vst [vmem:[%s11619_s19 + $0x2b0] sm:$0xff] %v1645_v22   ;;  %v1657_v25 = vld [vmem:[%s11614_s18 + $0x588] sm:$0xff]   ;;  %1650 = vst [vmem:[%s11619_s19 + $0x2b8] sm:$0xff] %v1649_v23   ;;  %v1661_v26 = vld [vmem:[%s11614_s18 + $0x590] sm:$0xff]  }
  0x82   : > { %1654 = vst [vmem:[%s11619_s19 + $0x2c0] sm:$0xff] %v1653_v24   ;;  %1658 = vst [vmem:[%s11619_s19 + $0x2c8] sm:$0xff] %v1657_v25   ;;  %v1665_v27 = vld [vmem:[%s11614_s18 + $0x598] sm:$0xff]   ;;  %v1669_v28 = vld [vmem:[%s11614_s18 + $0x5a0] sm:$0xff]  }
  0x83   : > { %1662 = vst [vmem:[%s11619_s19 + $0x2d0] sm:$0xff] %v1661_v26   ;;  %1666 = vst [vmem:[%s11619_s19 + $0x2d8] sm:$0xff] %v1665_v27   ;;  %v1673_v29 = vld [vmem:[%s11614_s18 + $0x5a8] sm:$0xff]   ;;  %v1677_v30 = vld [vmem:[%s11614_s18 + $0x5b0] sm:$0xff]  }
  0x84   : > { %1670 = vst [vmem:[%s11619_s19 + $0x2e0] sm:$0xff] %v1669_v28   ;;  %v1681_v31 = vld [vmem:[%s11614_s18 + $0x5b8] sm:$0xff]   ;;  %1674 = vst [vmem:[%s11619_s19 + $0x2e8] sm:$0xff] %v1673_v29   ;;  %v1685_v32 = vld [vmem:[%s11614_s18 + $0x600] sm:$0xff]  }
  0x85   : > { %1678 = vst [vmem:[%s11619_s19 + $0x2f0] sm:$0xff] %v1677_v30   ;;  %1682 = vst [vmem:[%s11619_s19 + $0x2f8] sm:$0xff] %v1681_v31   ;;  %v1689_v33 = vld [vmem:[%s11614_s18 + $0x608] sm:$0xff]   ;;  %v1693_v34 = vld [vmem:[%s11614_s18 + $0x610] sm:$0xff]  }
  0x86   : > { %1686 = vst [vmem:[%s11619_s19 + $0x300] sm:$0xff] %v1685_v32   ;;  %1690 = vst [vmem:[%s11619_s19 + $0x308] sm:$0xff] %v1689_v33   ;;  %v1697_v35 = vld [vmem:[%s11614_s18 + $0x618] sm:$0xff]   ;;  %v1701_v36 = vld [vmem:[%s11614_s18 + $0x620] sm:$0xff]  }
  0x87   : > { %1694 = vst [vmem:[%s11619_s19 + $0x310] sm:$0xff] %v1693_v34   ;;  %v1705_v37 = vld [vmem:[%s11614_s18 + $0x628] sm:$0xff]   ;;  %1698 = vst [vmem:[%s11619_s19 + $0x318] sm:$0xff] %v1697_v35   ;;  %v1709_v38 = vld [vmem:[%s11614_s18 + $0x630] sm:$0xff]  }
  0x88   : > { %1702 = vst [vmem:[%s11619_s19 + $0x320] sm:$0xff] %v1701_v36   ;;  %1706 = vst [vmem:[%s11619_s19 + $0x328] sm:$0xff] %v1705_v37   ;;  %v1713_v39 = vld [vmem:[%s11614_s18 + $0x638] sm:$0xff]   ;;  %v1717_v40 = vld [vmem:[%s11614_s18 + $0x680] sm:$0xff]  }
  0x89   : > { %1710 = vst [vmem:[%s11619_s19 + $0x330] sm:$0xff] %v1709_v38   ;;  %1714 = vst [vmem:[%s11619_s19 + $0x338] sm:$0xff] %v1713_v39   ;;  %v1721_v41 = vld [vmem:[%s11614_s18 + $0x688] sm:$0xff]   ;;  %v1725_v42 = vld [vmem:[%s11614_s18 + $0x690] sm:$0xff]  }
  0x8a   : > { %1718 = vst [vmem:[%s11619_s19 + $0x340] sm:$0xff] %v1717_v40   ;;  %v1729_v43 = vld [vmem:[%s11614_s18 + $0x698] sm:$0xff]   ;;  %1722 = vst [vmem:[%s11619_s19 + $0x348] sm:$0xff] %v1721_v41   ;;  %v1733_v44 = vld [vmem:[%s11614_s18 + $0x6a0] sm:$0xff]  }
  0x8b   : > { %1726 = vst [vmem:[%s11619_s19 + $0x350] sm:$0xff] %v1725_v42   ;;  %1730 = vst [vmem:[%s11619_s19 + $0x358] sm:$0xff] %v1729_v43   ;;  %v1737_v45 = vld [vmem:[%s11614_s18 + $0x6a8] sm:$0xff]   ;;  %v1741_v46 = vld [vmem:[%s11614_s18 + $0x6b0] sm:$0xff]  }
  0x8c   : > { %1734 = vst [vmem:[%s11619_s19 + $0x360] sm:$0xff] %v1733_v44   ;;  %1738 = vst [vmem:[%s11619_s19 + $0x368] sm:$0xff] %v1737_v45   ;;  %v1745_v47 = vld [vmem:[%s11614_s18 + $0x6b8] sm:$0xff]   ;;  %v1749_v48 = vld [vmem:[%s11614_s18 + $0x700] sm:$0xff]  }
  0x8d   : > { %1742 = vst [vmem:[%s11619_s19 + $0x370] sm:$0xff] %v1741_v46   ;;  %v1753_v49 = vld [vmem:[%s11614_s18 + $0x708] sm:$0xff]   ;;  %1746 = vst [vmem:[%s11619_s19 + $0x378] sm:$0xff] %v1745_v47   ;;  %v1757_v50 = vld [vmem:[%s11614_s18 + $0x710] sm:$0xff]  }
  0x8e   : > { %1750 = vst [vmem:[%s11619_s19 + $0x380] sm:$0xff] %v1749_v48   ;;  %1754 = vst [vmem:[%s11619_s19 + $0x388] sm:$0xff] %v1753_v49   ;;  %v1761_v51 = vld [vmem:[%s11614_s18 + $0x718] sm:$0xff]   ;;  %v1765_v52 = vld [vmem:[%s11614_s18 + $0x720] sm:$0xff]  }
  0x8f   : > { %1758 = vst [vmem:[%s11619_s19 + $0x390] sm:$0xff] %v1757_v50   ;;  %1762 = vst [vmem:[%s11619_s19 + $0x398] sm:$0xff] %v1761_v51   ;;  %v1769_v53 = vld [vmem:[%s11614_s18 + $0x728] sm:$0xff]   ;;  %v1773_v54 = vld [vmem:[%s11614_s18 + $0x730] sm:$0xff]  }
  0x90   : > { %1766 = vst [vmem:[%s11619_s19 + $0x3a0] sm:$0xff] %v1765_v52   ;;  %v1777_v55 = vld [vmem:[%s11614_s18 + $0x738] sm:$0xff]   ;;  %1770 = vst [vmem:[%s11619_s19 + $0x3a8] sm:$0xff] %v1769_v53   ;;  %v1781_v56 = vld [vmem:[%s11614_s18 + $0x780] sm:$0xff]  }
  0x91   : > { %1774 = vst [vmem:[%s11619_s19 + $0x3b0] sm:$0xff] %v1773_v54   ;;  %1778 = vst [vmem:[%s11619_s19 + $0x3b8] sm:$0xff] %v1777_v55   ;;  %v1785_v57 = vld [vmem:[%s11614_s18 + $0x788] sm:$0xff]   ;;  %v1789_v58 = vld [vmem:[%s11614_s18 + $0x790] sm:$0xff]  }
  0x92   : > { %1782 = vst [vmem:[%s11619_s19 + $0x3c0] sm:$0xff] %v1781_v56   ;;  %1786 = vst [vmem:[%s11619_s19 + $0x3c8] sm:$0xff] %v1785_v57   ;;  %v1793_v59 = vld [vmem:[%s11614_s18 + $0x798] sm:$0xff]   ;;  %v1797_v60 = vld [vmem:[%s11614_s18 + $0x7a0] sm:$0xff]  }
  0x93   : > { %1790 = vst [vmem:[%s11619_s19 + $0x3d0] sm:$0xff] %v1789_v58   ;;  %v1801_v61 = vld [vmem:[%s11614_s18 + $0x7a8] sm:$0xff]   ;;  %1794 = vst [vmem:[%s11619_s19 + $0x3d8] sm:$0xff] %v1793_v59   ;;  %v1805_v62 = vld [vmem:[%s11614_s18 + $0x7b0] sm:$0xff]  }
  0x94   : > { %1798 = vst [vmem:[%s11619_s19 + $0x3e0] sm:$0xff] %v1797_v60   ;;  %1802 = vst [vmem:[%s11619_s19 + $0x3e8] sm:$0xff] %v1801_v61   ;;  %v1809_v63 = vld [vmem:[%s11614_s18 + $0x7b8] sm:$0xff]  }
  0x95   : > { %1806 = vst [vmem:[%s11619_s19 + $0x3f0] sm:$0xff] %v1805_v62   ;;  %1810 = vst [vmem:[%s11619_s19 + $0x3f8] sm:$0xff] %v1809_v63  }
  0x96 PF: > { %p8733_p5 = scmp.ge.s32.totalorder %s11269_s23, 1  ;;  %p2355_p6 = scmp.lt.s32.totalorder %s11269_s23, 3 }
  0x98   : > { %p2356_p7 = pnand %p8733_p5, %p2355_p6 }
  0x9a   : > { %2359 = sbr.rel (%p2356_p7) target bundleno = 916 (0x394), region = 118 }
  0xa1   : > { %v2422_v0 = vld [vmem:[%s13565_s3] sm:$0x3]  ;;  %vm2508_vm0 = vcmask 1040384   ;;  %vm2509_vm1 = vcmask 1041408   ;;  %s8736_s27 = sshll.u32 %s8723_s24, 4  ;;  %v11271_v1 = vmov 65535  }
  0xa2   : > { %v2510_v2 = vsel %vm2508_vm0, 4294967295, %v11271_v1  ;;  %p2410_p8 = scmp.lt.s32.totalorder %s8736_s27, 31  ;;  %s2362_s29 = sand.u32 1, %s11261_s21   ;;  %vm2483_vm2 = vcmask 23552   ;;  %v11904_v7 = vld [vmem:[%s13566_s4] sm:$0xff]   ;;  %v11927_v18 = vld [vmem:[%s13566_s4 + $0x8] sm:$0xff]  }
  0xa3   : > { %v2511_v3 = vsel %vm2509_vm1, %v2510_v2, 0  ;;  %s11882_s30 = sshll.u32 %s2362_s29, 10  ;;  %vm2857_vm3 = vcmask 261120   ;;  %vm8614_vm4 = vcmask 523264  }
  0xa4   : > { %v11884_v4 = vand.u32 %v2511_v3, %v2422_v0  ;;  %s13641_s27 = smov (!%p2410_p8, %s8736_s27), 31  ;;  %s11892_s23 = scalar_lea.vmem [#allocation2], %s11882_s30 }
  0xa5   : > { %s8737_s7 = sshll.u32 %s13641_s27, 2  ;;  %v10987_v14 = vld [vmem:[%s11892_s23 + $0x40] sm:$0xff]   ;;  %v10989_v16 = vld [vmem:[%s11892_s23 + $0x48] sm:$0xff]   ;;  %v10990_v19 = vld [vmem:[%s11892_s23 + $0x10] sm:$0xff]   ;;  %s11937_s13 = scalar_lea.vmem [#allocation3], %s11882_s30 }
  0xa6   : > { %10694 = vmatprep.subr.bf16.mxu1 %v11884_v4  ;;  %10068 = vmatprep.subr.bf16.mxu0 %v11884_v4  ;;  %s2413_s8 = scalar_lea.vmem %s13564_s2, %s8737_s7  ;;  %v10985_v15 = vld [vmem:[%s11892_s23] sm:$0xff]   ;;  %v10988_v17 = vld [vmem:[%s11892_s23 + $0x8] sm:$0xff]   ;;  %v10991_v20 = vld [vmem:[%s11892_s23 + $0x50] sm:$0xff]   ;;  %s8739_s7 = sshll.u32 %s13641_s27, 3 }
  0xa7   : > { %10695 = vmatpush3.bf16.msra.mxu1 %v11884_v4  ;;  %10069 = vmatpush3.bf16.msra.mxu0 %v11884_v4  ;;  %v10977_v5 = vld [vmem:[%s2413_s8] sm:$0xff]   ;;  %v10979_v8 = vld [vmem:[%s2413_s8 + $0x8] sm:$0xff]   ;;  %v10981_v10 = vld [vmem:[%s2413_s8 + $0x10] sm:$0xff]   ;;  %s13454_s24 = scalar_lea.vmem %s13568_s6, %s8739_s7 }
  0xa8   : > { %10086 = vmatprep.subr.bf16.mxu1 %v11884_v4  ;;  %10124 = vmatprep.subr.bf16.mxu0 %v11884_v4  ;;  %v10978_v6 = vld [vmem:[%s2413_s8 + $0x20] sm:$0xff]   ;;  %v10980_v9 = vld [vmem:[%s2413_s8 + $0x28] sm:$0xff]   ;;  %v10982_v11 = vld [vmem:[%s2413_s8 + $0x30] sm:$0xff]  }
  0xa9   : > { %10070 = vmatprep.mubr.msk.bf16.mxu0 %vm2483_vm2, %v10977_v5  ;;  %10078 = vmatprep.mubr.msk.bf16.mxu1 %vm2483_vm2, %v10978_v6  ;;  %v10983_v12 = vld [vmem:[%s2413_s8 + $0x18] sm:$0xff]   ;;  %v10996_v23 = vld [vmem:[%s11892_s23 + $0x60] sm:$0xff]   ;;  %v10997_v25 = vld [vmem:[%s11892_s23 + $0x28] sm:$0xff]  }
  0xaa   : > { %10071 = vmatmul.mubr.msk.bf16.vlgmr.msra.gmra.mrb[0].mxu0 %vm2483_vm2, %v10979_v8  ;;  %10079 = vmatmul.mubr.msk.bf16.vlgmr.msra.gmra.mrb[0].mxu1 %vm2483_vm2, %v10980_v9  ;;  %v10984_v13 = vld [vmem:[%s2413_s8 + $0x38] sm:$0xff]   ;;  %v10994_v24 = vld [vmem:[%s11892_s23 + $0x20] sm:$0xff]   ;;  %v10998_v26 = vld [vmem:[%s11892_s23 + $0x68] sm:$0xff]  }
  0xab   : > { %10125 = vmatpush3.bf16.msra.mxu0 %v11884_v4  ;;  %10087 = vmatpush3.bf16.msra.mxu1 %v11884_v4  ;;  %v10992_v21 = vld [vmem:[%s11892_s23 + $0x18] sm:$0xff]   ;;  %v11000_v27 = vld [vmem:[%s11892_s23 + $0x70] sm:$0xff]   ;;  %v11004_v31 = vld [vmem:[%s11937_s13 + $0x40] sm:$0xff]  }
  0xac   : > { %10074 = vmatprep.mubr.msk.bf16.mxu0 %vm2483_vm2, %v10981_v10  ;;  %10082 = vmatprep.mubr.msk.bf16.mxu1 %vm2483_vm2, %v10982_v11  ;;  %v10993_v22 = vld [vmem:[%s11892_s23 + $0x58] sm:$0xff]   ;;  %v10999_v28 = vld [vmem:[%s11892_s23 + $0x30] sm:$0xff]   ;;  %v11003_v32 = vld [vmem:[%s11937_s13] sm:$0xff]  }
  0xad   : > { %10104 = vmatprep.subr.bf16.mxu1 %v11904_v7  ;;  %10142 = vmatprep.subr.bf16.mxu0 %v11904_v7  ;;  %v11001_v29 = vld [vmem:[%s11892_s23 + $0x38] sm:$0xff]   ;;  %v11006_v33 = vld [vmem:[%s11937_s13 + $0x48] sm:$0xff]   ;;  %v11007_v35 = vld [vmem:[%s11937_s13 + $0x10] sm:$0xff]  }
  0xae   : > { %v11002_v30 = vld [vmem:[%s11892_s23 + $0x78] sm:$0xff]   ;;  %v11005_v34 = vld [vmem:[%s11937_s13 + $0x8] sm:$0xff]   ;;  %v11008_v36 = vld [vmem:[%s11937_s13 + $0x50] sm:$0xff]  }
  0xaf   : > { %v11009_v37 = vld [vmem:[%s11937_s13 + $0x18] sm:$0xff]   ;;  %v11012_v39 = vld [vmem:[%s11937_s13 + $0x60] sm:$0xff]   ;;  %v11013_v41 = vld [vmem:[%s11937_s13 + $0x28] sm:$0xff]  }
  0xb0   : > { %v11010_v38 = vld [vmem:[%s11937_s13 + $0x58] sm:$0xff]   ;;  %v11011_v40 = vld [vmem:[%s11937_s13 + $0x20] sm:$0xff]   ;;  %v11014_v42 = vld [vmem:[%s11937_s13 + $0x68] sm:$0xff]  }
  0xb1   : > { %v11016_v43 = vld [vmem:[%s11937_s13 + $0x70] sm:$0xff]   ;;  %v11017_v45 = vld [vmem:[%s11937_s13 + $0x38] sm:$0xff]   ;;  %v11020_v47 = vld [vmem:[%s11892_s23 + $0xc0] sm:$0xff]  }
  0xb2   : > { %10075 = vmatmul.mubr.msk.bf16.gmra.mrb[4].mxu0 %vm2483_vm2, %v10983_v12  ;;  %10083 = vmatmul.mubr.msk.bf16.gmra.mrb[4].mxu1 %vm2483_vm2, %v10984_v13  ;;  %v11015_v44 = vld [vmem:[%s11937_s13 + $0x30] sm:$0xff]   ;;  %v11018_v46 = vld [vmem:[%s11937_s13 + $0x78] sm:$0xff]   ;;  %v11019_v48 = vld [vmem:[%s11892_s23 + $0x80] sm:$0xff]  }
  0xb3   : > { %10126 = vmatprep.mubr.msk.bf16.mxu0 %vm2483_vm2, %v10987_v14  ;;  %10088 = vmatprep.mubr.msk.bf16.mxu1 %vm2483_vm2, %v10985_v15  ;;  %v11022_v49 = vld [vmem:[%s11892_s23 + $0xc8] sm:$0xff]   ;;  %v11023_v51 = vld [vmem:[%s11892_s23 + $0x90] sm:$0xff]   ;;  %v11025_v53 = vld [vmem:[%s11892_s23 + $0x98] sm:$0xff]  }
  0xb4   : > { %v11021_v50 = vld [vmem:[%s11892_s23 + $0x88] sm:$0xff]   ;;  %v11024_v52 = vld [vmem:[%s11892_s23 + $0xd0] sm:$0xff]   ;;  %v11026_v54 = vld [vmem:[%s11892_s23 + $0xd8] sm:$0xff]  }
  0xb5   : > { %v11028_v55 = vld [vmem:[%s11892_s23 + $0xe0] sm:$0xff]   ;;  %v11029_v57 = vld [vmem:[%s11892_s23 + $0xa8] sm:$0xff]   ;;  %v11032_v59 = vld [vmem:[%s11892_s23 + $0xf0] sm:$0xff]  }
  0xb6   : > { %v11027_v56 = vld [vmem:[%s11892_s23 + $0xa0] sm:$0xff]   ;;  %v11030_v58 = vld [vmem:[%s11892_s23 + $0xe8] sm:$0xff]   ;;  %v11031_v60 = vld [vmem:[%s11892_s23 + $0xb0] sm:$0xff]  }
  0xb7   : > { %v11033_v61 = vld [vmem:[%s11892_s23 + $0xb8] sm:$0xff]   ;;  %v11036_v63 = vld [vmem:[%s11937_s13 + $0xc0] sm:$0xff]   ;;  %v11038_v1 = vld [vmem:[%s11937_s13 + $0xc8] sm:$0xff]  }
  0xb8   : > { %v11034_v62 = vld [vmem:[%s11892_s23 + $0xf8] sm:$0xff]   ;;  %v11035_v0 = vld [vmem:[%s11937_s13 + $0x80] sm:$0xff]   ;;  %v11037_v2 = vld [vmem:[%s11937_s13 + $0x88] sm:$0xff]  }
  0xb9   : > { %v11039_v3 = vld [vmem:[%s11937_s13 + $0x90] sm:$0xff]   ;;  %v11041_v6 = vld [vmem:[%s11937_s13 + $0x98] sm:$0xff]   ;;  %v11044_v9 = vld [vmem:[%s11937_s13 + $0xe0] sm:$0xff]  }
  0xba   : > { %10127 = vmatmul.mubr.msk.bf16.vlgmr.msra.gmra.mrb[8].mxu0 %vm2483_vm2, %v10989_v16  ;;  %10089 = vmatmul.mubr.msk.bf16.vlgmr.msra.gmra.mrb[8].mxu1 %vm2483_vm2, %v10988_v17  ;;  %v11040_v5 = vld [vmem:[%s11937_s13 + $0xd0] sm:$0xff]   ;;  %v11042_v8 = vld [vmem:[%s11937_s13 + $0xd8] sm:$0xff]   ;;  %v11043_v10 = vld [vmem:[%s11937_s13 + $0xa0] sm:$0xff]  }
  0xbb   : > { %10143 = vmatpush3.bf16.msra.mxu0 %v11904_v7  ;;  %10105 = vmatpush3.bf16.msra.mxu1 %v11904_v7  ;;  %v11045_v11 = vld [vmem:[%s11937_s13 + $0xa8] sm:$0xff]   ;;  %v11047_v13 = vld [vmem:[%s11937_s13 + $0xb0] sm:$0xff]   ;;  %v11050_v15 = vld [vmem:[%s11937_s13 + $0xf8] sm:$0xff]  }
  0xbc   : > { %10092 = vmatprep.mubr.msk.bf16.mxu1 %vm2483_vm2, %v10990_v19  ;;  %10130 = vmatprep.mubr.msk.bf16.mxu0 %vm2483_vm2, %v10991_v20  ;;  %v11046_v12 = vld [vmem:[%s11937_s13 + $0xe8] sm:$0xff]   ;;  %v11048_v14 = vld [vmem:[%s11937_s13 + $0xf0] sm:$0xff]   ;;  %v11049_v16 = vld [vmem:[%s11937_s13 + $0xb8] sm:$0xff]  }
  0xbd   : > { %10106 = vmatprep.subr.bf16.mxu1 %v11927_v18  ;;  %10144 = vmatprep.subr.bf16.mxu0 %v11927_v18  ;;  %v11052_v17 = vld [vmem:[%s11892_s23 + $0x140] sm:$0xff]   ;;  %v11054_v20 = vld [vmem:[%s11892_s23 + $0x148] sm:$0xff]  }
  0xbe   : > { %v11051_v19 = vld [vmem:[%s11892_s23 + $0x100] sm:$0xff]  }
  0xbf   : > { %10145 = vmatpush3.bf16.msra.mxu0 %v11927_v18  ;;  %10107 = vmatpush3.bf16.msra.mxu1 %v11927_v18 }
  0xc0   : > { %10200 = vmatprep.subr.bf16.mxu0 %v11884_v4  ;;  %10162 = vmatprep.subr.bf16.mxu1 %v11884_v4 }
  0xc2   : > { %10131 = vmatmul.mubr.msk.bf16.gmra.mrb[12].mxu0 %vm2483_vm2, %v10993_v22  ;;  %10093 = vmatmul.mubr.msk.bf16.gmra.mrb[12].mxu1 %vm2483_vm2, %v10992_v21  ;;  %v11053_v21 = vld [vmem:[%s11892_s23 + $0x108] sm:$0xff]   ;;  %v11055_v22 = vld [vmem:[%s11892_s23 + $0x110] sm:$0xff]  }
  0xc3   : > { %10134 = vmatprep.mubr.msk.bf16.mxu0 %vm2483_vm2, %v10996_v23  ;;  %10096 = vmatprep.mubr.msk.bf16.mxu1 %vm2483_vm2, %v10994_v24  ;;  %v11056_v23 = vld [vmem:[%s11892_s23 + $0x150] sm:$0xff]   ;;  %v11058_v24 = vld [vmem:[%s11892_s23 + $0x158] sm:$0xff]  }
  0xca   : > { %10135 = vmatmul.mubr.msk.bf16.gmra.mrb[16].mxu0 %vm2483_vm2, %v10998_v26  ;;  %10097 = vmatmul.mubr.msk.bf16.gmra.mrb[16].mxu1 %vm2483_vm2, %v10997_v25  ;;  %v11057_v25 = vld [vmem:[%s11892_s23 + $0x118] sm:$0xff]   ;;  %v11060_v26 = vld [vmem:[%s11892_s23 + $0x160] sm:$0xff]  }
  0xcb   : > { %10138 = vmatprep.mubr.msk.bf16.mxu0 %vm2483_vm2, %v11000_v27  ;;  %10100 = vmatprep.mubr.msk.bf16.mxu1 %vm2483_vm2, %v10999_v28  ;;  %v11059_v27 = vld [vmem:[%s11892_s23 + $0x120] sm:$0xff]   ;;  %v11061_v28 = vld [vmem:[%s11892_s23 + $0x128] sm:$0xff]  }
  0xd2   : > { %10139 = vmatmul.mubr.msk.bf16.gmra.mrb[20].mxu0 %vm2483_vm2, %v11002_v30  ;;  %10101 = vmatmul.mubr.msk.bf16.gmra.mrb[20].mxu1 %vm2483_vm2, %v11001_v29  ;;  %v11063_v29 = vld [vmem:[%s11892_s23 + $0x130] sm:$0xff]   ;;  %v11066_v30 = vld [vmem:[%s11892_s23 + $0x178] sm:$0xff]  }
  0xd3   : > { %10146 = vmatprep.mubr.msk.bf16.mxu0 %vm2857_vm3, %v11004_v31  ;;  %10108 = vmatprep.mubr.msk.bf16.mxu1 %vm2857_vm3, %v11003_v32  ;;  %v11065_v31 = vld [vmem:[%s11892_s23 + $0x138] sm:$0xff]   ;;  %v11068_v32 = vld [vmem:[%s11937_s13 + $0x140] sm:$0xff]  }
  0xda   : > { %10147 = vmatmul.mubr.msk.bf16.vlgmr.msra.gmra.mrb[8].mxu0 %vm2857_vm3, %v11006_v33  ;;  %10109 = vmatmul.mubr.msk.bf16.vlgmr.msra.gmra.mrb[8].mxu1 %vm2857_vm3, %v11005_v34  ;;  %v11067_v33 = vld [vmem:[%s11937_s13 + $0x100] sm:$0xff]   ;;  %v11070_v34 = vld [vmem:[%s11937_s13 + $0x148] sm:$0xff]  }
  0xdb   : > { %10201 = vmatpush3.bf16.msra.mxu0 %v11884_v4  ;;  %10163 = vmatpush3.bf16.msra.mxu1 %v11884_v4 }
  0xdc   : > { %10112 = vmatprep.mubr.msk.bf16.mxu1 %vm2857_vm3, %v11007_v35  ;;  %10150 = vmatprep.mubr.msk.bf16.mxu0 %vm2857_vm3, %v11008_v36  ;;  %v11069_v35 = vld [vmem:[%s11937_s13 + $0x108] sm:$0xff]   ;;  %v11071_v36 = vld [vmem:[%s11937_s13 + $0x110] sm:$0xff]  }
  0xdd   : > { %10180 = vmatprep.subr.bf16.mxu1 %v11904_v7  ;;  %10218 = vmatprep.subr.bf16.mxu0 %v11904_v7 }
  0xe2   : > { %10151 = vmatmul.mubr.msk.bf16.gmra.mrb[12].mxu0 %vm2857_vm3, %v11010_v38  ;;  %10113 = vmatmul.mubr.msk.bf16.gmra.mrb[12].mxu1 %vm2857_vm3, %v11009_v37  ;;  %v11072_v37 = vld [vmem:[%s11937_s13 + $0x150] sm:$0xff]   ;;  %v11074_v38 = vld [vmem:[%s11937_s13 + $0x158] sm:$0xff]  }
  0xe3   : > { %10154 = vmatprep.mubr.msk.bf16.mxu0 %vm2857_vm3, %v11012_v39  ;;  %10116 = vmatprep.mubr.msk.bf16.mxu1 %vm2857_vm3, %v11011_v40  ;;  %v11073_v39 = vld [vmem:[%s11937_s13 + $0x118] sm:$0xff]   ;;  %v11076_v40 = vld [vmem:[%s11937_s13 + $0x160] sm:$0xff]  }
  0xea   : > { %10155 = vmatmul.mubr.msk.bf16.gmra.mrb[16].mxu0 %vm2857_vm3, %v11014_v42  ;;  %10117 = vmatmul.mubr.msk.bf16.gmra.mrb[16].mxu1 %vm2857_vm3, %v11013_v41  ;;  %v12138_v41 = vld [vmem:[%s13566_s4] sm:$0xff]  }
  0xeb   : > { %10158 = vmatprep.mubr.msk.bf16.mxu0 %vm2857_vm3, %v11016_v43  ;;  %10120 = vmatprep.mubr.msk.bf16.mxu1 %vm2857_vm3, %v11015_v44  ;;  %v11075_v42 = vld [vmem:[%s11937_s13 + $0x120] sm:$0xff]   ;;  %v11078_v43 = vld [vmem:[%s11937_s13 + $0x168] sm:$0xff]  }
  0xec   : > { %v11077_v44 = vld [vmem:[%s11937_s13 + $0x128] sm:$0xff]  }
  0xf2   : > { %10159 = vmatmul.mubr.msk.bf16.gmra.mrb[20].mxu0 %vm2857_vm3, %v11018_v46  ;;  %10121 = vmatmul.mubr.msk.bf16.gmra.mrb[20].mxu1 %vm2857_vm3, %v11017_v45  ;;  %v11080_v45 = vld [vmem:[%s11937_s13 + $0x170] sm:$0xff]  }
  0xf3   : > { %10202 = vmatprep.mubr.msk.bf16.mxu0 %vm2483_vm2, %v11020_v47  ;;  %10164 = vmatprep.mubr.msk.bf16.mxu1 %vm2483_vm2, %v11019_v48  ;;  %v11079_v46 = vld [vmem:[%s11937_s13 + $0x130] sm:$0xff]   ;;  %v11082_v47 = vld [vmem:[%s11937_s13 + $0x178] sm:$0xff]  }
  0xf4   : > { %v11081_v48 = vld [vmem:[%s11937_s13 + $0x138] sm:$0xff]  }
  0xfa   : > { %10203 = vmatmul.mubr.msk.bf16.vlgmr.msra.gmra.mrb[24].mxu0 %vm2483_vm2, %v11022_v49  ;;  %10165 = vmatmul.mubr.msk.bf16.vlgmr.msra.gmra.mrb[24].mxu1 %vm2483_vm2, %v11021_v50  ;;  %v11084_v49 = vld [vmem:[%s11892_s23 + $0x1c0] sm:$0xff]  }
  0xfb   : > { %10219 = vmatpush3.bf16.msra.mxu0 %v11904_v7  ;;  %10181 = vmatpush3.bf16.msra.mxu1 %v11904_v7  ;;  %v11083_v50 = vld [vmem:[%s11892_s23 + $0x180] sm:$0xff]  }
  0xfc   : > { %10168 = vmatprep.mubr.msk.bf16.mxu1 %vm2483_vm2, %v11023_v51  ;;  %10206 = vmatprep.mubr.msk.bf16.mxu0 %vm2483_vm2, %v11024_v52  ;;  %v11086_v51 = vld [vmem:[%s11892_s23 + $0x1c8] sm:$0xff]  }
  0xfd   : > { %10182 = vmatprep.subr.bf16.mxu1 %v11927_v18  ;;  %10220 = vmatprep.subr.bf16.mxu0 %v11927_v18  ;;  %v11085_v52 = vld [vmem:[%s11892_s23 + $0x188] sm:$0xff]  }
  0xff   : > { %10221 = vmatpush3.bf16.msra.mxu0 %v11927_v18  ;;  %10183 = vmatpush3.bf16.msra.mxu1 %v11927_v18 }
 0x100   : > { %10276 = vmatprep.subr.bf16.mxu0 %v11884_v4  ;;  %10238 = vmatprep.subr.bf16.mxu1 %v11884_v4 }
 0x102   : > { %10207 = vmatmul.mubr.msk.bf16.gmra.mrb[28].mxu0 %vm2483_vm2, %v11026_v54  ;;  %10169 = vmatmul.mubr.msk.bf16.gmra.mrb[28].mxu1 %vm2483_vm2, %v11025_v53  ;;  %v11087_v53 = vld [vmem:[%s11892_s23 + $0x190] sm:$0xff]  }
 0x103   : > { %10210 = vmatprep.mubr.msk.bf16.mxu0 %vm2483_vm2, %v11028_v55  ;;  %10172 = vmatprep.mubr.msk.bf16.mxu1 %vm2483_vm2, %v11027_v56  ;;  %v11088_v54 = vld [vmem:[%s11892_s23 + $0x1d0] sm:$0xff]   ;;  %v11090_v55 = vld [vmem:[%s11892_s23 + $0x1d8] sm:$0xff]  }
 0x10a   : > { %10211 = vmatmul.mubr.msk.bf16.gmra.mrb[32].mxu0 %vm2483_vm2, %v11030_v58  ;;  %10173 = vmatmul.mubr.msk.bf16.gmra.mrb[32].mxu1 %vm2483_vm2, %v11029_v57  ;;  %v11089_v57 = vld [vmem:[%s11892_s23 + $0x198] sm:$0xff]   ;;  %v12180_v58 = vld [vmem:[%s13566_s4 + $0x8] sm:$0xff]  }
 0x10b   : > { %10214 = vmatprep.mubr.msk.bf16.mxu0 %vm2483_vm2, %v11032_v59  ;;  %10176 = vmatprep.mubr.msk.bf16.mxu1 %vm2483_vm2, %v11031_v60  ;;  %v11092_v59 = vld [vmem:[%s11892_s23 + $0x1e0] sm:$0xff]  }
 0x112   : > { %10215 = vmatmul.mubr.msk.bf16.gmra.mrb[36].mxu0 %vm2483_vm2, %v11034_v62  ;;  %10177 = vmatmul.mubr.msk.bf16.gmra.mrb[36].mxu1 %vm2483_vm2, %v11033_v61 }
 0x113   : > { %10222 = vmatprep.mubr.msk.bf16.mxu0 %vm2857_vm3, %v11036_v63  ;;  %10184 = vmatprep.mubr.msk.bf16.mxu1 %vm2857_vm3, %v11035_v0 }
 0x11a   : > { %10223 = vmatmul.mubr.msk.bf16.vlgmr.msra.gmra.mrb[24].mxu0 %vm2857_vm3, %v11038_v1  ;;  %10185 = vmatmul.mubr.msk.bf16.vlgmr.msra.gmra.mrb[24].mxu1 %vm2857_vm3, %v11037_v2  ;;  %v11091_v2 = vld [vmem:[%s11892_s23 + $0x1a0] sm:$0xff]  }
 0x11b   : > { %10277 = vmatpush3.bf16.msra.mxu0 %v11884_v4  ;;  %10239 = vmatpush3.bf16.msra.mxu1 %v11884_v4 }
 0x11c   : > { %10188 = vmatprep.mubr.msk.bf16.mxu1 %vm2857_vm3, %v11039_v3  ;;  %10226 = vmatprep.mubr.msk.bf16.mxu0 %vm2857_vm3, %v11040_v5  ;;  %v11094_v5 = vld [vmem:[%s11892_s23 + $0x1e8] sm:$0xff]  }
 0x11d   : > { %10256 = vmatprep.subr.bf16.mxu1 %v11904_v7  ;;  %10294 = vmatprep.subr.bf16.mxu0 %v11904_v7 }
 0x122   : > { %10227 = vmatmul.mubr.msk.bf16.gmra.mrb[28].mxu0 %vm2857_vm3, %v11042_v8  ;;  %10189 = vmatmul.mubr.msk.bf16.gmra.mrb[28].mxu1 %vm2857_vm3, %v11041_v6  ;;  %v11093_v8 = vld [vmem:[%s11892_s23 + $0x1a8] sm:$0xff]  }
 0x123   : > { %10230 = vmatprep.mubr.msk.bf16.mxu0 %vm2857_vm3, %v11044_v9  ;;  %10192 = vmatprep.mubr.msk.bf16.mxu1 %vm2857_vm3, %v11043_v10  ;;  %v11096_v9 = vld [vmem:[%s11892_s23 + $0x1f0] sm:$0xff]  }
 0x12a   : > { %10231 = vmatmul.mubr.msk.bf16.gmra.mrb[32].mxu0 %vm2857_vm3, %v11046_v12  ;;  %10193 = vmatmul.mubr.msk.bf16.gmra.mrb[32].mxu1 %vm2857_vm3, %v11045_v11 }
 0x12b   : > { %10234 = vmatprep.mubr.msk.bf16.mxu0 %vm2857_vm3, %v11048_v14  ;;  %10196 = vmatprep.mubr.msk.bf16.mxu1 %vm2857_vm3, %v11047_v13 }
 0x132   : > { %10235 = vmatmul.mubr.msk.bf16.gmra.mrb[36].mxu0 %vm2857_vm3, %v11050_v15  ;;  %10197 = vmatmul.mubr.msk.bf16.gmra.mrb[36].mxu1 %vm2857_vm3, %v11049_v16  ;;  %v11095_v16 = vld [vmem:[%s11892_s23 + $0x1b0] sm:$0xff]  }
 0x133   : > { %10278 = vmatprep.mubr.msk.bf16.mxu0 %vm2483_vm2, %v11052_v17  ;;  %10240 = vmatprep.mubr.msk.bf16.mxu1 %vm2483_vm2, %v11051_v19  ;;  %v11098_v19 = vld [vmem:[%s11892_s23 + $0x1f8] sm:$0xff]  }
 0x13a   : > { %10279 = vmatmul.mubr.msk.bf16.vlgmr.msra.gmra.mrb[40].mxu0 %vm2483_vm2, %v11054_v20  ;;  %10241 = vmatmul.mubr.msk.bf16.vlgmr.msra.gmra.mrb[40].mxu1 %vm2483_vm2, %v11053_v21  ;;  %v11097_v20 = vld [vmem:[%s11892_s23 + $0x1b8] sm:$0xff]   ;;  %v11100_v21 = vld [vmem:[%s11937_s13 + $0x1c0] sm:$0xff]  }
 0x13b   : > { %10295 = vmatpush3.bf16.msra.mxu0 %v11904_v7  ;;  %10257 = vmatpush3.bf16.msra.mxu1 %v11904_v7  ;;  %v11062_v7 = vld [vmem:[%s11892_s23 + $0x168] sm:$0xff]  }
 0x13c   : > { %10244 = vmatprep.mubr.msk.bf16.mxu1 %vm2483_vm2, %v11055_v22  ;;  %10282 = vmatprep.mubr.msk.bf16.mxu0 %vm2483_vm2, %v11056_v23  ;;  %v11099_v22 = vld [vmem:[%s11937_s13 + $0x180] sm:$0xff]   ;;  %v11102_v23 = vld [vmem:[%s11937_s13 + $0x1c8] sm:$0xff]  }
 0x13d   : > { %10258 = vmatprep.subr.bf16.mxu1 %v11927_v18  ;;  %10296 = vmatprep.subr.bf16.mxu0 %v11927_v18 }
 0x13f   : > { %10297 = vmatpush3.bf16.msra.mxu0 %v11927_v18  ;;  %10259 = vmatpush3.bf16.msra.mxu1 %v11927_v18  ;;  %v11064_v18 = vld [vmem:[%s11892_s23 + $0x170] sm:$0xff]  }
 0x140   : > { %10352 = vmatprep.subr.bf16.mxu0 %v11884_v4  ;;  %10314 = vmatprep.subr.bf16.mxu1 %v11884_v4 }
 0x142   : > { %10283 = vmatmul.mubr.msk.bf16.gmra.mrb[44].mxu0 %vm2483_vm2, %v11058_v24  ;;  %10245 = vmatmul.mubr.msk.bf16.gmra.mrb[44].mxu1 %vm2483_vm2, %v11057_v25  ;;  %v11101_v24 = vld [vmem:[%s11937_s13 + $0x188] sm:$0xff]   ;;  %v11103_v25 = vld [vmem:[%s11937_s13 + $0x190] sm:$0xff]  }
 0x143   : > { %10286 = vmatprep.mubr.msk.bf16.mxu0 %vm2483_vm2, %v11060_v26  ;;  %10248 = vmatprep.mubr.msk.bf16.mxu1 %vm2483_vm2, %v11059_v27  ;;  %v11104_v26 = vld [vmem:[%s11937_s13 + $0x1d0] sm:$0xff]   ;;  %v11106_v27 = vld [vmem:[%s11937_s13 + $0x1d8] sm:$0xff]  }
 0x14a   : > { %10287 = vmatmul.mubr.msk.bf16.gmra.mrb[48].mxu0 %vm2483_vm2, %v11062_v7  ;;  %10249 = vmatmul.mubr.msk.bf16.gmra.mrb[48].mxu1 %vm2483_vm2, %v11061_v28  ;;  %v11105_v7 = vld [vmem:[%s11937_s13 + $0x198] sm:$0xff]   ;;  %v11108_v28 = vld [vmem:[%s11937_s13 + $0x1e0] sm:$0xff]  }
 0x14b   : > { %10290 = vmatprep.mubr.msk.bf16.mxu0 %vm2483_vm2, %v11064_v18  ;;  %10252 = vmatprep.mubr.msk.bf16.mxu1 %vm2483_vm2, %v11063_v29  ;;  %v11107_v18 = vld [vmem:[%s11937_s13 + $0x1a0] sm:$0xff]   ;;  %v11110_v29 = vld [vmem:[%s11937_s13 + $0x1e8] sm:$0xff]  }
 0x152   : > { %10291 = vmatmul.mubr.msk.bf16.gmra.mrb[52].mxu0 %vm2483_vm2, %v11066_v30  ;;  %10253 = vmatmul.mubr.msk.bf16.gmra.mrb[52].mxu1 %vm2483_vm2, %v11065_v31  ;;  %v11109_v30 = vld [vmem:[%s11937_s13 + $0x1a8] sm:$0xff]   ;;  %v11112_v31 = vld [vmem:[%s11937_s13 + $0x1f0] sm:$0xff]  }
 0x153   : > { %10298 = vmatprep.mubr.msk.bf16.mxu0 %vm2857_vm3, %v11068_v32  ;;  %10260 = vmatprep.mubr.msk.bf16.mxu1 %vm2857_vm3, %v11067_v33  ;;  %v11111_v32 = vld [vmem:[%s11937_s13 + $0x1b0] sm:$0xff]  }
 0x15a   : > { %10299 = vmatmul.mubr.msk.bf16.vlgmr.msra.gmra.mrb[40].mxu0 %vm2857_vm3, %v11070_v34  ;;  %10261 = vmatmul.mubr.msk.bf16.vlgmr.msra.gmra.mrb[40].mxu1 %vm2857_vm3, %v11069_v35 }
 0x15b   : > { %10353 = vmatpush3.bf16.msra.mxu0 %v11884_v4  ;;  %10315 = vmatpush3.bf16.msra.mxu1 %v11884_v4 }
 0x15c   : > { %10264 = vmatprep.mubr.msk.bf16.mxu1 %vm2857_vm3, %v11071_v36  ;;  %10302 = vmatprep.mubr.msk.bf16.mxu0 %vm2857_vm3, %v11072_v37  ;;  %v11114_v36 = vld [vmem:[%s11937_s13 + $0x1f8] sm:$0xff]  }
 0x15d   : > { %10332 = vmatprep.subr.bf16.mxu1 %v12138_v41  ;;  %10370 = vmatprep.subr.bf16.mxu0 %v12138_v41 }
 0x162   : > { %10303 = vmatmul.mubr.msk.bf16.gmra.mrb[44].mxu0 %vm2857_vm3, %v11074_v38  ;;  %10265 = vmatmul.mubr.msk.bf16.gmra.mrb[44].mxu1 %vm2857_vm3, %v11073_v39 }
 0x163   : > { %10306 = vmatprep.mubr.msk.bf16.mxu0 %vm2857_vm3, %v11076_v40  ;;  %10268 = vmatprep.mubr.msk.bf16.mxu1 %vm2857_vm3, %v11075_v42  ;;  %v11113_v40 = vld [vmem:[%s11937_s13 + $0x1b8] sm:$0xff]   ;;  %v11116_v42 = vld [vmem:[%s11892_s23 + $0x240] sm:$0xff]  }
 0x16a   : > { %10307 = vmatmul.mubr.msk.bf16.gmra.mrb[48].mxu0 %vm2857_vm3, %v11078_v43  ;;  %10269 = vmatmul.mubr.msk.bf16.gmra.mrb[48].mxu1 %vm2857_vm3, %v11077_v44 }
 0x16b   : > { %10310 = vmatprep.mubr.msk.bf16.mxu0 %vm2857_vm3, %v11080_v45  ;;  %10272 = vmatprep.mubr.msk.bf16.mxu1 %vm2857_vm3, %v11079_v46  ;;  %v11115_v46 = vld [vmem:[%s11892_s23 + $0x200] sm:$0xff]  }
 0x172   : > { %10311 = vmatmul.mubr.msk.bf16.gmra.mrb[52].mxu0 %vm2857_vm3, %v11082_v47  ;;  %10273 = vmatmul.mubr.msk.bf16.gmra.mrb[52].mxu1 %vm2857_vm3, %v11081_v48  ;;  %v11145_v47 = vld [vmem:[%s11937_s13 + $0x238] sm:$0xff]  }
 0x173   : > { %10354 = vmatprep.mubr.msk.bf16.mxu0 %vm2483_vm2, %v11084_v49  ;;  %10316 = vmatprep.mubr.msk.bf16.mxu1 %vm2483_vm2, %v11083_v50 }
 0x17a   : > { %10355 = vmatmul.mubr.msk.bf16.vlgmr.msra.gmra.mrb[56].mxu0 %vm2483_vm2, %v11086_v51  ;;  %10317 = vmatmul.mubr.msk.bf16.vlgmr.msra.gmra.mrb[56].mxu1 %vm2483_vm2, %v11085_v52 }
 0x17b   : > { %10371 = vmatpush3.bf16.msra.mxu0 %v12138_v41  ;;  %10333 = vmatpush3.bf16.msra.mxu1 %v12138_v41 }
 0x17c   : > { %10320 = vmatprep.mubr.msk.bf16.mxu1 %vm2483_vm2, %v11087_v53  ;;  %10358 = vmatprep.mubr.msk.bf16.mxu0 %vm2483_vm2, %v11088_v54  ;;  %v11118_v53 = vld [vmem:[%s11892_s23 + $0x248] sm:$0xff]   ;;  %v11132_v54 = vld [vmem:[%s11937_s13 + $0x240] sm:$0xff]  }
 0x17d   : > { %v12173_v56 = vpop.f32.mrb[0].mxu0  ;;  %10334 = vmatprep.subr.bf16.mxu1 %v12180_v58  ;;  %v12184_v60 = vpop.f32.mrb[0].mxu1  ;;  %10372 = vmatprep.subr.bf16.mxu0 %v12180_v58 }
 0x17e   : > { %v12186_v61 = vpop.f32.mrb[1].mxu0  ;;  %v12189_v62 = vpop.f32.mrb[1].mxu1 }
 0x17f   : > { %v12191_v63 = vpop.f32.mrb[2].mxu0  ;;  %10373 = vmatpush3.bf16.msra.mxu0 %v12180_v58  ;;  %v12194_v0 = vpop.f32.mrb[2].mxu1  ;;  %10335 = vmatpush3.bf16.msra.mxu1 %v12180_v58 }
 0x180   : > { %v12196_v1 = vpop.f32.mrb[3].mxu0  ;;  %10428 = vmatprep.subr.bf16.mxu0 %v11884_v4  ;;  %v12201_v3 = vpop.f32.mrb[3].mxu1  ;;  %10390 = vmatprep.subr.bf16.mxu1 %v11884_v4 }
 0x182   : > { %10359 = vmatmul.mubr.msk.bf16.gmra.mrb[60].mxu0 %vm2483_vm2, %v11090_v55  ;;  %10321 = vmatmul.mubr.msk.bf16.gmra.mrb[60].mxu1 %vm2483_vm2, %v11089_v57 }
 0x183   : > { %10362 = vmatprep.mubr.msk.bf16.mxu0 %vm2483_vm2, %v11092_v59  ;;  %10324 = vmatprep.mubr.msk.bf16.mxu1 %vm2483_vm2, %v11091_v2  ;;  %v11117_v59 = vld [vmem:[%s11892_s23 + $0x208] sm:$0xff]   ;;  %v11129_v2 = vld [vmem:[%s11892_s23 + $0x238] sm:$0xff]  }
 0x185   : > { %v12209_v6 = vpop.f32.mrb[4].mxu0  ;;  %v12213_v10 = vpop.f32.mrb[4].mxu1 }
 0x186   : > { %v12215_v11 = vpop.f32.mrb[5].mxu0  ;;  %v12217_v12 = vpop.f32.mrb[5].mxu1 }
 0x187   : > { %v12219_v13 = vpop.f32.mrb[6].mxu0  ;;  %v12221_v14 = vpop.f32.mrb[6].mxu1 }
 0x188   : > { %13570 = vst [vmem:[#allocation4_spill] sm:$0xff] %v12221_v14  ;;  %v12223_v15 = vpop.f32.mrb[7].mxu0  ;;  %v12226_v17 = vpop.f32.mrb[7].mxu1  ;;  %v11147_v14 = vld [vmem:[%s11892_s23 + $0x280] sm:$0xff]  }
 0x189   : > { %13571 = vst [vmem:[#allocation5_spill] sm:$0xff] %v12226_v17 }
 0x18a   : > { %10363 = vmatmul.mubr.msk.bf16.gmra.mrb[64].mxu0 %vm2483_vm2, %v11094_v5  ;;  %10325 = vmatmul.mubr.msk.bf16.gmra.mrb[64].mxu1 %vm2483_vm2, %v11093_v8 }
 0x18b   : > { %10366 = vmatprep.mubr.msk.bf16.mxu0 %vm2483_vm2, %v11096_v9  ;;  %10328 = vmatprep.mubr.msk.bf16.mxu1 %vm2483_vm2, %v11095_v16  ;;  %v11119_v9 = vld [vmem:[%s11892_s23 + $0x210] sm:$0xff]  }
 0x192   : > { %10367 = vmatmul.mubr.msk.bf16.gmra.mrb[68].mxu0 %vm2483_vm2, %v11098_v19  ;;  %10329 = vmatmul.mubr.msk.bf16.gmra.mrb[68].mxu1 %vm2483_vm2, %v11097_v20  ;;  %v11120_v20 = vld [vmem:[%s11892_s23 + $0x250] sm:$0xff]  }
 0x193   : > { %10374 = vmatprep.mubr.msk.bf16.mxu0 %vm2857_vm3, %v11100_v21  ;;  %10336 = vmatprep.mubr.msk.bf16.mxu1 %vm2857_vm3, %v11099_v22 }
 0x19a   : > { %10375 = vmatmul.mubr.msk.bf16.vlgmr.msra.gmra.mrb[56].mxu0 %vm2857_vm3, %v11102_v23  ;;  %10337 = vmatmul.mubr.msk.bf16.vlgmr.msra.gmra.mrb[56].mxu1 %vm2857_vm3, %v11101_v24 }
 0x19b   : > { %10429 = vmatpush3.bf16.msra.mxu0 %v11884_v4  ;;  %10391 = vmatpush3.bf16.msra.mxu1 %v11884_v4 }
 0x19c   : > { %10340 = vmatprep.mubr.msk.bf16.mxu1 %vm2857_vm3, %v11103_v25  ;;  %10378 = vmatprep.mubr.msk.bf16.mxu0 %vm2857_vm3, %v11104_v26  ;;  %v11122_v25 = vld [vmem:[%s11892_s23 + $0x258] sm:$0xff]   ;;  %v11127_v26 = vld [vmem:[%s11892_s23 + $0x230] sm:$0xff]  }
 0x19d   : > { %10408 = vmatprep.subr.bf16.mxu1 %v12138_v41  ;;  %10446 = vmatprep.subr.bf16.mxu0 %v12138_v41 }
 0x1a2   : > { %10379 = vmatmul.mubr.msk.bf16.gmra.mrb[60].mxu0 %vm2857_vm3, %v11106_v27  ;;  %10341 = vmatmul.mubr.msk.bf16.gmra.mrb[60].mxu1 %vm2857_vm3, %v11105_v7 }
 0x1a3   : > { %10382 = vmatprep.mubr.msk.bf16.mxu0 %vm2857_vm3, %v11108_v28  ;;  %10344 = vmatprep.mubr.msk.bf16.mxu1 %vm2857_vm3, %v11107_v18  ;;  %v11121_v28 = vld [vmem:[%s11892_s23 + $0x218] sm:$0xff]   ;;  %v11124_v18 = vld [vmem:[%s11892_s23 + $0x260] sm:$0xff]  }
 0x1aa   : > { %10383 = vmatmul.mubr.msk.bf16.gmra.mrb[64].mxu0 %vm2857_vm3, %v11110_v29  ;;  %10345 = vmatmul.mubr.msk.bf16.gmra.mrb[64].mxu1 %vm2857_vm3, %v11109_v30 }
 0x1ab   : > { %10386 = vmatprep.mubr.msk.bf16.mxu0 %vm2857_vm3, %v11112_v31  ;;  %10348 = vmatprep.mubr.msk.bf16.mxu1 %vm2857_vm3, %v11111_v32  ;;  %v11123_v32 = vld [vmem:[%s11892_s23 + $0x220] sm:$0xff]  }
 0x1ad   : > { %v12268_v33 = vpop.f32.mrb[8].mxu0  ;;  %v12270_v34 = vpop.f32.mrb[8].mxu1 }
 0x1ae   : > { %v12272_v35 = vpop.f32.mrb[9].mxu0  ;;  %v3337_v37 = vmax.f32 %v12270_v34, %v12268_v33  ;;  %v12277_v38 = vpop.f32.mrb[9].mxu1  ;;  %v11155_v33 = vld [vmem:[%s11892_s23 + $0x2a0] sm:$0xff]  }
 0x1af   : > { %v12279_v39 = vpop.f32.mrb[10].mxu0  ;;  %v3335_v43 = vmax.f32 %v12277_v38, %v12272_v35  ;;  %v12285_v44 = vpop.f32.mrb[10].mxu1  ;;  %v11151_v35 = vld [vmem:[%s11892_s23 + $0x290] sm:$0xff]  }
 0x1b0   : > { %v12287_v45 = vpop.f32.mrb[11].mxu0  ;;  %v12292_v48 = vpop.f32.mrb[11].mxu1  ;;  %v13572_v34 = vmax.f32 %v12285_v44, %v12279_v39 }
 0x1b1   : > { %v13573_v38 = vmax.f32 %v12292_v48, %v12287_v45 }
 0x1b2   : > { %10387 = vmatmul.mubr.msk.bf16.gmra.mrb[68].mxu0 %vm2857_vm3, %v11114_v36  ;;  %10349 = vmatmul.mubr.msk.bf16.gmra.mrb[68].mxu1 %vm2857_vm3, %v11113_v40 }
 0x1b3   : > { %10430 = vmatprep.mubr.msk.bf16.mxu0 %vm2483_vm2, %v11116_v42  ;;  %10392 = vmatprep.mubr.msk.bf16.mxu1 %vm2483_vm2, %v11115_v46 }
 0x1b5   : > { %v12300_v50 = vpop.f32.mrb[12].mxu0  ;;  %v12302_v51 = vpop.f32.mrb[12].mxu1 }
 0x1b6   : > { %v12304_v52 = vpop.f32.mrb[13].mxu0  ;;  %v12309_v55 = vpop.f32.mrb[13].mxu1 }
 0x1b7   : > { %v12311_v57 = vpop.f32.mrb[14].mxu0  ;;  %v12316_v5 = vpop.f32.mrb[14].mxu1 }
 0x1b8   : > { %v12318_v8 = vpop.f32.mrb[15].mxu0  ;;  %v12323_v19 = vpop.f32.mrb[15].mxu1 }
 0x1ba   : > { %10431 = vmatmul.mubr.msk.bf16.vlgmr.msra.gmra.mrb[72].mxu0 %vm2483_vm2, %v11118_v53  ;;  %10393 = vmatmul.mubr.msk.bf16.vlgmr.msra.gmra.mrb[72].mxu1 %vm2483_vm2, %v11117_v59 }
 0x1bb   : > { %10447 = vmatpush3.bf16.msra.mxu0 %v12138_v41  ;;  %10409 = vmatpush3.bf16.msra.mxu1 %v12138_v41 }
 0x1bc   : > { %10396 = vmatprep.mubr.msk.bf16.mxu1 %vm2483_vm2, %v11119_v9  ;;  %10434 = vmatprep.mubr.msk.bf16.mxu0 %vm2483_vm2, %v11120_v20  ;;  %v11126_v9 = vld [vmem:[%s11892_s23 + $0x268] sm:$0xff]   ;;  %v11131_v20 = vld [vmem:[%s11937_s13 + $0x200] sm:$0xff]  }
 0x1bd   : > { %v12333_v22 = vpop.f32.mrb[16].mxu0  ;;  %10410 = vmatprep.subr.bf16.mxu1 %v12180_v58  ;;  %v12337_v23 = vpop.f32.mrb[16].mxu1  ;;  %10448 = vmatprep.subr.bf16.mxu0 %v12180_v58 }
 0x1be   : > { %v12339_v24 = vpop.f32.mrb[17].mxu0  ;;  %v12345_v27 = vpop.f32.mrb[17].mxu1 }
 0x1bf   : > { %v12347_v7 = vpop.f32.mrb[18].mxu0  ;;  %10449 = vmatpush3.bf16.msra.mxu0 %v12180_v58  ;;  %v12354_v30 = vpop.f32.mrb[18].mxu1  ;;  %10411 = vmatpush3.bf16.msra.mxu1 %v12180_v58 }
 0x1c0   : > { %v12356_v31 = vpop.f32.mrb[19].mxu0  ;;  %10504 = vmatprep.subr.bf16.mxu0 %v11884_v4  ;;  %v12363_v40 = vpop.f32.mrb[19].mxu1  ;;  %10466 = vmatprep.subr.bf16.mxu1 %v11884_v4 }
 0x1c2   : > { %10435 = vmatmul.mubr.msk.bf16.gmra.mrb[76].mxu0 %vm2483_vm2, %v11122_v25  ;;  %10397 = vmatmul.mubr.msk.bf16.gmra.mrb[76].mxu1 %vm2483_vm2, %v11121_v28  ;;  %v11125_v28 = vld [vmem:[%s11892_s23 + $0x228] sm:$0xff]  }
 0x1c3   : > { %10438 = vmatprep.mubr.msk.bf16.mxu0 %vm2483_vm2, %v11124_v18  ;;  %10400 = vmatprep.mubr.msk.bf16.mxu1 %vm2483_vm2, %v11123_v32  ;;  %v11128_v18 = vld [vmem:[%s11892_s23 + $0x270] sm:$0xff]   ;;  %v11130_v32 = vld [vmem:[%s11892_s23 + $0x278] sm:$0xff]  }
 0x1c5   : > { %v12372_v46 = vpop.f32.mrb[20].mxu0  ;;  %v12374_v53 = vpop.f32.mrb[20].mxu1 }
 0x1c6   : > { %v12376_v59 = vpop.f32.mrb[21].mxu0  ;;  %v12381_v42 = vpop.f32.mrb[21].mxu1 }
 0x1c7   : > { %v12383_v25 = vpop.f32.mrb[22].mxu0  ;;  %v12389_v36 = vpop.f32.mrb[22].mxu1 }
 0x1c8   : > { %v12391_v29 = vpop.f32.mrb[23].mxu0  ;;  %v12396_v21 = vpop.f32.mrb[23].mxu1 }
 0x1ca   : > { %10439 = vmatmul.mubr.msk.bf16.gmra.mrb[80].mxu0 %vm2483_vm2, %v11126_v9  ;;  %10401 = vmatmul.mubr.msk.bf16.gmra.mrb[80].mxu1 %vm2483_vm2, %v11125_v28  ;;  %v11134_v9 = vld [vmem:[%s11937_s13 + $0x248] sm:$0xff]  }
 0x1cb   : > { %10442 = vmatprep.mubr.msk.bf16.mxu0 %vm2483_vm2, %v11128_v18  ;;  %10404 = vmatprep.mubr.msk.bf16.mxu1 %vm2483_vm2, %v11127_v26  ;;  %v11133_v28 = vld [vmem:[%s11937_s13 + $0x208] sm:$0xff]   ;;  %v11135_v18 = vld [vmem:[%s11937_s13 + $0x210] sm:$0xff]  }
 0x1cc   : > { %v11136_v26 = vld [vmem:[%s11937_s13 + $0x250] sm:$0xff]  }
 0x1d2   : > { %10443 = vmatmul.mubr.msk.bf16.gmra.mrb[84].mxu0 %vm2483_vm2, %v11130_v32  ;;  %10405 = vmatmul.mubr.msk.bf16.gmra.mrb[84].mxu1 %vm2483_vm2, %v11129_v2  ;;  %v11137_v2 = vld [vmem:[%s11937_s13 + $0x218] sm:$0xff]   ;;  %v11139_v32 = vld [vmem:[%s11937_s13 + $0x220] sm:$0xff]  }
 0x1d3   : > { %10450 = vmatprep.mubr.msk.bf16.mxu0 %vm2857_vm3, %v11132_v54  ;;  %10412 = vmatprep.mubr.msk.bf16.mxu1 %vm2857_vm3, %v11131_v20  ;;  %v11138_v54 = vld [vmem:[%s11937_s13 + $0x258] sm:$0xff]   ;;  %v11140_v20 = vld [vmem:[%s11937_s13 + $0x260] sm:$0xff]  }
 0x1da   : > { %10451 = vmatmul.mubr.msk.bf16.vlgmr.msra.gmra.mrb[72].mxu0 %vm2857_vm3, %v11134_v9  ;;  %10413 = vmatmul.mubr.msk.bf16.vlgmr.msra.gmra.mrb[72].mxu1 %vm2857_vm3, %v11133_v28  ;;  %v11142_v9 = vld [vmem:[%s11937_s13 + $0x268] sm:$0xff]  }
 0x1db   : > { %10505 = vmatpush3.bf16.msra.mxu0 %v11884_v4  ;;  %10467 = vmatpush3.bf16.msra.mxu1 %v11884_v4  ;;  %v11141_v28 = vld [vmem:[%s11937_s13 + $0x228] sm:$0xff]  }
 0x1dc   : > { %10416 = vmatprep.mubr.msk.bf16.mxu1 %vm2857_vm3, %v11135_v18  ;;  %10454 = vmatprep.mubr.msk.bf16.mxu0 %vm2857_vm3, %v11136_v26  ;;  %v11144_v18 = vld [vmem:[%s11937_s13 + $0x270] sm:$0xff]  }
 0x1dd   : > { %10484 = vmatprep.subr.bf16.mxu1 %v12138_v41  ;;  %10522 = vmatprep.subr.bf16.mxu0 %v12138_v41  ;;  %v11143_v26 = vld [vmem:[%s11937_s13 + $0x230] sm:$0xff]  }
 0x1e2   : > { %10455 = vmatmul.mubr.msk.bf16.gmra.mrb[76].mxu0 %vm2857_vm3, %v11138_v54  ;;  %10417 = vmatmul.mubr.msk.bf16.gmra.mrb[76].mxu1 %vm2857_vm3, %v11137_v2 }
 0x1e3   : > { %10458 = vmatprep.mubr.msk.bf16.mxu0 %vm2857_vm3, %v11140_v20  ;;  %10420 = vmatprep.mubr.msk.bf16.mxu1 %vm2857_vm3, %v11139_v32  ;;  %v11146_v32 = vld [vmem:[%s11937_s13 + $0x278] sm:$0xff]  }
 0x1ea   : > { %10459 = vmatmul.mubr.msk.bf16.gmra.mrb[80].mxu0 %vm2857_vm3, %v11142_v9  ;;  %10421 = vmatmul.mubr.msk.bf16.gmra.mrb[80].mxu1 %vm2857_vm3, %v11141_v28  ;;  %v11148_v28 = vld [vmem:[%s11892_s23 + $0x2c0] sm:$0xff]  }
 0x1eb   : > { %10462 = vmatprep.mubr.msk.bf16.mxu0 %vm2857_vm3, %v11144_v18  ;;  %10424 = vmatprep.mubr.msk.bf16.mxu1 %vm2857_vm3, %v11143_v26 }
 0x1ed   : > { %v12440_v54 = vpop.f32.mrb[24].mxu0  ;;  %v10186_v2 = vpop.f32.mrb[24].mxu1 }
 0x1ee   : > { %v12442_v20 = vpop.f32.mrb[25].mxu0  ;;  %v12448_v16 = vmax.f32 %v3337_v37, %v10186_v2  ;;  %v3644_v49 = vpop.f32.mrb[25].mxu1 }
 0x1ef   : > { %v12450_v9 = vpop.f32.mrb[26].mxu0  ;;  %v12457_v18 = vmax.f32 %v3335_v43, %v3644_v49  ;;  %v10187_v26 = vpop.f32.mrb[26].mxu1 }
 0x1f0   : > { %v12459_v17 = vpop.f32.mrb[27].mxu0  ;;  %v12467_v37 = vmax.f32 %v13572_v34, %v10187_v26  ;;  %v3647_v2 = vpop.f32.mrb[27].mxu1  ;;  %v13574_v26 = vmax.f32 %v12302_v51, %v12300_v50  ;;  %v13576_v50 = vmax.f32 %v12316_v5, %v12311_v57 }
 0x1f1   : > { %v12474_v43 = vmax.f32 %v13573_v38, %v3647_v2  ;;  %v13575_v38 = vmax.f32 %v12309_v55, %v12304_v52  ;;  %v13577_v55 = vmax.f32 %v12323_v19, %v12318_v8 }
 0x1f2   : > { %10463 = vmatmul.mubr.msk.bf16.gmra.mrb[84].mxu0 %vm2857_vm3, %v11146_v32  ;;  %10425 = vmatmul.mubr.msk.bf16.gmra.mrb[84].mxu1 %vm2857_vm3, %v11145_v47  ;;  %v11150_v32 = vld [vmem:[%s11892_s23 + $0x2c8] sm:$0xff]  }
 0x1f3   : > { %10506 = vmatprep.mubr.msk.bf16.mxu0 %vm2483_vm2, %v11148_v28  ;;  %10468 = vmatprep.mubr.msk.bf16.mxu1 %vm2483_vm2, %v11147_v14  ;;  %v11149_v28 = vld [vmem:[%s11892_s23 + $0x288] sm:$0xff]  }
 0x1f5   : > { %v12484_v44 = vpop.f32.mrb[28].mxu0  ;;  %v10190_v45 = vpop.f32.mrb[28].mxu1 }
 0x1f6   : > { %v12486_v48 = vpop.f32.mrb[29].mxu0  ;;  %v12492_v34 = vmax.f32 %v13574_v26, %v10190_v45  ;;  %v3660_v47 = vpop.f32.mrb[29].mxu1  ;;  %v11152_v26 = vld [vmem:[%s11892_s23 + $0x2d0] sm:$0xff]  }
 0x1f7   : > { %v12494_v2 = vpop.f32.mrb[30].mxu0  ;;  %v12500_v14 = vmax.f32 %v13575_v38, %v3660_v47  ;;  %v10191_v39 = vpop.f32.mrb[30].mxu1 }
 0x1f8   : > { %v12502_v49 = vpop.f32.mrb[31].mxu0  ;;  %v12510_v51 = vmax.f32 %v13576_v50, %v10191_v39  ;;  %v3663_v45 = vpop.f32.mrb[31].mxu1  ;;  %v11154_v39 = vld [vmem:[%s11892_s23 + $0x2d8] sm:$0xff]  }
 0x1f9   : > { %v12518_v47 = vmax.f32 %v13577_v55, %v3663_v45  ;;  %v11153_v45 = vld [vmem:[%s11892_s23 + $0x298] sm:$0xff]   ;;  %v11156_v55 = vld [vmem:[%s11892_s23 + $0x2e0] sm:$0xff]  }
 0x1fa   : > { %10507 = vmatmul.mubr.msk.bf16.vlgmr.msra.gmra.mrb[88].mxu0 %vm2483_vm2, %v11150_v32  ;;  %10469 = vmatmul.mubr.msk.bf16.vlgmr.msra.gmra.mrb[88].mxu1 %vm2483_vm2, %v11149_v28  ;;  %v13578_v32 = vmax.f32 %v12337_v23, %v12333_v22  ;;  %v13580_v23 = vmax.f32 %v12354_v30, %v12347_v7  ;;  %v13583_v30 = vmax.f32 %v12381_v42, %v12376_v59  ;;  %v11179_v42 = vld [vmem:[%s11892_s23 + $0x300] sm:$0xff]  }
 0x1fb   : > { %10523 = vmatpush3.bf16.msra.mxu0 %v12138_v41  ;;  %10485 = vmatpush3.bf16.msra.mxu1 %v12138_v41  ;;  %v13585_v59 = vmax.f32 %v12396_v21, %v12391_v29  ;;  %v11162_v21 = vld [vmem:[%s11892_s23 + $0x2f8] sm:$0xff]  }
 0x1fc   : > { %10472 = vmatprep.mubr.msk.bf16.mxu1 %vm2483_vm2, %v11151_v35  ;;  %10510 = vmatprep.mubr.msk.bf16.mxu0 %vm2483_vm2, %v11152_v26  ;;  %v13579_v26 = vmax.f32 %v12345_v27, %v12339_v24  ;;  %v11161_v29 = vld [vmem:[%s11892_s23 + $0x2b8] sm:$0xff]  }
 0x1fd   : > { %v12529_v5 = vpop.f32.mrb[32].mxu0  ;;  %10486 = vmatprep.subr.bf16.mxu1 %v12180_v58  ;;  %v10194_v8 = vpop.f32.mrb[32].mxu1  ;;  %10524 = vmatprep.subr.bf16.mxu0 %v12180_v58 }
 0x1fe   : > { %v12533_v19 = vpop.f32.mrb[33].mxu0  ;;  %v12540_v28 = vmax.f32 %v13578_v32, %v10194_v8  ;;  %v3676_v50 = vpop.f32.mrb[33].mxu1  ;;  %v13581_v32 = vmax.f32 %v12363_v40, %v12356_v31 }
 0x1ff   : > { %v12542_v35 = vpop.f32.mrb[34].mxu0  ;;  %10525 = vmatpush3.bf16.msra.mxu0 %v12180_v58  ;;  %v12550_v57 = vmax.f32 %v13579_v26, %v3676_v50  ;;  %v10195_v38 = vpop.f32.mrb[34].mxu1  ;;  %10487 = vmatpush3.bf16.msra.mxu1 %v12180_v58  ;;  %v11158_v26 = vld [vmem:[%s11892_s23 + $0x2e8] sm:$0xff]  }
 0x200   : > { %v12552_v52 = vpop.f32.mrb[35].mxu0  ;;  %10580 = vmatprep.subr.bf16.mxu0 %v11884_v4  ;;  %v12562_v8 = vmax.f32 %v13580_v23, %v10195_v38  ;;  %v3679_v24 = vpop.f32.mrb[35].mxu1  ;;  %10542 = vmatprep.subr.bf16.mxu1 %v11884_v4 }
 0x201   : > { %v12570_v50 = vmax.f32 %v13581_v32, %v3679_v24  ;;  %v11160_v32 = vld [vmem:[%s11892_s23 + $0x2f0] sm:$0xff]  }
 0x202   : > { %10511 = vmatmul.mubr.msk.bf16.gmra.mrb[92].mxu0 %vm2483_vm2, %v11154_v39  ;;  %10473 = vmatmul.mubr.msk.bf16.gmra.mrb[92].mxu1 %vm2483_vm2, %v11153_v45  ;;  %v13582_v39 = vmax.f32 %v12374_v53, %v12372_v46  ;;  %v11159_v46 = vld [vmem:[%s11892_s23 + $0x2b0] sm:$0xff]   ;;  %v11187_v53 = vld [vmem:[%s11892_s23 + $0x320] sm:$0xff]  }
 0x203   : > { %10514 = vmatprep.mubr.msk.bf16.mxu0 %vm2483_vm2, %v11156_v55  ;;  %10476 = vmatprep.mubr.msk.bf16.mxu1 %vm2483_vm2, %v11155_v33  ;;  %v11157_v55 = vld [vmem:[%s11892_s23 + $0x2a8] sm:$0xff]  }
 0x205   : > { %v12580_v38 = vpop.f32.mrb[36].mxu0  ;;  %v10198_v31 = vpop.f32.mrb[36].mxu1 }
 0x206   : > { %v12582_v40 = vpop.f32.mrb[37].mxu0  ;;  %v12588_v23 = vmax.f32 %v13582_v39, %v10198_v31  ;;  %v3692_v45 = vpop.f32.mrb[37].mxu1  ;;  %v13584_v31 = vmax.f32 %v12389_v36, %v12383_v25  ;;  %v11164_v25 = vld [vmem:[%s11937_s13 + $0x2c0] sm:$0xff]  }
 0x207   : > { %v12590_v24 = vpop.f32.mrb[38].mxu0  ;;  %v12597_v33 = vmax.f32 %v13583_v30, %v3692_v45  ;;  %v10199_v7 = vpop.f32.mrb[38].mxu1 }
 0x208   : > { %v12599_v27 = vpop.f32.mrb[39].mxu0  ;;  %v12607_v39 = vmax.f32 %v13584_v31, %v10199_v7  ;;  %v3695_v22 = vpop.f32.mrb[39].mxu1  ;;  %v11166_v7 = vld [vmem:[%s11937_s13 + $0x2c8] sm:$0xff]   ;;  %v11169_v31 = vld [vmem:[%s11937_s13 + $0x298] sm:$0xff]  }
 0x209   : > { %v12614_v30 = vmax.f32 %v13585_v59, %v3695_v22  ;;  %v11163_v22 = vld [vmem:[%s11937_s13 + $0x280] sm:$0xff]  }
 0x20a   : > { %10515 = vmatmul.mubr.msk.bf16.gmra.mrb[96].mxu0 %vm2483_vm2, %v11158_v26  ;;  %10477 = vmatmul.mubr.msk.bf16.gmra.mrb[96].mxu1 %vm2483_vm2, %v11157_v55  ;;  %v11165_v26 = vld [vmem:[%s11937_s13 + $0x288] sm:$0xff]   ;;  %v11167_v55 = vld [vmem:[%s11937_s13 + $0x290] sm:$0xff]   ;;  %v11172_v59 = vld [vmem:[%s11937_s13 + $0x2e0] sm:$0xff]  }
 0x20b   : > { %10518 = vmatprep.mubr.msk.bf16.mxu0 %vm2483_vm2, %v11160_v32  ;;  %10480 = vmatprep.mubr.msk.bf16.mxu1 %vm2483_vm2, %v11159_v46  ;;  %v11168_v32 = vld [vmem:[%s11937_s13 + $0x2d0] sm:$0xff]   ;;  %v11170_v46 = vld [vmem:[%s11937_s13 + $0x2d8] sm:$0xff]  }
 0x212   : > { %10519 = vmatmul.mubr.msk.bf16.gmra.mrb[100].mxu0 %vm2483_vm2, %v11162_v21  ;;  %10481 = vmatmul.mubr.msk.bf16.gmra.mrb[100].mxu1 %vm2483_vm2, %v11161_v29  ;;  %v11171_v21 = vld [vmem:[%s11937_s13 + $0x2a0] sm:$0xff]   ;;  %v11174_v29 = vld [vmem:[%s11937_s13 + $0x2e8] sm:$0xff]  }
 0x213   : > { %10526 = vmatprep.mubr.msk.bf16.mxu0 %vm2857_vm3, %v11164_v25  ;;  %10488 = vmatprep.mubr.msk.bf16.mxu1 %vm2857_vm3, %v11163_v22  ;;  %v11173_v25 = vld [vmem:[%s11937_s13 + $0x2a8] sm:$0xff]   ;;  %v11176_v22 = vld [vmem:[%s11937_s13 + $0x2f0] sm:$0xff]  }
 0x21a   : > { %10527 = vmatmul.mubr.msk.bf16.vlgmr.msra.gmra.mrb[88].mxu0 %vm2857_vm3, %v11166_v7  ;;  %10489 = vmatmul.mubr.msk.bf16.vlgmr.msra.gmra.mrb[88].mxu1 %vm2857_vm3, %v11165_v26  ;;  %v11175_v7 = vld [vmem:[%s11937_s13 + $0x2b0] sm:$0xff]  }
 0x21b   : > { %10581 = vmatpush3.bf16.msra.mxu0 %v11884_v4  ;;  %10543 = vmatpush3.bf16.msra.mxu1 %v11884_v4 }
 0x21c   : > { %10492 = vmatprep.mubr.msk.bf16.mxu1 %vm2857_vm3, %v11167_v55  ;;  %10530 = vmatprep.mubr.msk.bf16.mxu0 %vm2857_vm3, %v11168_v32  ;;  %v11178_v32 = vld [vmem:[%s11937_s13 + $0x2f8] sm:$0xff]  }
 0x21d   : > { %10560 = vmatprep.subr.bf16.mxu1 %v12138_v41  ;;  %10598 = vmatprep.subr.bf16.mxu0 %v12138_v41 }
 0x222   : > { %10531 = vmatmul.mubr.msk.bf16.gmra.mrb[92].mxu0 %vm2857_vm3, %v11170_v46  ;;  %10493 = vmatmul.mubr.msk.bf16.gmra.mrb[92].mxu1 %vm2857_vm3, %v11169_v31  ;;  %v13586_v46 = vmax.f32 %v12448_v16, %v12440_v54  ;;  %v13588_v54 = vmax.f32 %v12467_v37, %v12450_v9 }
 0x223   : > { %10534 = vmatprep.mubr.msk.bf16.mxu0 %vm2857_vm3, %v11172_v59  ;;  %10496 = vmatprep.mubr.msk.bf16.mxu1 %vm2857_vm3, %v11171_v21 }
 0x22a   : > { %10535 = vmatmul.mubr.msk.bf16.gmra.mrb[96].mxu0 %vm2857_vm3, %v11174_v29  ;;  %10497 = vmatmul.mubr.msk.bf16.gmra.mrb[96].mxu1 %vm2857_vm3, %v11173_v25  ;;  %v11177_v29 = vld [vmem:[%s11937_s13 + $0x2b8] sm:$0xff]   ;;  %v11180_v25 = vld [vmem:[%s11892_s23 + $0x340] sm:$0xff]  }
 0x22b   : > { %10538 = vmatprep.mubr.msk.bf16.mxu0 %vm2857_vm3, %v11176_v22  ;;  %10500 = vmatprep.mubr.msk.bf16.mxu1 %vm2857_vm3, %v11175_v7  ;;  %v13587_v22 = vmax.f32 %v12457_v18, %v12442_v20  ;;  %v13589_v18 = vmax.f32 %v12474_v43, %v12459_v17  ;;  %v11183_v20 = vld [vmem:[%s11892_s23 + $0x310] sm:$0xff]  }
 0x22d   : > { %v12660_v41 = vpop.f32.mrb[40].mxu0  ;;  %v10262_v26 = vpop.f32.mrb[40].mxu1 }
 0x22e   : > { %v12662_v55 = vpop.f32.mrb[41].mxu0  ;;  %v12668_v31 = vmax.f32 %v13586_v46, %v10262_v26  ;;  %v4388_v59 = vpop.f32.mrb[41].mxu1 }
 0x22f   : > { %v12670_v21 = vpop.f32.mrb[42].mxu0  ;;  %v12677_v7 = vmax.f32 %v13587_v22, %v4388_v59  ;;  %v10263_v36 = vpop.f32.mrb[42].mxu1 }
 0x230   : > { %v12679_v45 = vpop.f32.mrb[43].mxu0  ;;  %v12687_v26 = vmax.f32 %v13588_v54, %v10263_v36  ;;  %v4391_v46 = vpop.f32.mrb[43].mxu1  ;;  %v11182_v36 = vld [vmem:[%s11892_s23 + $0x348] sm:$0xff]  }
 0x231   : > { %v12694_v59 = vmax.f32 %v13589_v18, %v4391_v46  ;;  %v13591_v18 = vmax.f32 %v12500_v14, %v12486_v48  ;;  %v13593_v14 = vmax.f32 %v12518_v47, %v12502_v49  ;;  %v11188_v49 = vld [vmem:[%s11892_s23 + $0x360] sm:$0xff]  }
 0x232   : > { %10539 = vmatmul.mubr.msk.bf16.gmra.mrb[100].mxu0 %vm2857_vm3, %v11178_v32  ;;  %10501 = vmatmul.mubr.msk.bf16.gmra.mrb[100].mxu1 %vm2857_vm3, %v11177_v29  ;;  %v13590_v32 = vmax.f32 %v12492_v34, %v12484_v44  ;;  %v13592_v44 = vmax.f32 %v12510_v51, %v12494_v2  ;;  %v12747_v2 = vld [vmem:[%s13566_s4] sm:$0xff]  }
 0x233   : > { %10582 = vmatprep.mubr.msk.bf16.mxu0 %vm2483_vm2, %v11180_v25  ;;  %10544 = vmatprep.mubr.msk.bf16.mxu1 %vm2483_vm2, %v11179_v42  ;;  %v11181_v25 = vld [vmem:[%s11892_s23 + $0x308] sm:$0xff]  }
 0x235   : > { %v12704_v37 = vpop.f32.mrb[44].mxu0  ;;  %v10266_v17 = vpop.f32.mrb[44].mxu1 }
 0x236   : > { %v12706_v43 = vpop.f32.mrb[45].mxu0  ;;  %v12712_v54 = vmax.f32 %v13590_v32, %v10266_v17  ;;  %v4404_v29 = vpop.f32.mrb[45].mxu1  ;;  %v11184_v32 = vld [vmem:[%s11892_s23 + $0x350] sm:$0xff]  }
 0x237   : > { %v12714_v46 = vpop.f32.mrb[46].mxu0  ;;  %v12720_v42 = vmax.f32 %v13591_v18, %v4404_v29  ;;  %v10267_v9 = vpop.f32.mrb[46].mxu1 }
 0x238   : > { %v12722_v22 = vpop.f32.mrb[47].mxu0  ;;  %v12730_v34 = vmax.f32 %v13592_v44, %v10267_v9  ;;  %v4407_v17 = vpop.f32.mrb[47].mxu1 }
 0x239   : > { %v12738_v29 = vmax.f32 %v13593_v14, %v4407_v17  ;;  %v11185_v14 = vld [vmem:[%s11892_s23 + $0x318] sm:$0xff]  }
 0x23a   : > { %10583 = vmatmul.mubr.msk.bf16.vlgmr.msra.gmra.mrb[104].mxu0 %vm2483_vm2, %v11182_v36  ;;  %10545 = vmatmul.mubr.msk.bf16.vlgmr.msra.gmra.mrb[104].mxu1 %vm2483_vm2, %v11181_v25  ;;  %v11186_v36 = vld [vmem:[%s11892_s23 + $0x358] sm:$0xff]   ;;  %v13594_v25 = vmax.f32 %v12540_v28, %v12529_v5  ;;  %v13596_v28 = vmax.f32 %v12562_v8, %v12542_v35 }
 0x23b   : > { %10599 = vmatpush3.bf16.msra.mxu0 %v12747_v2  ;;  %10561 = vmatpush3.bf16.msra.mxu1 %v12747_v2 }
 0x23c   : > { %10548 = vmatprep.mubr.msk.bf16.mxu1 %vm2483_vm2, %v11183_v20  ;;  %10586 = vmatprep.mubr.msk.bf16.mxu0 %vm2483_vm2, %v11184_v32  ;;  %v13595_v32 = vmax.f32 %v12550_v57, %v12533_v19 }
 0x23d   : > { %v12754_v51 = vpop.f32.mrb[48].mxu0  ;;  %10562 = vmatprep.subr.bf16.mxu1 %v12180_v58  ;;  %v10270_v47 = vpop.f32.mrb[48].mxu1  ;;  %10600 = vmatprep.subr.bf16.mxu0 %v12180_v58 }
 0x23e   : > { %v12758_v9 = vpop.f32.mrb[49].mxu0  ;;  %v12765_v44 = vmax.f32 %v13594_v25, %v10270_v47  ;;  %v4420_v17 = vpop.f32.mrb[49].mxu1 }
 0x23f   : > { %v12767_v20 = vpop.f32.mrb[50].mxu0  ;;  %10601 = vmatpush3.bf16.msra.mxu0 %v12180_v58  ;;  %v12775_v18 = vmax.f32 %v13595_v32, %v4420_v17  ;;  %v10271_v48 = vpop.f32.mrb[50].mxu1  ;;  %10563 = vmatpush3.bf16.msra.mxu1 %v12180_v58  ;;  %v13597_v58 = vmax.f32 %v12570_v50, %v12552_v52  ;;  %v11190_v17 = vld [vmem:[%s11892_s23 + $0x368] sm:$0xff]  }
 0x240   : > { %v12777_v16 = vpop.f32.mrb[51].mxu0  ;;  %10656 = vmatprep.subr.bf16.mxu0 %v11884_v4  ;;  %v4833_v5 = vmax.f32 %v12765_v44, %v12754_v51  ;;  %v12787_v47 = vmax.f32 %v13596_v28, %v10271_v48  ;;  %v4423_v57 = vpop.f32.mrb[51].mxu1  ;;  %10618 = vmatprep.subr.bf16.mxu1 %v11884_v4 }
 0x241   : > { %v12795_v25 = vmax.f32 %v13597_v58, %v4423_v57  ;;  %v11192_v57 = vld [vmem:[%s11892_s23 + $0x370] sm:$0xff]   ;;  %v13599_v58 = vmax.f32 %v12597_v33, %v12582_v40  ;;  %v13601_v33 = vmax.f32 %v12614_v30, %v12599_v27  ;;  %v11194_v27 = vld [vmem:[%s11892_s23 + $0x378] sm:$0xff]   ;;  %v11196_v30 = vld [vmem:[%s11937_s13 + $0x340] sm:$0xff]  }
 0x242   : > { %10587 = vmatmul.mubr.msk.bf16.gmra.mrb[108].mxu0 %vm2483_vm2, %v11186_v36  ;;  %10549 = vmatmul.mubr.msk.bf16.gmra.mrb[108].mxu1 %vm2483_vm2, %v11185_v14  ;;  %v13598_v36 = vmax.f32 %v12588_v23, %v12580_v38  ;;  %v11191_v38 = vld [vmem:[%s11892_s23 + $0x330] sm:$0xff]   ;;  %v11211_v40 = vld [vmem:[%s11892_s23 + $0x380] sm:$0xff]   ;;  %v13611_v44 = vmax.f32 %v12787_v47, %v12767_v20 }
 0x243   : > { %10590 = vmatprep.mubr.msk.bf16.mxu0 %vm2483_vm2, %v11188_v49  ;;  %10552 = vmatprep.mubr.msk.bf16.mxu1 %vm2483_vm2, %v11187_v53  ;;  %v11189_v49 = vld [vmem:[%s11892_s23 + $0x328] sm:$0xff]  }
 0x245   : > { %v12805_v48 = vpop.f32.mrb[52].mxu0  ;;  %v10274_v52 = vpop.f32.mrb[52].mxu1 }
 0x246   : > { %v12807_v50 = vpop.f32.mrb[53].mxu0  ;;  %v12813_v32 = vmax.f32 %v13598_v36, %v10274_v52  ;;  %v4436_v14 = vpop.f32.mrb[53].mxu1  ;;  %v13600_v52 = vmax.f32 %v12607_v39, %v12590_v24  ;;  %v11193_v39 = vld [vmem:[%s11892_s23 + $0x338] sm:$0xff]  }
 0x247   : > { %v12815_v28 = vpop.f32.mrb[54].mxu0  ;;  %v12822_v53 = vmax.f32 %v13599_v58, %v4436_v14  ;;  %v10275_v8 = vpop.f32.mrb[54].mxu1 }
 0x248   : > { %v12824_v35 = vpop.f32.mrb[55].mxu0  ;;  %v4837_v23 = vmax.f32 %v12813_v32, %v12805_v48  ;;  %v12832_v36 = vmax.f32 %v13600_v52, %v10275_v8  ;;  %v4439_v19 = vpop.f32.mrb[55].mxu1  ;;  %v11198_v8 = vld [vmem:[%s11937_s13 + $0x348] sm:$0xff]   ;;  %v11201_v52 = vld [vmem:[%s11937_s13 + $0x318] sm:$0xff]   ;;  %v11223_v48 = vld [vmem:[%s11892_s23 + $0x3b0] sm:$0xff]  }
 0x249   : > { %v12839_v14 = vmax.f32 %v13601_v33, %v4439_v19  ;;  %v11195_v19 = vld [vmem:[%s11937_s13 + $0x300] sm:$0xff]  }
 0x24a   : > { %10591 = vmatmul.mubr.msk.bf16.gmra.mrb[112].mxu0 %vm2483_vm2, %v11190_v17  ;;  %10553 = vmatmul.mubr.msk.bf16.gmra.mrb[112].mxu1 %vm2483_vm2, %v11189_v49  ;;  %v11197_v17 = vld [vmem:[%s11937_s13 + $0x308] sm:$0xff]   ;;  %v11199_v49 = vld [vmem:[%s11937_s13 + $0x310] sm:$0xff]   ;;  %v11204_v33 = vld [vmem:[%s11937_s13 + $0x360] sm:$0xff]  }
 0x24b   : > { %10594 = vmatprep.mubr.msk.bf16.mxu0 %vm2483_vm2, %v11192_v57  ;;  %10556 = vmatprep.mubr.msk.bf16.mxu1 %vm2483_vm2, %v11191_v38  ;;  %v11200_v57 = vld [vmem:[%s11937_s13 + $0x350] sm:$0xff]   ;;  %v11202_v38 = vld [vmem:[%s11937_s13 + $0x358] sm:$0xff]  }
 0x252   : > { %10595 = vmatmul.mubr.msk.bf16.gmra.mrb[116].mxu0 %vm2483_vm2, %v11194_v27  ;;  %10557 = vmatmul.mubr.msk.bf16.gmra.mrb[116].mxu1 %vm2483_vm2, %v11193_v39  ;;  %v11203_v27 = vld [vmem:[%s11937_s13 + $0x320] sm:$0xff]   ;;  %v11205_v39 = vld [vmem:[%s11937_s13 + $0x328] sm:$0xff]  }
 0x253   : > { %10602 = vmatprep.mubr.msk.bf16.mxu0 %vm2857_vm3, %v11196_v30  ;;  %10564 = vmatprep.mubr.msk.bf16.mxu1 %vm2857_vm3, %v11195_v19  ;;  %v11208_v30 = vld [vmem:[%s11937_s13 + $0x370] sm:$0xff]  }
 0x254   : > { %v11207_v19 = vld [vmem:[%s11937_s13 + $0x330] sm:$0xff]  }
 0x25a   : > { %10603 = vmatmul.mubr.msk.bf16.vlgmr.msra.gmra.mrb[104].mxu0 %vm2857_vm3, %v11198_v8  ;;  %10565 = vmatmul.mubr.msk.bf16.vlgmr.msra.gmra.mrb[104].mxu1 %vm2857_vm3, %v11197_v17 }
 0x25b   : > { %10657 = vmatpush3.bf16.msra.mxu0 %v11884_v4  ;;  %10619 = vmatpush3.bf16.msra.mxu1 %v11884_v4  ;;  %v11206_v4 = vld [vmem:[%s11937_s13 + $0x368] sm:$0xff]  }
 0x25c   : > { %10568 = vmatprep.mubr.msk.bf16.mxu1 %vm2857_vm3, %v11199_v49  ;;  %10606 = vmatprep.mubr.msk.bf16.mxu0 %vm2857_vm3, %v11200_v57  ;;  %v11210_v57 = vld [vmem:[%s11937_s13 + $0x378] sm:$0xff]  }
 0x25d   : > { %10636 = vmatprep.subr.bf16.mxu1 %v12747_v2  ;;  %10674 = vmatprep.subr.bf16.mxu0 %v12747_v2 }
 0x262   : > { %10607 = vmatmul.mubr.msk.bf16.gmra.mrb[108].mxu0 %vm2857_vm3, %v11202_v38  ;;  %10569 = vmatmul.mubr.msk.bf16.gmra.mrb[108].mxu1 %vm2857_vm3, %v11201_v52  ;;  %v13602_v38 = vmax.f32 %v12668_v31, %v12660_v41  ;;  %v13604_v31 = vmax.f32 %v12687_v26, %v12670_v21 }
 0x263   : > { %10610 = vmatprep.mubr.msk.bf16.mxu0 %vm2857_vm3, %v11204_v33  ;;  %10572 = vmatprep.mubr.msk.bf16.mxu1 %vm2857_vm3, %v11203_v27 }
 0x26a   : > { %10611 = vmatmul.mubr.msk.bf16.gmra.mrb[112].mxu0 %vm2857_vm3, %v11206_v4  ;;  %10573 = vmatmul.mubr.msk.bf16.gmra.mrb[112].mxu1 %vm2857_vm3, %v11205_v39  ;;  %v11209_v4 = vld [vmem:[%s11937_s13 + $0x338] sm:$0xff]   ;;  %v11212_v39 = vld [vmem:[%s11892_s23 + $0x3c0] sm:$0xff]  }
 0x26b   : > { %10614 = vmatprep.mubr.msk.bf16.mxu0 %vm2857_vm3, %v11208_v30  ;;  %10576 = vmatprep.mubr.msk.bf16.mxu1 %vm2857_vm3, %v11207_v19  ;;  %v13603_v30 = vmax.f32 %v12677_v7, %v12662_v55  ;;  %v13605_v7 = vmax.f32 %v12694_v59, %v12679_v45  ;;  %v11215_v55 = vld [vmem:[%s11892_s23 + $0x390] sm:$0xff]  }
 0x26d   : > { %v12885_v8 = vpop.f32.mrb[56].mxu0  ;;  %v10338_v17 = vpop.f32.mrb[56].mxu1 }
 0x26e   : > { %v12887_v49 = vpop.f32.mrb[57].mxu0  ;;  %v12893_v52 = vmax.f32 %v13602_v38, %v10338_v17  ;;  %v5132_v33 = vpop.f32.mrb[57].mxu1 }
 0x26f   : > { %v12895_v27 = vpop.f32.mrb[58].mxu0  ;;  %v12902_v19 = vmax.f32 %v13603_v30, %v5132_v33  ;;  %v10339_v24 = vpop.f32.mrb[58].mxu1 }
 0x270   : > { %v12904_v58 = vpop.f32.mrb[59].mxu0  ;;  %v12912_v17 = vmax.f32 %v13604_v31, %v10339_v24  ;;  %v5135_v38 = vpop.f32.mrb[59].mxu1  ;;  %v11214_v24 = vld [vmem:[%s11892_s23 + $0x3c8] sm:$0xff]  }
 0x271   : > { %v12919_v33 = vmax.f32 %v13605_v7, %v5135_v38  ;;  %v13607_v7 = vmax.f32 %v12720_v42, %v12706_v43  ;;  %v13609_v42 = vmax.f32 %v12738_v29, %v12722_v22  ;;  %v11219_v43 = vld [vmem:[%s11892_s23 + $0x3a0] sm:$0xff]  }
 0x272   : > { %10615 = vmatmul.mubr.msk.bf16.gmra.mrb[116].mxu0 %vm2857_vm3, %v11210_v57  ;;  %10577 = vmatmul.mubr.msk.bf16.gmra.mrb[116].mxu1 %vm2857_vm3, %v11209_v4  ;;  %v13606_v57 = vmax.f32 %v12712_v54, %v12704_v37  ;;  %v13608_v37 = vmax.f32 %v12730_v34, %v12714_v46  ;;  %v11246_v34 = vld [vmem:[%s13566_s4 + $0x8] sm:$0xff]  }
 0x273   : > { %10658 = vmatprep.mubr.msk.bf16.mxu0 %vm2483_vm2, %v11212_v39  ;;  %10620 = vmatprep.mubr.msk.bf16.mxu1 %vm2483_vm2, %v11211_v40  ;;  %v11213_v39 = vld [vmem:[%s11892_s23 + $0x388] sm:$0xff]  }
 0x275   : > { %v12929_v26 = vpop.f32.mrb[60].mxu0  ;;  %v10342_v45 = vpop.f32.mrb[60].mxu1 }
 0x276   : > { %v12931_v59 = vpop.f32.mrb[61].mxu0  ;;  %v12937_v31 = vmax.f32 %v13606_v57, %v10342_v45  ;;  %v5148_v4 = vpop.f32.mrb[61].mxu1  ;;  %v11216_v57 = vld [vmem:[%s11892_s23 + $0x3d0] sm:$0xff]  }
 0x277   : > { %v12939_v38 = vpop.f32.mrb[62].mxu0  ;;  %v12945_v40 = vmax.f32 %v13607_v7, %v5148_v4  ;;  %v10343_v21 = vpop.f32.mrb[62].mxu1 }
 0x278   : > { %v12947_v30 = vpop.f32.mrb[63].mxu0  ;;  %v5573_v41 = vmax.f32 %v12937_v31, %v12929_v26  ;;  %v12955_v54 = vmax.f32 %v13608_v37, %v10343_v21  ;;  %v5151_v45 = vpop.f32.mrb[63].mxu1  ;;  %v11217_v37 = vld [vmem:[%s11892_s23 + $0x398] sm:$0xff]  }
 0x279   : > { %v12963_v4 = vmax.f32 %v13609_v42, %v5151_v45  ;;  %v11220_v45 = vld [vmem:[%s11892_s23 + $0x3e0] sm:$0xff]  }
 0x27a   : > { %10659 = vmatmul.mubr.msk.bf16.vlgmr.msra.gmra.mrb[120].mxu0 %vm2483_vm2, %v11214_v24  ;;  %10621 = vmatmul.mubr.msk.bf16.vlgmr.msra.gmra.mrb[120].mxu1 %vm2483_vm2, %v11213_v39  ;;  %v11218_v24 = vld [vmem:[%s11892_s23 + $0x3d8] sm:$0xff]  }
 0x27b   : > { %10675 = vmatpush3.bf16.msra.mxu0 %v12747_v2  ;;  %10637 = vmatpush3.bf16.msra.mxu1 %v12747_v2 }
 0x27c   : > { %10624 = vmatprep.mubr.msk.bf16.mxu1 %vm2483_vm2, %v11215_v55  ;;  %10662 = vmatprep.mubr.msk.bf16.mxu0 %vm2483_vm2, %v11216_v57  ;;  %v13610_v57 = vmax.f32 %v12775_v18, %v12758_v9  ;;  %v13612_v9 = vmax.f32 %v12795_v25, %v12777_v16 }
 0x27d   : > { %v12974_v22 = vpop.f32.mrb[64].mxu0  ;;  %10638 = vmatprep.subr.bf16.mxu1 %v11246_v34  ;;  %v10346_v29 = vpop.f32.mrb[64].mxu1  ;;  %10676 = vmatprep.subr.bf16.mxu0 %v11246_v34 }
 0x27e   : > { %v12980_v21 = vpop.f32.mrb[65].mxu0  ;;  %v12986_v2 = vmax.f32 %v4833_v5, %v10346_v29  ;;  %v5164_v55 = vpop.f32.mrb[65].mxu1 }
 0x27f   : > { %v12988_v39 = vpop.f32.mrb[66].mxu0  ;;  %10677 = vmatpush3.bf16.msra.mxu0 %v11246_v34  ;;  %v12995_v42 = vmax.f32 %v13610_v57, %v5164_v55  ;;  %v10347_v46 = vpop.f32.mrb[66].mxu1  ;;  %10639 = vmatpush3.bf16.msra.mxu1 %v11246_v34 }
 0x280   : > { %v12997_v7 = vpop.f32.mrb[67].mxu0  ;;  %v5577_v51 = vmax.f32 %v12986_v2, %v12974_v22  ;;  %v13005_v5 = vmax.f32 %v13611_v44, %v10347_v46  ;;  %v5167_v29 = vpop.f32.mrb[67].mxu1  ;;  %v11222_v46 = vld [vmem:[%s11892_s23 + $0x3e8] sm:$0xff]   ;;  %v11224_v44 = vld [vmem:[%s11892_s23 + $0x3f0] sm:$0xff]  }
 0x281   : > { %v5575_v18 = vmax.f32 %v12995_v42, %v12980_v21  ;;  %v13012_v55 = vmax.f32 %v13612_v9, %v5167_v29  ;;  %v13613_v29 = vmax.f32 %v12822_v53, %v12807_v50  ;;  %v13615_v53 = vmax.f32 %v12839_v14, %v12824_v35  ;;  %v11226_v35 = vld [vmem:[%s11892_s23 + $0x3f8] sm:$0xff]   ;;  %v11228_v14 = vld [vmem:[%s11937_s13 + $0x3c0] sm:$0xff]  }
 0x282   : > { %10663 = vmatmul.mubr.msk.bf16.gmra.mrb[124].mxu0 %vm2483_vm2, %v11218_v24  ;;  %10625 = vmatmul.mubr.msk.bf16.gmra.mrb[124].mxu1 %vm2483_vm2, %v11217_v37 }
 0x283   : > { %10666 = vmatprep.mubr.msk.bf16.mxu0 %vm2483_vm2, %v11220_v45  ;;  %10628 = vmatprep.mubr.msk.bf16.mxu1 %vm2483_vm2, %v11219_v43  ;;  %v11221_v45 = vld [vmem:[%s11892_s23 + $0x3a8] sm:$0xff]   ;;  %v13624_v21 = vmax.f32 %v13012_v55, %v12997_v7 }
 0x285   : > { %v13022_v47 = vpop.f32.mrb[68].mxu0  ;;  %v10350_v16 = vpop.f32.mrb[68].mxu1 }
 0x286   : > { %v13024_v25 = vpop.f32.mrb[69].mxu0  ;;  %v13030_v24 = vmax.f32 %v4837_v23, %v10350_v16  ;;  %v5180_v37 = vpop.f32.mrb[69].mxu1  ;;  %v13614_v23 = vmax.f32 %v12832_v36, %v12815_v28  ;;  %v11225_v36 = vld [vmem:[%s11892_s23 + $0x3b8] sm:$0xff]  }
 0x287   : > { %v13032_v57 = vpop.f32.mrb[70].mxu0  ;;  %v13039_v43 = vmax.f32 %v13613_v29, %v5180_v37  ;;  %v10351_v9 = vpop.f32.mrb[70].mxu1 }
 0x288   : > { %v13041_v20 = vpop.f32.mrb[71].mxu0  ;;  %v5581_v32 = vmax.f32 %v13030_v24, %v13022_v47  ;;  %v13049_v16 = vmax.f32 %v13614_v23, %v10351_v9  ;;  %v5183_v34 = vpop.f32.mrb[71].mxu1  ;;  %v11231_v9 = vld [vmem:[%s11937_s13 + $0x390] sm:$0xff]   ;;  %v11233_v23 = vld [vmem:[%s11937_s13 + $0x398] sm:$0xff]  }
 0x289   : > { %v13056_v37 = vmax.f32 %v13615_v53, %v5183_v34  ;;  %v11227_v34 = vld [vmem:[%s11937_s13 + $0x380] sm:$0xff]   ;;  %v13625_v55 = vmax.f32 %v13039_v43, %v13024_v25 }
 0x28a   : > { %10667 = vmatmul.mubr.msk.bf16.gmra.mrb[128].mxu0 %vm2483_vm2, %v11222_v46  ;;  %10629 = vmatmul.mubr.msk.bf16.gmra.mrb[128].mxu1 %vm2483_vm2, %v11221_v45  ;;  %v11230_v46 = vld [vmem:[%s11937_s13 + $0x3c8] sm:$0xff]   ;;  %v11236_v53 = vld [vmem:[%s11937_s13 + $0x3e0] sm:$0xff]  }
 0x28b   : > { %10670 = vmatprep.mubr.msk.bf16.mxu0 %vm2483_vm2, %v11224_v44  ;;  %10632 = vmatprep.mubr.msk.bf16.mxu1 %vm2483_vm2, %v11223_v48  ;;  %v11229_v45 = vld [vmem:[%s11937_s13 + $0x388] sm:$0xff]   ;;  %v11232_v44 = vld [vmem:[%s11937_s13 + $0x3d0] sm:$0xff]   ;;  %v11234_v48 = vld [vmem:[%s11937_s13 + $0x3d8] sm:$0xff]   ;;  %v13627_v25 = vmax.f32 %v13056_v37, %v13041_v20 }
 0x292   : > { %10671 = vmatmul.mubr.msk.bf16.gmra.mrb[132].mxu0 %vm2483_vm2, %v11226_v35  ;;  %10633 = vmatmul.mubr.msk.bf16.gmra.mrb[132].mxu1 %vm2483_vm2, %v11225_v36  ;;  %v11235_v35 = vld [vmem:[%s11937_s13 + $0x3a0] sm:$0xff]   ;;  %v11238_v36 = vld [vmem:[%s11937_s13 + $0x3e8] sm:$0xff]  }
 0x293   : > { %10678 = vmatprep.mubr.msk.bf16.mxu0 %vm2857_vm3, %v11228_v14  ;;  %10640 = vmatprep.mubr.msk.bf16.mxu1 %vm2857_vm3, %v11227_v34  ;;  %v11237_v14 = vld [vmem:[%s11937_s13 + $0x3a8] sm:$0xff]   ;;  %v11240_v34 = vld [vmem:[%s11937_s13 + $0x3f0] sm:$0xff]  }
 0x29a   : > { %10679 = vmatmul.mubr.msk.bf16.vlgmr.msra.gmra.mrb[120].mxu0 %vm2857_vm3, %v11230_v46  ;;  %10641 = vmatmul.mubr.msk.bf16.vlgmr.msra.gmra.mrb[120].mxu1 %vm2857_vm3, %v11229_v45  ;;  %v11239_v46 = vld [vmem:[%s11937_s13 + $0x3b0] sm:$0xff]  }
 0x29b   : > { %10682 = vmatprep.mubr.msk.bf16.mxu0 %vm2857_vm3, %v11232_v44  ;;  %10644 = vmatprep.mubr.msk.bf16.mxu1 %vm2857_vm3, %v11231_v9 }
 0x2a2   : > { %10683 = vmatmul.mubr.msk.bf16.gmra.mrb[124].mxu0 %vm2857_vm3, %v11234_v48  ;;  %10645 = vmatmul.mubr.msk.bf16.gmra.mrb[124].mxu1 %vm2857_vm3, %v11233_v23  ;;  %v11242_v48 = vld [vmem:[%s11937_s13 + $0x3f8] sm:$0xff]   ;;  %v13616_v23 = vmax.f32 %v12893_v52, %v12885_v8  ;;  %v13618_v8 = vmax.f32 %v12912_v17, %v12895_v27 }
 0x2a3   : > { %10686 = vmatprep.mubr.msk.bf16.mxu0 %vm2857_vm3, %v11236_v53  ;;  %10648 = vmatprep.mubr.msk.bf16.mxu1 %vm2857_vm3, %v11235_v35 }
 0x2aa   : > { %10687 = vmatmul.mubr.msk.bf16.gmra.mrb[128].mxu0 %vm2857_vm3, %v11238_v36  ;;  %10649 = vmatmul.mubr.msk.bf16.gmra.mrb[128].mxu1 %vm2857_vm3, %v11237_v14  ;;  %v11241_v36 = vld [vmem:[%s11937_s13 + $0x3b8] sm:$0xff]   ;;  %v13617_v14 = vmax.f32 %v12902_v19, %v12887_v49  ;;  %v13619_v49 = vmax.f32 %v12919_v33, %v12904_v58 }
 0x2ab   : > { %10690 = vmatprep.mubr.msk.bf16.mxu0 %vm2857_vm3, %v11240_v34  ;;  %10652 = vmatprep.mubr.msk.bf16.mxu1 %vm2857_vm3, %v11239_v46 }
 0x2ad   : > { %v13098_v45 = vpop.f32.mrb[72].mxu0  ;;  %v10414_v44 = vpop.f32.mrb[72].mxu1 }
 0x2ae   : > { %v13100_v9 = vpop.f32.mrb[73].mxu0  ;;  %v13106_v53 = vmax.f32 %v13616_v23, %v10414_v44  ;;  %v5876_v35 = vpop.f32.mrb[73].mxu1 }
 0x2af   : > { %v13108_v28 = vpop.f32.mrb[74].mxu0  ;;  %v13114_v34 = vmax.f32 %v13617_v14, %v5876_v35  ;;  %v10415_v46 = vpop.f32.mrb[74].mxu1 }
 0x2b0   : > { %v13116_v29 = vpop.f32.mrb[75].mxu0  ;;  %v6313_v50 = vmax.f32 %v13106_v53, %v13098_v45  ;;  %v13123_v52 = vmax.f32 %v13618_v8, %v10415_v46  ;;  %v5879_v44 = vpop.f32.mrb[75].mxu1 }
 0x2b1   : > { %v6311_v23 = vmax.f32 %v13114_v34, %v13100_v9  ;;  %v13130_v19 = vmax.f32 %v13619_v49, %v5879_v44  ;;  %v13621_v34 = vmax.f32 %v12955_v54, %v12939_v38 }
 0x2b2   : > { %10691 = vmatmul.mubr.msk.bf16.gmra.mrb[132].mxu0 %vm2857_vm3, %v11242_v48  ;;  %v6314_v35 = vmax.f32 %v13123_v52, %v13108_v28  ;;  %10653 = vmatmul.mubr.msk.bf16.gmra.mrb[132].mxu1 %vm2857_vm3, %v11241_v36  ;;  %v13620_v28 = vmax.f32 %v12945_v40, %v12931_v59  ;;  %v13622_v59 = vmax.f32 %v12963_v4, %v12947_v30 }
 0x2b3   : > { %v6312_v27 = vmax.f32 %v13130_v19, %v13116_v29 }
 0x2b5   : > { %v13138_v17 = vpop.f32.mrb[76].mxu0  ;;  %v10418_v45 = vpop.f32.mrb[76].mxu1 }
 0x2b6   : > { %v13140_v53 = vpop.f32.mrb[77].mxu0  ;;  %v13145_v58 = vmax.f32 %v5573_v41, %v10418_v45  ;;  %v5892_v33 = vpop.f32.mrb[77].mxu1 }
 0x2b7   : > { %v13147_v9 = vpop.f32.mrb[78].mxu0  ;;  %v13152_v48 = vmax.f32 %v13620_v28, %v5892_v33  ;;  %v10419_v36 = vpop.f32.mrb[78].mxu1 }
 0x2b8   : > { %v13154_v29 = vpop.f32.mrb[79].mxu0  ;;  %v6317_v14 = vmax.f32 %v13145_v58, %v13138_v17  ;;  %v13161_v26 = vmax.f32 %v13621_v34, %v10419_v36  ;;  %v5895_v41 = vpop.f32.mrb[79].mxu1 }
 0x2b9   : > { %v6315_v31 = vmax.f32 %v13152_v48, %v13140_v53  ;;  %v13168_v40 = vmax.f32 %v13622_v59, %v5895_v41  ;;  %v13623_v53 = vmax.f32 %v13005_v5, %v12988_v39 }
 0x2ba   : > { %v6318_v46 = vmax.f32 %v13161_v26, %v13147_v9  ;;  %v13626_v26 = vmax.f32 %v13049_v16, %v13032_v57 }
 0x2bb   : > { %v6316_v8 = vmax.f32 %v13168_v40, %v13154_v29 }
 0x2bd   : > { %v13174_v52 = vpop.f32.mrb[80].mxu0  ;;  %v10422_v38 = vpop.f32.mrb[80].mxu1 }
 0x2be   : > { %v13176_v54 = vpop.f32.mrb[81].mxu0  ;;  %v13181_v44 = vmax.f32 %v5577_v51, %v10422_v38  ;;  %v5908_v49 = vpop.f32.mrb[81].mxu1 }
 0x2bf   : > { %v13183_v30 = vpop.f32.mrb[82].mxu0  ;;  %v13188_v4 = vmax.f32 %v5575_v18, %v5908_v49  ;;  %v10423_v19 = vpop.f32.mrb[82].mxu1 }
 0x2c0   : > { %v13190_v17 = vpop.f32.mrb[83].mxu0  ;;  %v6321_v45 = vmax.f32 %v13181_v44, %v13174_v52  ;;  %v13197_v22 = vmax.f32 %v13623_v53, %v10423_v19  ;;  %v5911_v2 = vpop.f32.mrb[83].mxu1 }
 0x2c1   : > { %v6319_v51 = vmax.f32 %v13188_v4, %v13176_v54  ;;  %v13204_v42 = vmax.f32 %v13624_v21, %v5911_v2 }
 0x2c2   : > { %v6322_v18 = vmax.f32 %v13197_v22, %v13183_v30 }
 0x2c3   : > { %v6320_v58 = vmax.f32 %v13204_v42, %v13190_v17 }
 0x2c5   : > { %v13210_v33 = vpop.f32.mrb[84].mxu0  ;;  %v10426_v39 = vpop.f32.mrb[84].mxu1 }
 0x2c6   : > { %v13212_v5 = vpop.f32.mrb[85].mxu0  ;;  %v13217_v9 = vmax.f32 %v5581_v32, %v10426_v39  ;;  %v5924_v28 = vpop.f32.mrb[85].mxu1 }
 0x2c7   : > { %v13219_v7 = vpop.f32.mrb[86].mxu0  ;;  %v13224_v48 = vmax.f32 %v13625_v55, %v5924_v28  ;;  %v10427_v36 = vpop.f32.mrb[86].mxu1 }
 0x2c8   : > { %v13226_v29 = vpop.f32.mrb[87].mxu0  ;;  %v6325_v34 = vmax.f32 %v13217_v9, %v13210_v33  ;;  %v13233_v47 = vmax.f32 %v13626_v26, %v10427_v36  ;;  %v5927_v24 = vpop.f32.mrb[87].mxu1 }
 0x2c9   : > { %v6323_v32 = vmax.f32 %v13224_v48, %v13212_v5  ;;  %v13240_v43 = vmax.f32 %v13627_v25, %v5927_v24 }
 0x2ca   : > { %v6326_v41 = vmax.f32 %v13233_v47, %v13219_v7 }
 0x2cb   : > { %v6324_v59 = vmax.f32 %v13240_v43, %v13226_v29 }
 0x2ed   : > { %v13246_v40 = vpop.f32.mrb[88].mxu0  ;;  %v10490_v57 = vpop.f32.mrb[88].mxu1 }
 0x2ee   : > { %v13248_v16 = vpop.f32.mrb[89].mxu0  ;;  %v13250_v52 = vmax.f32 %v6313_v50, %v10490_v57  ;;  %v6620_v38 = vpop.f32.mrb[89].mxu1 }
 0x2ef   : > { %v13252_v54 = vpop.f32.mrb[90].mxu0  ;;  %v13254_v44 = vmax.f32 %v6311_v23, %v6620_v38  ;;  %v10491_v20 = vpop.f32.mrb[90].mxu1 }
 0x2f0   : > { %v13256_v37 = vpop.f32.mrb[91].mxu0  ;;  %v7057_v49 = vmax.f32 %v13250_v52, %v13246_v40  ;;  %v13260_v30 = vmax.f32 %v6314_v35, %v10491_v20  ;;  %v6623_v4 = vpop.f32.mrb[91].mxu1 }
 0x2f1   : > { %v7055_v19 = vmax.f32 %v13254_v44, %v13248_v16  ;;  %v13264_v17 = vmax.f32 %v6312_v27, %v6623_v4 }
 0x2f2   : > { %v7058_v50 = vmax.f32 %v13260_v30, %v13252_v54 }
 0x2f3   : > { %v7056_v23 = vmax.f32 %v13264_v17, %v13256_v37 }
 0x2f5   : > { %v13270_v53 = vpop.f32.mrb[92].mxu0  ;;  %v10494_v22 = vpop.f32.mrb[92].mxu1 }
 0x2f6   : > { %v13272_v2 = vpop.f32.mrb[93].mxu0  ;;  %v13274_v21 = vmax.f32 %v6317_v14, %v10494_v22  ;;  %v6636_v35 = vpop.f32.mrb[93].mxu1 }
 0x2f7   : > { %v13276_v42 = vpop.f32.mrb[94].mxu0  ;;  %v13278_v33 = vmax.f32 %v6315_v31, %v6636_v35  ;;  %v10495_v27 = vpop.f32.mrb[94].mxu1 }
 0x2f8   : > { %v13280_v39 = vpop.f32.mrb[95].mxu0  ;;  %v7061_v5 = vmax.f32 %v13274_v21, %v13270_v53  ;;  %v13284_v9 = vmax.f32 %v6318_v46, %v10495_v27  ;;  %v6639_v28 = vpop.f32.mrb[95].mxu1 }
 0x2f9   : > { %v7059_v7 = vmax.f32 %v13278_v33, %v13272_v2  ;;  %v13288_v55 = vmax.f32 %v6316_v8, %v6639_v28 }
 0x2fa   : > { %v7062_v14 = vmax.f32 %v13284_v9, %v13276_v42 }
 0x2fb   : > { %v7060_v31 = vmax.f32 %v13288_v55, %v13280_v39 }
 0x2fd   : > { %v13294_v48 = vpop.f32.mrb[96].mxu0  ;;  %v10498_v36 = vpop.f32.mrb[96].mxu1 }
 0x2fe   : > { %v13296_v29 = vpop.f32.mrb[97].mxu0  ;;  %v13298_v26 = vmax.f32 %v6321_v45, %v10498_v36  ;;  %v6652_v46 = vpop.f32.mrb[97].mxu1 }
 0x2ff   : > { %v13300_v47 = vpop.f32.mrb[98].mxu0  ;;  %v13302_v24 = vmax.f32 %v6319_v51, %v6652_v46  ;;  %v10499_v8 = vpop.f32.mrb[98].mxu1 }
 0x300   : > { %v13304_v25 = vpop.f32.mrb[99].mxu0  ;;  %v7065_v43 = vmax.f32 %v13298_v26, %v13294_v48  ;;  %v13308_v40 = vmax.f32 %v6322_v18, %v10499_v8  ;;  %v6655_v57 = vpop.f32.mrb[99].mxu1 }
 0x301   : > { %v7063_v16 = vmax.f32 %v13302_v24, %v13296_v29  ;;  %v13312_v52 = vmax.f32 %v6320_v58, %v6655_v57 }
 0x302   : > { %v7066_v45 = vmax.f32 %v13308_v40, %v13300_v47 }
 0x303   : > { %v7064_v51 = vmax.f32 %v13312_v52, %v13304_v25 }
 0x305   : > { %v13318_v38 = vpop.f32.mrb[100].mxu0  ;;  %v10502_v54 = vpop.f32.mrb[100].mxu1 }
 0x306   : > { %v13320_v44 = vpop.f32.mrb[101].mxu0  ;;  %v13322_v20 = vmax.f32 %v6325_v34, %v10502_v54  ;;  %v6668_v18 = vpop.f32.mrb[101].mxu1 }
 0x307   : > { %v13324_v37 = vpop.f32.mrb[102].mxu0  ;;  %v13326_v30 = vmax.f32 %v6323_v32, %v6668_v18  ;;  %v10503_v58 = vpop.f32.mrb[102].mxu1 }
 0x308   : > { %v13328_v4 = vpop.f32.mrb[103].mxu0  ;;  %v7069_v17 = vmax.f32 %v13322_v20, %v13318_v38  ;;  %v13332_v53 = vmax.f32 %v6326_v41, %v10503_v58  ;;  %v6671_v22 = vpop.f32.mrb[103].mxu1 }
 0x309   : > { %v7067_v2 = vmax.f32 %v13326_v30, %v13320_v44  ;;  %v13336_v21 = vmax.f32 %v6324_v59, %v6671_v22 }
 0x30a   : > { %v7070_v34 = vmax.f32 %v13332_v53, %v13324_v37 }
 0x30b   : > { %v7068_v32 = vmax.f32 %v13336_v21, %v13328_v4 }
 0x32d   : > { %v13342_v35 = vpop.f32.mrb[104].mxu0  ;;  %v10566_v42 = vpop.f32.mrb[104].mxu1 }
 0x32e   : > { %v13344_v33 = vpop.f32.mrb[105].mxu0  ;;  %v13346_v27 = vmax.f32 %v7057_v49, %v10566_v42  ;;  %v7364_v41 = vpop.f32.mrb[105].mxu1 }
 0x32f   : > { %v13348_v39 = vpop.f32.mrb[106].mxu0  ;;  %v13350_v9 = vmax.f32 %v7055_v19, %v7364_v41  ;;  %v10567_v59 = vpop.f32.mrb[106].mxu1 }
 0x330   : > { %v13352_v28 = vpop.f32.mrb[107].mxu0  ;;  %v7801_v55 = vmax.f32 %v13346_v27, %v13342_v35  ;;  %v13356_v48 = vmax.f32 %v7058_v50, %v10567_v59  ;;  %v7367_v36 = vpop.f32.mrb[107].mxu1 }
 0x331   : > { %v7799_v29 = vmax.f32 %v13350_v9, %v13344_v33  ;;  %v13360_v26 = vmax.f32 %v7056_v23, %v7367_v36 }
 0x332   : > { %v7802_v49 = vmax.f32 %v13356_v48, %v13348_v39 }
 0x333   : > { %v7800_v19 = vmax.f32 %v13360_v26, %v13352_v28 }
 0x335   : > { %v13366_v46 = vpop.f32.mrb[108].mxu0  ;;  %v10570_v47 = vpop.f32.mrb[108].mxu1 }
 0x336   : > { %v13368_v24 = vpop.f32.mrb[109].mxu0  ;;  %v13370_v8 = vmax.f32 %v7061_v5, %v10570_v47  ;;  %v7380_v50 = vpop.f32.mrb[109].mxu1 }
 0x337   : > { %v13372_v25 = vpop.f32.mrb[110].mxu0  ;;  %v13374_v40 = vmax.f32 %v7059_v7, %v7380_v50  ;;  %v10571_v23 = vpop.f32.mrb[110].mxu1 }
 0x338   : > { %v13376_v57 = vpop.f32.mrb[111].mxu0  ;;  %v7805_v52 = vmax.f32 %v13370_v8, %v13366_v46  ;;  %v13380_v38 = vmax.f32 %v7062_v14, %v10571_v23  ;;  %v7383_v54 = vpop.f32.mrb[111].mxu1 }
 0x339   : > { %v7803_v44 = vmax.f32 %v13374_v40, %v13368_v24  ;;  %v13384_v20 = vmax.f32 %v7060_v31, %v7383_v54 }
 0x33a   : > { %v7806_v5 = vmax.f32 %v13380_v38, %v13372_v25 }
 0x33b   : > { %v7804_v7 = vmax.f32 %v13384_v20, %v13376_v57 }
 0x33d   : > { %v13390_v18 = vpop.f32.mrb[112].mxu0  ;;  %v10574_v37 = vpop.f32.mrb[112].mxu1 }
 0x33e   : > { %v13392_v30 = vpop.f32.mrb[113].mxu0  ;;  %v13394_v58 = vmax.f32 %v7065_v43, %v10574_v37  ;;  %v7396_v14 = vpop.f32.mrb[113].mxu1 }
 0x33f   : > { %v13396_v4 = vpop.f32.mrb[114].mxu0  ;;  %v13398_v53 = vmax.f32 %v7063_v16, %v7396_v14  ;;  %v10575_v31 = vpop.f32.mrb[114].mxu1 }
 0x340   : > { %v13400_v22 = vpop.f32.mrb[115].mxu0  ;;  %v7809_v21 = vmax.f32 %v13394_v58, %v13390_v18  ;;  %v13404_v35 = vmax.f32 %v7066_v45, %v10575_v31  ;;  %v7399_v42 = vpop.f32.mrb[115].mxu1 }
 0x341   : > { %v13408_v27 = vmax.f32 %v7064_v51, %v7399_v42 }
 0x342   : > { %v13629_v18 = vmax.f32 %v13404_v35, %v13396_v4 }
 0x345   : > { %v13414_v41 = vpop.f32.mrb[116].mxu0  ;;  %v10578_v39 = vpop.f32.mrb[116].mxu1 }
 0x346   : > { %v13416_v9 = vpop.f32.mrb[117].mxu0  ;;  %v13418_v59 = vmax.f32 %v7069_v17, %v10578_v39  ;;  %v7412_v45 = vpop.f32.mrb[117].mxu1 }
 0x347   : > { %v13420_v48 = vpop.f32.mrb[118].mxu0  ;;  %v13422_v36 = vmax.f32 %v7067_v2, %v7412_v45  ;;  %v10579_v51 = vpop.f32.mrb[118].mxu1 }
 0x348   : > { %v13424_v47 = vpop.f32.mrb[119].mxu0  ;;  %v13428_v23 = vmax.f32 %v7070_v34, %v10579_v51  ;;  %v7415_v54 = vpop.f32.mrb[119].mxu1 }
 0x349   : > { %v13432_v14 = vmax.f32 %v7068_v32, %v7415_v54  ;;  %v13441_v54 = vld [vmem:[%s13567_s5] ss:$0 sm:$0xff] }
 0x36d   : > { %v10680_v31 = vpop.f32.mrb[120].mxu0  ;;  %v10642_v42 = vpop.f32.mrb[120].mxu1 }
 0x36e   : > { %v8480_v39 = vpop.f32.mrb[121].mxu0  ;;  %v8173_v45 = vmax.f32 %v7801_v55, %v10642_v42  ;;  %v8108_v50 = vpop.f32.mrb[121].mxu1 }
 0x36f   : > { %v10681_v34 = vpop.f32.mrb[122].mxu0  ;;  %v8171_v51 = vmax.f32 %v7799_v29, %v8108_v50  ;;  %v10643_v16 = vpop.f32.mrb[122].mxu1 }
 0x370   : > { %v8483_v43 = vpop.f32.mrb[123].mxu0  ;;  %v8545_v33 = vmax.f32 %v8173_v45, %v10680_v31  ;;  %v8174_v37 = vmax.f32 %v7802_v49, %v10643_v16  ;;  %v8111_v32 = vpop.f32.mrb[123].mxu1 }
 0x371   : > { %v8543_v17 = vmax.f32 %v8171_v51, %v8480_v39  ;;  %v8172_v2 = vmax.f32 %v7800_v19, %v8111_v32 }
 0x372   : > { %v8561_v55 = vsub.f32 %v8545_v33, %v12173_v56  ;;  %v8546_v42 = vmax.f32 %v8174_v37, %v10681_v34 }
 0x373   : > { %v8559_v29 = vsub.f32 %v8543_v17, %v12186_v61  ;;  %v8544_v50 = vmax.f32 %v8172_v2, %v8483_v43 }
 0x374   : > { %v8584_v49 = vadd.f32 %v13441_v54, %v8561_v55  ;;  %v8562_v16 = vsub.f32 %v8546_v42, %v12191_v63 }
 0x375   : > { %v10684_v31 = vpop.f32.mrb[124].mxu0  ;;  %v8582_v28 = vadd.f32 %v13441_v54, %v8559_v29  ;;  %v8560_v56 = vsub.f32 %v8544_v50, %v12196_v1  ;;  %v10646_v26 = vpop.f32.mrb[124].mxu1 }
 0x376   : > { %v8496_v19 = vpop.f32.mrb[125].mxu0  ;;  %v8600_v61 = vmax.f32 %v8584_v49, 0.0  ;;  %v8585_v33 = vadd.f32 %v13441_v54, %v8562_v16  ;;  %v8177_v63 = vmax.f32 %v7805_v52, %v10646_v26  ;;  %v8124_v43 = vpop.f32.mrb[125].mxu1 }
 0x377   : > { %v10685_v37 = vpop.f32.mrb[126].mxu0  ;;  %v8598_v17 = vmax.f32 %v8582_v28, 0.0  ;;  %v8583_v2 = vadd.f32 %v13441_v54, %v8560_v56  ;;  %v8175_v1 = vmax.f32 %v7803_v44, %v8124_v43  ;;  %v10647_v39 = vpop.f32.mrb[126].mxu1  ;;  %v13628_v28 = vmax.f32 %v13398_v53, %v13392_v30 }
 0x378   : > { %v8499_v45 = vpop.f32.mrb[127].mxu0  ;;  %8617 = vst.msk [vmem:[%s13454_s24 + $0x10] sm:$0xff] %vm8614_vm4, %v8600_v61  ;;  %v8601_v34 = vmax.f32 %v8585_v33, 0.0  ;;  %v8549_v51 = vmax.f32 %v8177_v63, %v10684_v31  ;;  %v8178_v46 = vmax.f32 %v7806_v5, %v10647_v39  ;;  %v8127_v8 = vpop.f32.mrb[127].mxu1  ;;  %v13630_v30 = vmax.f32 %v13408_v27, %v13400_v22 }
 0x379   : > { %8615 = vst.msk [vmem:[%s13454_s24] sm:$0xff] %vm8614_vm4, %v8598_v17  ;;  %v8599_v52 = vmax.f32 %v8583_v2, 0.0  ;;  %v8547_v32 = vmax.f32 %v8175_v1, %v8496_v19  ;;  %v8176_v24 = vmax.f32 %v7804_v7, %v8127_v8 }
 0x37a   : > { %8618 = vst.msk [vmem:[%s13454_s24 + $0x18] sm:$0xff] %vm8614_vm4, %v8601_v34  ;;  %v8565_v40 = vsub.f32 %v8549_v51, %v12209_v6  ;;  %v8550_v44 = vmax.f32 %v8178_v46, %v10685_v37 }
 0x37b   : > { %8616 = vst.msk [vmem:[%s13454_s24 + $0x8] sm:$0xff] %vm8614_vm4, %v8599_v52  ;;  %v8563_v55 = vsub.f32 %v8547_v32, %v12215_v11  ;;  %v8548_v25 = vmax.f32 %v8176_v24, %v8499_v45  ;;  %v13632_v32 = vmax.f32 %v13422_v36, %v13416_v9  ;;  %v13634_v9 = vmax.f32 %v13432_v14, %v13424_v47  ;;  %v13636_v14 = vld [vmem:[#allocation5_spill] sm:$0xff] }
 0x37c   : > { %v8588_v38 = vadd.f32 %v13441_v54, %v8565_v40  ;;  %v8566_v5 = vsub.f32 %v8550_v44, %v12219_v13 }
 0x37d   : > { %v10688_v42 = vpop.f32.mrb[128].mxu0  ;;  %v8586_v29 = vadd.f32 %v13441_v54, %v8563_v55  ;;  %v8564_v57 = vsub.f32 %v8548_v25, %v12223_v15  ;;  %v10650_v20 = vpop.f32.mrb[128].mxu1 }
 0x37e   : > { %v8512_v7 = vpop.f32.mrb[129].mxu0  ;;  %v8604_v6 = vmax.f32 %v8588_v38, 0.0  ;;  %v8589_v50 = vadd.f32 %v13441_v54, %v8566_v5  ;;  %v8181_v11 = vmax.f32 %v7809_v21, %v10650_v20  ;;  %v8140_v49 = vpop.f32.mrb[129].mxu1  ;;  %v13635_v20 = vld [vmem:[#allocation4_spill] sm:$0xff] }
 0x37f   : > { %v10689_v16 = vpop.f32.mrb[130].mxu0  ;;  %v8602_v13 = vmax.f32 %v8586_v29, 0.0  ;;  %v8587_v31 = vadd.f32 %v13441_v54, %v8564_v57  ;;  %v8179_v15 = vmax.f32 %v13628_v28, %v8140_v49  ;;  %v10651_v56 = vpop.f32.mrb[130].mxu1 }
 0x380   : > { %v8515_v26 = vpop.f32.mrb[131].mxu0  ;;  %8621 = vst.msk [vmem:[%s13454_s24 + $0x30] sm:$0xff] %vm8614_vm4, %v8604_v6  ;;  %v8605_v19 = vmax.f32 %v8589_v50, 0.0  ;;  %v8553_v61 = vmax.f32 %v8181_v11, %v10688_v42  ;;  %v8182_v58 = vmax.f32 %v13629_v18, %v10651_v56  ;;  %v8143_v21 = vpop.f32.mrb[131].mxu1 }
 0x381   : > { %8619 = vst.msk [vmem:[%s13454_s24 + $0x20] sm:$0xff] %vm8614_vm4, %v8602_v13  ;;  %v8603_v33 = vmax.f32 %v8587_v31, 0.0  ;;  %v8551_v63 = vmax.f32 %v8179_v15, %v8512_v7  ;;  %v8180_v53 = vmax.f32 %v13630_v30, %v8143_v21 }
 0x382   : > { %8622 = vst.msk [vmem:[%s13454_s24 + $0x38] sm:$0xff] %vm8614_vm4, %v8605_v19  ;;  %v8569_v43 = vsub.f32 %v8553_v61, %v12184_v60  ;;  %v8554_v37 = vmax.f32 %v8182_v58, %v10689_v16 }
 0x383   : > { %8620 = vst.msk [vmem:[%s13454_s24 + $0x28] sm:$0xff] %vm8614_vm4, %v8603_v33  ;;  %v8567_v17 = vsub.f32 %v8551_v63, %v12189_v62  ;;  %v8552_v4 = vmax.f32 %v8180_v53, %v8515_v26  ;;  %v13631_v62 = vmax.f32 %v13418_v59, %v13414_v41  ;;  %v13633_v41 = vmax.f32 %v13428_v23, %v13420_v48 }
 0x384   : > { %v8592_v35 = vadd.f32 %v13441_v54, %v8569_v43  ;;  %v8570_v2 = vsub.f32 %v8554_v37, %v12194_v0 }
 0x385   : > { %v10692_v1 = vpop.f32.mrb[132].mxu0  ;;  %v8590_v39 = vadd.f32 %v13441_v54, %v8567_v17  ;;  %v8568_v22 = vsub.f32 %v8552_v4, %v12201_v3  ;;  %v10654_v27 = vpop.f32.mrb[132].mxu1 }
 0x386   : > { %v8528_v45 = vpop.f32.mrb[133].mxu0  ;;  %v8608_v60 = vmax.f32 %v8592_v35, 0.0  ;;  %v8593_v34 = vadd.f32 %v13441_v54, %v8570_v2  ;;  %v8185_v51 = vmax.f32 %v13631_v62, %v10654_v27  ;;  %v8156_v46 = vpop.f32.mrb[133].mxu1 }
 0x387   : > { %v10693_v8 = vpop.f32.mrb[134].mxu0  ;;  %v8606_v0 = vmax.f32 %v8590_v39, 0.0  ;;  %v8591_v52 = vadd.f32 %v13441_v54, %v8568_v22  ;;  %v8183_v3 = vmax.f32 %v13632_v32, %v8156_v46  ;;  %v10655_v24 = vpop.f32.mrb[134].mxu1 }
 0x388   : > { %v8531_v40 = vpop.f32.mrb[135].mxu0  ;;  %8625 = vst.msk [vmem:[%s13454_s24 + $0x50] sm:$0xff] %vm8614_vm4, %v8608_v60  ;;  %v8609_v44 = vmax.f32 %v8593_v34, 0.0  ;;  %v8557_v55 = vmax.f32 %v8185_v51, %v10692_v1  ;;  %v8186_v59 = vmax.f32 %v13633_v41, %v10655_v24  ;;  %v8159_v25 = vpop.f32.mrb[135].mxu1 }
 0x389   : > { %8623 = vst.msk [vmem:[%s13454_s24 + $0x40] sm:$0xff] %vm8614_vm4, %v8606_v0  ;;  %v8607_v38 = vmax.f32 %v8591_v52, 0.0  ;;  %v8555_v5 = vmax.f32 %v8183_v3, %v8528_v45  ;;  %v8184_v36 = vmax.f32 %v13634_v9, %v8159_v25 }
 0x38a   : > { %8626 = vst.msk [vmem:[%s13454_s24 + $0x58] sm:$0xff] %vm8614_vm4, %v8609_v44  ;;  %v8573_v42 = vsub.f32 %v8557_v55, %v12213_v10  ;;  %v8558_v29 = vmax.f32 %v8186_v59, %v10693_v8 }
 0x38b   : > { %8624 = vst.msk [vmem:[%s13454_s24 + $0x48] sm:$0xff] %vm8614_vm4, %v8607_v38  ;;  %v8571_v48 = vsub.f32 %v8555_v5, %v12217_v12  ;;  %v8556_v23 = vmax.f32 %v8184_v36, %v8531_v40 }
 0x38c   : > { %v8596_v57 = vadd.f32 %v13441_v54, %v8573_v42  ;;  %v8574_v7 = vsub.f32 %v8558_v29, %v13635_v20 }
 0x38d   : > { %v8594_v47 = vadd.f32 %v13441_v54, %v8571_v48  ;;  %v8572_v6 = vsub.f32 %v8556_v23, %v13636_v14 }
 0x38e   : > { %v8612_v50 = vmax.f32 %v8596_v57, 0.0  ;;  %v8597_v11 = vadd.f32 %v13441_v54, %v8574_v7 }
 0x38f   : > { %v8610_v10 = vmax.f32 %v8594_v47, 0.0  ;;  %v8595_v49 = vadd.f32 %v13441_v54, %v8572_v6 }
 0x390   : > { %8629 = vst.msk [vmem:[%s13454_s24 + $0x70] sm:$0xff] %vm8614_vm4, %v8612_v50  ;;  %v8613_v16 = vmax.f32 %v8597_v11, 0.0 }
 0x391   : > { %8627 = vst.msk [vmem:[%s13454_s24 + $0x60] sm:$0xff] %vm8614_vm4, %v8610_v10  ;;  %v8611_v12 = vmax.f32 %v8595_v49, 0.0 }
 0x392   : > { %8630 = vst.msk [vmem:[%s13454_s24 + $0x78] sm:$0xff] %vm8614_vm4, %v8613_v16 }
 0x393   : > { %8628 = vst.msk [vmem:[%s13454_s24 + $0x68] sm:$0xff] %vm8614_vm4, %v8611_v12 }
 0x394 PF: > { %p13_p9 = scmp.ge.s32.totalorder %s11324_s25, 4   ;;  %s13637_s21 = smov %s11265_s22 }
 0x395   : > { %s13638_s22 = smov %s11333_s28  ;;  %s13639_s23 = smov %s11324_s25 }
 0x396   :  { %15 = sbr.rel (!%p13_p9) target bundleno = 2 (0x2), region = 202 }

</bundles_post_ra>
